<compile_context>
chip_gen: v7x
topology: tpu7x:2x2x1
jax: 0.10.0
libtpu: 0.0.40
codegen_flags: <defaults>
</compile_context>

<pallas_src>
import functools

import jax
import jax.numpy as jnp
from jax.experimental import pallas as pl
from jax.experimental.pallas import tpu as pltpu

IN_DIM = 303
HID_DIM = 1024
OUT_DIM = 2

IN_PAD = 384    # 303 rounded up to a multiple of 128 (lane-aligned fc1 K)
OUT_PAD = 128   # 2 rounded up to one full lane tile (lane-dense stores)


def _round_up(n, m):
    return ((n + m - 1) // m) * m


def mlp_kernel(x_ref, w1_ref, w2_ref, w3_ref, b_ref, o_ref, xpad_ref):
    """Fused 3-layer affine MLP on one (TB, *) batch tile.

    x_ref   : (TB, 303)  f32   (raw input tile)
    w1_ref  : (384, 1024) bf16 (rows 303..383 are zero)
    w2_ref  : (1024, 1024) bf16
    w3_ref  : (1024, 128) bf16 (cols 2..127 are zero)
    b_ref   : (1, 128)   f32   (folded effective bias, cols 2..127 zero)
    o_ref   : (TB, 128)  f32
    xpad_ref: (TB, 384)  bf16  VMEM scratch (padded / cast activation tile)
    """
    tb = x_ref.shape[0]
    # Zero the 303->384 padding tail (one lane-tile band; cheap, and done every
    # iteration so it is correct on every core under megacore partitioning),
    # then write the bf16-cast input columns.
    xpad_ref[:, IN_DIM:] = jnp.zeros((tb, IN_PAD - IN_DIM), jnp.bfloat16)
    xpad_ref[:, :IN_DIM] = x_ref[...].astype(jnp.bfloat16)

    # bf16 x bf16 MXU matmuls with f32 accumulation; biases are pre-folded so
    # only one f32 add remains after fc3.
    h1 = jnp.dot(xpad_ref[...], w1_ref[...], preferred_element_type=jnp.float32)
    h2 = jnp.dot(h1.astype(jnp.bfloat16), w2_ref[...],
                 preferred_element_type=jnp.float32)
    o_ref[...] = (jnp.dot(h2.astype(jnp.bfloat16), w3_ref[...],
                          preferred_element_type=jnp.float32) + b_ref[...])


def prepare_params(params):
    """One-time (outside the kernel) weight quantize + pad + bias folding.

    Returns (W1_pad bf16 (384,1024), W2 bf16 (1024,1024),
             W3_pad bf16 (1024,128), b_eff f32 (1,128)).
    """
    w1, b1, w2, b2, w3, b3 = params
    w1b = w1.astype(jnp.bfloat16)
    w2b = w2.astype(jnp.bfloat16)
    w3b = w3.astype(jnp.bfloat16)

    # Fold b1/b2 into a single effective bias added after fc3 (exact for an
    # affine network).  Computed in f32 from the bf16-quantized weights so the
    # kernel matches a layer-by-layer forward with the same weights.
    b_eff = (b1 @ w2b.astype(jnp.float32) + b2) @ w3b.astype(jnp.float32) + b3

    # Lane-align: W1 K padded 303->384 with zero rows, W3/b_eff N padded 2->128.
    w1p = jnp.zeros((IN_PAD, HID_DIM), jnp.bfloat16).at[:IN_DIM].set(w1b)
    w3p = jnp.zeros((HID_DIM, OUT_PAD), jnp.bfloat16).at[:, :OUT_DIM].set(w3b)
    b_eff_p = jnp.zeros((1, OUT_PAD), jnp.float32).at[:, :OUT_DIM].set(b_eff)
    return (w1p, w2b, w3p, b_eff_p)


@functools.partial(jax.jit, static_argnames=("block_b",))
def neural_net_forward(x, prepared_params, *, block_b=512):
    """x: (B, 303) float32 -> (B, 2) float32."""
    w1, w2, w3, b_eff = prepared_params
    B = x.shape[0]

    # Batch tile: 512 rows for large batches; otherwise the whole batch rounded
    # up to a multiple of 16 (bf16 sublane packing) and run as one tile.
    tb = block_b if B >= block_b else _round_up(B, 16)
    b_pad = _round_up(B, tb)

    # Pad only the batch axis (f32); feature pad + bf16 cast happen in-kernel.
    if b_pad != B:
        x = jnp.pad(x, ((0, b_pad - B), (0, 0)))

    grid = (b_pad // tb,)

    # Constant index_map -> weight/bias blocks are fetched once and remain
    # VMEM-resident across all batch tiles.
    def const(i):
        return (0, 0)

    flops = 2 * b_pad * (IN_PAD * HID_DIM + HID_DIM * HID_DIM + HID_DIM * OUT_PAD)
    bytes_accessed = (
        b_pad * IN_DIM * 4                            # f32 input
        + (w1.size + w2.size + w3.size) * 2           # bf16 weights
        + b_eff.size * 4                              # f32 folded bias
        + b_pad * OUT_PAD * 4)                        # f32 output

    out = pl.pallas_call(
        mlp_kernel,
        out_shape=jax.ShapeDtypeStruct((b_pad, OUT_PAD), jnp.float32),
        grid_spec=pltpu.PrefetchScalarGridSpec(
            num_scalar_prefetch=0,
            grid=grid,
            in_specs=[
                pl.BlockSpec((tb, IN_DIM), lambda i: (i, 0)),     # x tile (f32)
                pl.BlockSpec((IN_PAD, HID_DIM), const),           # W1 (resident)
                pl.BlockSpec((HID_DIM, HID_DIM), const),          # W2 (resident)
                pl.BlockSpec((HID_DIM, OUT_PAD), const),          # W3 (resident)
                pl.BlockSpec((1, OUT_PAD), const),                # folded bias
            ],
            out_specs=pl.BlockSpec((tb, OUT_PAD), lambda i: (i, 0)),
            scratch_shapes=[pltpu.VMEM((tb, IN_PAD), jnp.bfloat16)],
        ),
        compiler_params=pltpu.CompilerParams(
            dimension_semantics=("parallel",),
            vmem_limit_bytes=40 * 1024 * 1024),
        cost_estimate=pl.CostEstimate(
            flops=flops, transcendentals=0, bytes_accessed=bytes_accessed),
    )(x, w1, w2, w3, b_eff)

    return out[:B, :OUT_DIM]


def init_params(key):
    """Deterministic f32 parameter init (PyTorch-style uniform ranges)."""
    ks = jax.random.split(key, 6)

    def linear_init(kw, kb, fan_in, fan_out):
        bound = 1.0 / jnp.sqrt(fan_in)
        # Stored as (in, out) so the kernel computes x @ W + b.
        w = jax.random.uniform(kw, (fan_in, fan_out), jnp.float32, -bound, bound)
        b = jax.random.uniform(kb, (1, fan_out), jnp.float32, -bound, bound)
        return w, b

    w1, b1 = linear_init(ks[0], ks[1], IN_DIM, HID_DIM)
    w2, b2 = linear_init(ks[2], ks[3], HID_DIM, HID_DIM)
    w3, b3 = linear_init(ks[4], ks[5], HID_DIM, OUT_DIM)
    return (w1, b1, w2, b2, w3, b3)


def reference_forward(x, params):
    # Layer-by-layer f32 reference (original module semantics) using the same
    # bf16-quantized weights the kernel consumes, so the comparison isolates
    # kernel numerics (activation bf16 rounding + bias folding) from weight
    # quantization.
    w1, b1, w2, b2, w3, b3 = params
    w1 = w1.astype(jnp.bfloat16).astype(jnp.float32)
    w2 = w2.astype(jnp.bfloat16).astype(jnp.float32)
    w3 = w3.astype(jnp.bfloat16).astype(jnp.float32)
    h1 = x @ w1 + b1
    h2 = h1 @ w2 + b2
    return h2 @ w3 + b3


if __name__ == "__main__":
    key = jax.random.PRNGKey(0)
    k_x, k_p = jax.random.split(key)

    B = 8
    x = jax.random.normal(k_x, (B, IN_DIM), dtype=jnp.float32)
    params = init_params(k_p)
    prepared = prepare_params(params)

    out = neural_net_forward(x, prepared)
    out = jax.block_until_ready(out)

    ref = reference_forward(x, params)
    assert out.shape == (B, OUT_DIM), out.shape
    max_err = jnp.max(jnp.abs(out - ref))
    assert jnp.allclose(out, ref, atol=2e-2, rtol=2e-2), (
        f"max abs err {max_err}"
    )

    print("KERNEL_OK")
</pallas_src>

<mosaic_0001>
module attributes {stable_mosaic.version = 11 : i64} {
  func.func @mlp_kernel(%arg0: i32, %arg1: memref<16x303xf32, #tpu.memory_space<vmem>>, %arg2: memref<384x1024xbf16, #tpu.memory_space<vmem>>, %arg3: memref<1024x1024xbf16, #tpu.memory_space<vmem>>, %arg4: memref<1024x128xbf16, #tpu.memory_space<vmem>>, %arg5: memref<1x128xf32, #tpu.memory_space<vmem>>, %arg6: memref<16x128xf32, #tpu.memory_space<vmem>>, %arg7: memref<16x384xbf16, #tpu.memory_space<vmem>>) attributes {dimension_semantics = [#tpu.dimension_semantics<parallel>], iteration_bounds = array<i64: 1>, scalar_prefetch = 0 : i64, scratch_operands = 1 : i64, tpu.core_type = #tpu.core_type<tc>, window_params = [{transform_indices = @transform_0, window_bounds = array<i64: 16, 303>}, {pipeline_mode = #tpu.pipeline_mode<synchronous>, transform_indices = @transform_1, window_bounds = array<i64: 384, 1024>}, {pipeline_mode = #tpu.pipeline_mode<synchronous>, transform_indices = @transform_2, window_bounds = array<i64: 1024, 1024>}, {pipeline_mode = #tpu.pipeline_mode<synchronous>, transform_indices = @transform_3, window_bounds = array<i64: 1024, 128>}, {pipeline_mode = #tpu.pipeline_mode<synchronous>, transform_indices = @transform_4, window_bounds = array<i64: 1, 128>}, {transform_indices = @transform_5, window_bounds = array<i64: 16, 128>}]} {
    %cst = arith.constant 0.000000e+00 : bf16
    %0 = vector.broadcast %cst : bf16 to vector<16x81xbf16>
    %c0 = arith.constant 0 : index
    %c303 = arith.constant 303 : index
    %1 = vector.load %arg7[%c0, %c303] : memref<16x384xbf16, #tpu.memory_space<vmem>>, vector<16x81xbf16>
    tpu.vector_store %arg7[%c0, %c303], %0 {strides = array<i32>} : memref<16x384xbf16, #tpu.memory_space<vmem>>, vector<16x81xbf16>,
    %c0_0 = arith.constant 0 : index
    %c0_1 = arith.constant 0 : index
    %2 = vector.load %arg1[%c0_0, %c0_1] : memref<16x303xf32, #tpu.memory_space<vmem>>, vector<16x303xf32>
    %3 = arith.truncf %2 : vector<16x303xf32> to vector<16x303xbf16>
    %c0_2 = arith.constant 0 : index
    %c0_3 = arith.constant 0 : index
    %4 = vector.load %arg7[%c0_2, %c0_3] : memref<16x384xbf16, #tpu.memory_space<vmem>>, vector<16x303xbf16>
    tpu.vector_store %arg7[%c0_2, %c0_3], %3 {strides = array<i32>} : memref<16x384xbf16, #tpu.memory_space<vmem>>, vector<16x303xbf16>,
    %c0_4 = arith.constant 0 : index
    %c0_5 = arith.constant 0 : index
    %5 = vector.load %arg7[%c0_4, %c0_5] : memref<16x384xbf16, #tpu.memory_space<vmem>>, vector<16x384xbf16>
    %c0_6 = arith.constant 0 : index
    %c0_7 = arith.constant 0 : index
    %6 = vector.load %arg2[%c0_6, %c0_7] : memref<384x1024xbf16, #tpu.memory_space<vmem>>, vector<384x1024xbf16>
    %cst_8 = arith.constant dense<0.000000e+00> : vector<16x1024xf32>
    %7 = tpu.matmul %5, %6, %cst_8 {dimension_numbers = #tpu.dot_dimension_numbers<[1], [0], [0], [1], [0, 0, 1, 1], [], []>} : vector<16x384xbf16>, vector<384x1024xbf16>, vector<16x1024xf32> -> vector<16x1024xf32>
    %8 = arith.truncf %7 : vector<16x1024xf32> to vector<16x1024xbf16>
    %c0_9 = arith.constant 0 : index
    %c0_10 = arith.constant 0 : index
    %9 = vector.load %arg3[%c0_9, %c0_10] : memref<1024x1024xbf16, #tpu.memory_space<vmem>>, vector<1024x1024xbf16>
    %cst_11 = arith.constant dense<0.000000e+00> : vector<16x1024xf32>
    %10 = tpu.matmul %8, %9, %cst_11 {dimension_numbers = #tpu.dot_dimension_numbers<[1], [0], [0], [1], [0, 0, 1, 1], [], []>} : vector<16x1024xbf16>, vector<1024x1024xbf16>, vector<16x1024xf32> -> vector<16x1024xf32>
    %11 = arith.truncf %10 : vector<16x1024xf32> to vector<16x1024xbf16>
    %c0_12 = arith.constant 0 : index
    %c0_13 = arith.constant 0 : index
    %12 = vector.load %arg4[%c0_12, %c0_13] : memref<1024x128xbf16, #tpu.memory_space<vmem>>, vector<1024x128xbf16>
    %cst_14 = arith.constant dense<0.000000e+00> : vector<16x128xf32>
    %13 = tpu.matmul %11, %12, %cst_14 {dimension_numbers = #tpu.dot_dimension_numbers<[1], [0], [0], [1], [0, 0, 1, 1], [], []>} : vector<16x1024xbf16>, vector<1024x128xbf16>, vector<16x128xf32> -> vector<16x128xf32>
    %c0_15 = arith.constant 0 : index
    %c0_16 = arith.constant 0 : index
    %14 = vector.load %arg5[%c0_15, %c0_16] : memref<1x128xf32, #tpu.memory_space<vmem>>, vector<1x128xf32>
    %15 = vector.broadcast %14 : vector<1x128xf32> to vector<16x128xf32>
    %16 = arith.addf %13, %15 : vector<16x128xf32>
    %c0_17 = arith.constant 0 : index
    %c0_18 = arith.constant 0 : index
    %17 = vector.load %arg6[%c0_17, %c0_18] : memref<16x128xf32, #tpu.memory_space<vmem>>, vector<16x128xf32>
    tpu.vector_store %arg6[%c0_17, %c0_18], %16 {strides = array<i32>} : memref<16x128xf32, #tpu.memory_space<vmem>>, vector<16x128xf32>,
    return
  }
  func.func @transform_0(%arg0: i32) -> (i32, i32) {
    %c0_i32 = arith.constant 0 : i32
    %c0_i32_0 = arith.constant 0 : i32
    return %arg0, %c0_i32 : i32, i32
  }
  func.func @transform_1(%arg0: i32) -> (i32, i32) {
    %c0_i32 = arith.constant 0 : i32
    %c0_i32_0 = arith.constant 0 : i32
    %c0_i32_1 = arith.constant 0 : i32
    return %c0_i32, %c0_i32_0 : i32, i32
  }
  func.func @transform_2(%arg0: i32) -> (i32, i32) {
    %c0_i32 = arith.constant 0 : i32
    %c0_i32_0 = arith.constant 0 : i32
    %c0_i32_1 = arith.constant 0 : i32
    return %c0_i32, %c0_i32_0 : i32, i32
  }
  func.func @transform_3(%arg0: i32) -> (i32, i32) {
    %c0_i32 = arith.constant 0 : i32
    %c0_i32_0 = arith.constant 0 : i32
    %c0_i32_1 = arith.constant 0 : i32
    return %c0_i32, %c0_i32_0 : i32, i32
  }
  func.func @transform_4(%arg0: i32) -> (i32, i32) {
    %c0_i32 = arith.constant 0 : i32
    %c0_i32_0 = arith.constant 0 : i32
    %c0_i32_1 = arith.constant 0 : i32
    return %c0_i32, %c0_i32_0 : i32, i32
  }
  func.func @transform_5(%arg0: i32) -> (i32, i32) {
    %c0_i32 = arith.constant 0 : i32
    %c0_i32_0 = arith.constant 0 : i32
    return %arg0, %c0_i32 : i32, i32
  }
}

</mosaic_0001>

<bundles_post_ra>
// kernel: neural_net_forward.1
= control target key start
LH: loop header
LB: loop body
LE: loop exit
PB: predicated region body
PF: predicated region fallthrough
CT: control target
= control target key end

     0   :  { %10 = vsyncpa [#allocation4], 0  ;;  %s7369_s0 = inlined_call_operand.vmem [shape: f32[16,303], index: 0, kind: input, shape index: {}]   ;;  %s7370_s1 = inlined_call_operand.hbm [shape: bf16[384,1024], index: 1, kind: input, shape index: {}]   ;;  %s7371_s2 = inlined_call_operand.hbm [shape: bf16[1024,1024], index: 2, kind: input, shape index: {}]   ;;  %s7372_s3 = inlined_call_operand.hbm [shape: bf16[1024,128], index: 3, kind: input, shape index: {}]   ;;  %s7373_s4 = inlined_call_operand.hbm [shape: f32[1,128], index: 4, kind: input, shape index: {}]   ;;  %s7374_s5 = inlined_call_operand.vmem [shape: f32[16,128], index: 5, kind: output, shape index: {}]  }
   0x1   :  { %11 = vsyncpa [#allocation6], 0 }
   0x2   :  { %12 = vsyncpa [#allocation9], 0  ;;  %s7145_s18 = smov [#allocation5]   ;;  %s7146_s20 = smov [#allocation3]  }
   0x3   :  { %s32_s19 = sshll.u32 %s7145_s18, 4  ;;  %s20_s21 = sshll.u32 %s7146_s20, 4  ;;  %s33_s19 = int_to_ptr.vmem [resolvable:$true] %s32_s19  ;;  %s7184_s21 = int_to_ptr.vmem [resolvable:$true] %s20_s21 }
   0x4   :  { %s7051_s24 = scalar_lea.hbm %s7371_s2, 65536 }
   0x5   :  { %p7052_p0 = scmp.ne.s32.totalorder %s7371_s2, %s7051_s24  ;;  %p7055_p1 = scmp.lt.u32.totalorder %s7051_s24, %s7371_s2 }
   0x7   :  { %p7057_p2 = pnand %p7055_p1, %p7052_p0 }
   0x9   :  { %7060 = shalt.err (!%p7057_p2)
}
   0xa   :  { %s7061_s29 = scalar_lea.vmem %s33_s19, 65536  ;;  %p7066_p4 = scmp.lt.s32.totalorder %s33_s19, %s33_s19 }
   0xb   :  { %p7062_p3 = scmp.ne.s32.totalorder %s33_s19, %s7061_s29  ;;  %p7067_p5 = scmp.lt.s32.totalorder %s7061_s29, %s7061_s29 }
   0xd   :  { %p7068_p6 = por %p7067_p5, %p7066_p4 }
   0xf   :  { %p7069_p7 = pnand %p7068_p6, %p7062_p3 }
  0x11   :  { %7072 = shalt.err (!%p7069_p7)
}
  0x12   :  { %s7147_s30 = smov 512   ;;  %s7148_s6 = smov 32  }
  0x13   :  { %38 = dma.hbm_to_vmem [thread:$0]  %s7371_s2, 65536, %s33_s19, [#allocation6], %s7147_s30, %s7147_s30, %s7148_s6  }
  0x14   :  { %s7073_s11 = scalar_lea.hbm %s7370_s1, 24576 }
  0x15   :  { %p7074_p8 = scmp.ne.s32.totalorder %s7370_s1, %s7073_s11  ;;  %p7077_p9 = scmp.lt.u32.totalorder %s7073_s11, %s7370_s1 }
  0x17   :  { %p7079_p10 = pnand %p7077_p9, %p7074_p8 }
  0x19   :  { %7082 = shalt.err (!%p7079_p10)
}
  0x1a   :  { %s7083_s16 = scalar_lea.vmem %s7184_s21, 24576  ;;  %p7088_p12 = scmp.lt.s32.totalorder %s7184_s21, %s7184_s21 }
  0x1b   :  { %p7084_p11 = scmp.ne.s32.totalorder %s7184_s21, %s7083_s16  ;;  %p7089_p13 = scmp.lt.s32.totalorder %s7083_s16, %s7083_s16 }
  0x1d   :  { %p7090_p0 = por %p7089_p13, %p7088_p12 }
  0x1f   :  { %p7091_p1 = pnand %p7090_p0, %p7084_p11 }
  0x21   :  { %7094 = shalt.err (!%p7091_p1)
}
  0x22   :  { %26 = dma.hbm_to_vmem [thread:$0]  %s7370_s1, 24576, %s7184_s21, [#allocation4], %s7147_s30, %s7147_s30, %s7148_s6  }
  0x23   :  { %s7149_s18 = smov [#allocation7]   ;;  %s7095_s23 = scalar_lea.hbm %s7372_s3, 8192 }
  0x24   :  { %s44_s19 = sshll.u32 %s7149_s18, 4  ;;  %p7096_p2 = scmp.ne.s32.totalorder %s7372_s3, %s7095_s23  ;;  %s45_s19 = int_to_ptr.vmem [resolvable:$true] %s44_s19 }
  0x25   :  { %p7099_p3 = scmp.lt.u32.totalorder %s7095_s23, %s7372_s3 }
  0x27   :  { %p7101_p4 = pnand %p7099_p3, %p7096_p2 }
  0x29   :  { %7104 = shalt.err (!%p7101_p4)
}
  0x2a   :  { %s7105_s28 = scalar_lea.vmem %s45_s19, 8192  ;;  %p7110_p6 = scmp.lt.s32.totalorder %s45_s19, %s45_s19 }
  0x2b   :  { %p7106_p5 = scmp.ne.s32.totalorder %s45_s19, %s7105_s28  ;;  %p7111_p7 = scmp.lt.s32.totalorder %s7105_s28, %s7105_s28 }
  0x2d   :  { %p7112_p8 = por %p7111_p7, %p7110_p6 }
  0x2f   :  { %p7113_p9 = pnand %p7112_p8, %p7106_p5 }
  0x31   :  { %7116 = shalt.err (!%p7113_p9)
}
  0x32   :  { %s7150_s1 = smov 64   ;;  %s7151_s21 = smov 4  }
  0x33   :  { %50 = dma.hbm_to_vmem [thread:$0]  %s7372_s3, 8192, %s45_s19, [#allocation6], %s7150_s1, %s7150_s1, %s7151_s21  }
  0x34   :  { %s7152_s6 = smov [#allocation8]   ;;  %s7117_s10 = scalar_lea.hbm %s7373_s4, 16 }
  0x35   :  { %s57_s7 = sshll.u32 %s7152_s6, 4  ;;  %p7118_p10 = scmp.ne.s32.totalorder %s7373_s4, %s7117_s10  ;;  %s58_s7 = int_to_ptr.vmem [resolvable:$true] %s57_s7 }
  0x36   :  { %p7121_p11 = scmp.lt.u32.totalorder %s7117_s10, %s7373_s4 }
  0x38   :  { %p7123_p12 = pnand %p7121_p11, %p7118_p10 }
  0x3a   :  { %7126 = shalt.err (!%p7123_p12)
}
  0x3b   :  { %s7127_s15 = scalar_lea.vmem %s58_s7, 16  ;;  %s7131_s3 = scalar_lea.vmem %s58_s7, 32 }
  0x3c   :  { %p7128_p13 = scmp.ne.s32.totalorder %s58_s7, %s7127_s15  ;;  %p7132_p0 = scmp.lt.s32.totalorder %s58_s7, %s58_s7 }
  0x3d   :  { %p7133_p1 = scmp.lt.s32.totalorder %s7131_s3, %s7127_s15 }
  0x3f   :  { %p7134_p2 = por %p7133_p1, %p7132_p0 }
  0x41   :  { %p7135_p3 = pnand %p7134_p2, %p7128_p13 }
  0x43   :  { %7138 = shalt.err (!%p7135_p3)
}
  0x44   :  { %60 = dma.hbm_to_vmem [thread:$0]  %s7373_s4, 16, %s58_s7, [#allocation9]  }
  0x45   :  { %7139 = dma.done.wait [#allocation4], 24576  }
  0x46   :  { %7140 = vsyncadd [#allocation4], 4294942720 }
  0x47   :  { %7141 = dma.done.wait [#allocation6], 73728  }
  0x48   :  { %7142 = vsyncadd [#allocation6], 4294893568 }
  0x49   :  { %7143 = dma.done.wait [#allocation9], 16  }
  0x4a   :  { %7144 = vsyncadd [#allocation9], 4294967280  ;;  %vm74_vm0 = vcmask 1047928   ;;  %v7153_v0 = vmov 0   ;;  %v92_v1 = vld [vmem:[#allocation3] sm:$0xff]  ;;  %v93_v11 = vld [vmem:[#allocation3 + $0x8] sm:$0xff] }
  0x4b   :  { %75 = vst.msk [vmem:[#allocation2 + $0x10] sm:$0xff] %vm74_vm0, %v7153_v0  ;;  %v96_v2 = vld [vmem:[#allocation3 + $0x20] sm:$0xff]  ;;  %v97_v14 = vld [vmem:[#allocation3 + $0x28] sm:$0xff]  ;;  %v77_v42 = vld [vmem:[%s7369_s0 + $0x8] sm:$0xff]  ;;  %vm87_vm1 = vcmask 384000  }
  0x4c   :  { %v100_v3 = vld [vmem:[#allocation3 + $0x40] sm:$0xff]  ;;  %v6057_v4 = vcombine.high %v92_v1, %v96_v2  ;;  %v6056_v5 = vcombine.low %v92_v1, %v96_v2  ;;  %v6059_v16 = vcombine.high %v93_v11, %v97_v14  ;;  %v6058_v17 = vcombine.low %v93_v11, %v97_v14  ;;  %v101_v18 = vld [vmem:[#allocation3 + $0x48] sm:$0xff] }
  0x4d   :  { %v104_v6 = vld [vmem:[#allocation3 + $0x60] sm:$0xff]  ;;  %v105_v19 = vld [vmem:[#allocation3 + $0x68] sm:$0xff] }
  0x4e   :  { %v6065_v7 = vcombine.high %v100_v3, %v104_v6  ;;  %v108_v8 = vld [vmem:[#allocation3 + $0x80] sm:$0xff]  ;;  %1244 = vmatprep.subr.bf16.mxu0 %v6057_v4  ;;  %v6064_v10 = vcombine.low %v100_v3, %v104_v6  ;;  %v6067_v20 = vcombine.high %v101_v18, %v105_v19  ;;  %v109_v21 = vld [vmem:[#allocation3 + $0x88] sm:$0xff]  ;;  %1330 = vmatprep.subr.bf16.mxu1 %v6059_v16 }
  0x4f   :  { %v112_v9 = vld [vmem:[#allocation3 + $0xa0] sm:$0xff]  ;;  %1245 = vmatpush1.bf16.msra.mxu0 %v6056_v5  ;;  %v113_v22 = vld [vmem:[#allocation3 + $0xa8] sm:$0xff]  ;;  %1331 = vmatpush1.bf16.msra.mxu1 %v6058_v17  ;;  %v6066_v25 = vcombine.low %v101_v18, %v105_v19 }
  0x50   :  { %1246 = vmatprep.subr.bf16.mxu0 %v6065_v7  ;;  %v6073_v12 = vcombine.high %v108_v8, %v112_v9  ;;  %v116_v13 = vld [vmem:[#allocation3 + $0xc0] sm:$0xff]  ;;  %v6072_v23 = vcombine.low %v108_v8, %v112_v9  ;;  %1332 = vmatprep.subr.bf16.mxu1 %v6067_v20  ;;  %v6075_v28 = vcombine.high %v109_v21, %v113_v22  ;;  %v117_v29 = vld [vmem:[#allocation3 + $0xc8] sm:$0xff]  ;;  %v78_v9 = vld [vmem:[%s7369_s0 + $0x10] sm:$0xff] }
  0x51   :  { %v120_v15 = vld [vmem:[#allocation3 + $0xe0] sm:$0xff]  ;;  %v121_v30 = vld [vmem:[#allocation3 + $0xe8] sm:$0xff]  ;;  %v6074_v33 = vcombine.low %v109_v21, %v113_v22 }
  0x52   :  { %v6081_v24 = vcombine.high %v116_v13, %v120_v15  ;;  %v124_v26 = vld [vmem:[#allocation3 + $0x100] sm:$0xff]  ;;  %v6080_v31 = vcombine.low %v116_v13, %v120_v15  ;;  %v6083_v36 = vcombine.high %v117_v29, %v121_v30  ;;  %v125_v37 = vld [vmem:[#allocation3 + $0x108] sm:$0xff]  ;;  %v6082_v41 = vcombine.low %v117_v29, %v121_v30 }
  0x53   :  { %1247 = vmatpush1.bf16.msra.mxu0 %v6064_v10  ;;  %v128_v27 = vld [vmem:[#allocation3 + $0x120] sm:$0xff]  ;;  %1333 = vmatpush1.bf16.msra.mxu1 %v6066_v25  ;;  %v129_v38 = vld [vmem:[#allocation3 + $0x128] sm:$0xff]  ;;  %v81_v10 = vld [vmem:[%s7369_s0 + $0x28] sm:$0xff] }
  0x54   :  { %1248 = vmatprep.subr.bf16.mxu0 %v6073_v12  ;;  %v6089_v32 = vcombine.high %v124_v26, %v128_v27  ;;  %v132_v34 = vld [vmem:[#allocation3 + $0x140] sm:$0xff]  ;;  %1334 = vmatprep.subr.bf16.mxu1 %v6075_v28  ;;  %v6088_v39 = vcombine.low %v124_v26, %v128_v27  ;;  %v80_v43 = vld [vmem:[%s7369_s0 + $0x20] sm:$0xff]  ;;  %v6091_v46 = vcombine.high %v125_v37, %v129_v38 }
  0x55   :  { %v136_v35 = vld [vmem:[#allocation3 + $0x160] sm:$0xff]  ;;  %v7246_v47 = vpack.c.bf16 %v80_v43, %v77_v42  ;;  %v76_v48 = vld [vmem:[%s7369_s0] sm:$0xff]  ;;  %v6090_v55 = vcombine.low %v125_v37, %v129_v38  ;;  %v84_v14 = vpack.c.bf16 %v81_v10, %v78_v9 }
  0x56   :  { %v6097_v40 = vcombine.high %v132_v34, %v136_v35  ;;  %v140_v44 = vld [vmem:[#allocation3 + $0x180] sm:$0xff]  ;;  %v133_v49 = vld [vmem:[#allocation3 + $0x148] sm:$0xff]  ;;  %v6096_v52 = vcombine.low %v132_v34, %v136_v35 }
  0x57   :  { %1249 = vmatpush1.bf16.msra.mxu0 %v6072_v23  ;;  %1335 = vmatpush1.bf16.msra.mxu1 %v6074_v33  ;;  %v144_v45 = vld [vmem:[#allocation3 + $0x1a0] sm:$0xff]  ;;  %v137_v50 = vld [vmem:[#allocation3 + $0x168] sm:$0xff]  ;;  %88 = vst.msk [vmem:[#allocation2 + $0x10] sm:$0xff] %vm87_vm1, %v84_v14 }
  0x58   :  { %1250 = vmatprep.subr.bf16.mxu0 %v6081_v24  ;;  %1336 = vmatprep.subr.bf16.mxu1 %v6083_v36  ;;  %v79_v51 = vld [vmem:[%s7369_s0 + $0x18] sm:$0xff]  ;;  %v6105_v54 = vcombine.high %v140_v44, %v144_v45  ;;  %v6099_v58 = vcombine.high %v133_v49, %v137_v50  ;;  %v141_v59 = vld [vmem:[#allocation3 + $0x188] sm:$0xff]  ;;  %v6104_v61 = vcombine.low %v140_v44, %v144_v45 }
  0x59   :  { %1276 = vmatprep.mubr.bf16.mxu0 %v7246_v47  ;;  %v7255_v53 = vpack.c.bf16 %v79_v51, %v76_v48  ;;  %v148_v56 = vld [vmem:[#allocation3 + $0x1c0] sm:$0xff]  ;;  %v145_v60 = vld [vmem:[#allocation3 + $0x1a8] sm:$0xff]  ;;  %1362 = vmatprep.mubr.bf16.mxu1 %v7246_v47  ;;  %v6098_v63 = vcombine.low %v133_v49, %v137_v50 }
  0x5a   :  { %v152_v57 = vld [vmem:[#allocation3 + $0x1e0] sm:$0xff]  ;;  %v6107_v3 = vcombine.high %v141_v59, %v145_v60  ;;  %v149_v4 = vld [vmem:[#allocation3 + $0x1c8] sm:$0xff]  ;;  %v6106_v8 = vcombine.low %v141_v59, %v145_v60 }
  0x5b   :  { %1251 = vmatpush1.bf16.msra.mxu0 %v6080_v31  ;;  %1337 = vmatpush1.bf16.msra.mxu1 %v6082_v41  ;;  %85 = vst [vmem:[#allocation2] sm:$0xff] %v7255_v53  ;;  %v6113_v62 = vcombine.high %v148_v56, %v152_v57  ;;  %v156_v1 = vld [vmem:[#allocation3 + $0x200] sm:$0xff]  ;;  %v153_v5 = vld [vmem:[#allocation3 + $0x1e8] sm:$0xff]  ;;  %v6112_v6 = vcombine.low %v148_v56, %v152_v57 }
  0x5c   :  { %1252 = vmatprep.subr.bf16.mxu0 %v6089_v32  ;;  %1338 = vmatprep.subr.bf16.mxu1 %v6091_v46  ;;  %v160_v2 = vld [vmem:[#allocation3 + $0x220] sm:$0xff]  ;;  %v6115_v13 = vcombine.high %v149_v4, %v153_v5  ;;  %v157_v15 = vld [vmem:[#allocation3 + $0x208] sm:$0xff]  ;;  %v6114_v19 = vcombine.low %v149_v4, %v153_v5 }
  0x5d   :  { %v6121_v7 = vcombine.high %v156_v1, %v160_v2  ;;  %v164_v11 = vld [vmem:[#allocation3 + $0x240] sm:$0xff]  ;;  %v161_v16 = vld [vmem:[#allocation3 + $0x228] sm:$0xff]  ;;  %v6120_v17 = vcombine.low %v156_v1, %v160_v2 }
  0x5e   :  { %v168_v12 = vld [vmem:[#allocation3 + $0x260] sm:$0xff]  ;;  %v6123_v22 = vcombine.high %v157_v15, %v161_v16  ;;  %v165_v23 = vld [vmem:[#allocation3 + $0x248] sm:$0xff]  ;;  %v6122_v27 = vcombine.low %v157_v15, %v161_v16 }
  0x5f   :  { %1253 = vmatpush1.bf16.msra.mxu0 %v6088_v39  ;;  %1339 = vmatpush1.bf16.msra.mxu1 %v6090_v55  ;;  %v6129_v18 = vcombine.high %v164_v11, %v168_v12  ;;  %v172_v20 = vld [vmem:[#allocation3 + $0x280] sm:$0xff]  ;;  %v169_v24 = vld [vmem:[#allocation3 + $0x268] sm:$0xff]  ;;  %v6128_v25 = vcombine.low %v164_v11, %v168_v12 }
  0x60   :  { %1254 = vmatprep.subr.bf16.mxu0 %v6097_v40  ;;  %1340 = vmatprep.subr.bf16.mxu1 %v6099_v58  ;;  %v176_v21 = vld [vmem:[#allocation3 + $0x2a0] sm:$0xff]  ;;  %v6131_v30 = vcombine.high %v165_v23, %v169_v24  ;;  %v173_v31 = vld [vmem:[#allocation3 + $0x288] sm:$0xff]  ;;  %v6130_v35 = vcombine.low %v165_v23, %v169_v24 }
  0x61   :  { %v6137_v26 = vcombine.high %v172_v20, %v176_v21  ;;  %v180_v28 = vld [vmem:[#allocation3 + $0x2c0] sm:$0xff]  ;;  %v177_v32 = vld [vmem:[#allocation3 + $0x2a8] sm:$0xff]  ;;  %v6136_v33 = vcombine.low %v172_v20, %v176_v21 }
  0x62   :  { %v184_v29 = vld [vmem:[#allocation3 + $0x2e0] sm:$0xff]  ;;  %v6139_v38 = vcombine.high %v173_v31, %v177_v32  ;;  %v181_v39 = vld [vmem:[#allocation3 + $0x2c8] sm:$0xff]  ;;  %v6138_v43 = vcombine.low %v173_v31, %v177_v32 }
  0x63   :  { %1255 = vmatpush1.bf16.msra.mxu0 %v6096_v52  ;;  %1341 = vmatpush1.bf16.msra.mxu1 %v6098_v63  ;;  %v6145_v34 = vcombine.high %v180_v28, %v184_v29  ;;  %v188_v36 = vld [vmem:[#allocation3 + $0x300] sm:$0xff]  ;;  %v185_v40 = vld [vmem:[#allocation3 + $0x2e8] sm:$0xff]  ;;  %v6144_v41 = vcombine.low %v180_v28, %v184_v29 }
  0x64   :  { %1256 = vmatprep.subr.bf16.mxu0 %v6105_v54  ;;  %1342 = vmatprep.subr.bf16.mxu1 %v6107_v3  ;;  %v192_v37 = vld [vmem:[#allocation3 + $0x320] sm:$0xff]  ;;  %v6147_v46 = vcombine.high %v181_v39, %v185_v40  ;;  %v189_v48 = vld [vmem:[#allocation3 + $0x308] sm:$0xff]  ;;  %v6146_v52 = vcombine.low %v181_v39, %v185_v40 }
  0x65   :  { %v6153_v42 = vcombine.high %v188_v36, %v192_v37  ;;  %v196_v44 = vld [vmem:[#allocation3 + $0x340] sm:$0xff]  ;;  %v193_v49 = vld [vmem:[#allocation3 + $0x328] sm:$0xff]  ;;  %v6152_v50 = vcombine.low %v188_v36, %v192_v37 }
  0x66   :  { %v200_v45 = vld [vmem:[#allocation3 + $0x360] sm:$0xff]  ;;  %v6155_v56 = vcombine.high %v189_v48, %v193_v49  ;;  %v197_v57 = vld [vmem:[#allocation3 + $0x348] sm:$0xff] }
  0x67   :  { %1257 = vmatpush1.bf16.msra.mxu0 %v6104_v61  ;;  %1343 = vmatpush1.bf16.msra.mxu1 %v6106_v8  ;;  %v6161_v51 = vcombine.high %v196_v44, %v200_v45  ;;  %v204_v54 = vld [vmem:[#allocation3 + $0x380] sm:$0xff]  ;;  %v201_v58 = vld [vmem:[#allocation3 + $0x368] sm:$0xff]  ;;  %v6160_v59 = vcombine.low %v196_v44, %v200_v45  ;;  %v6154_v61 = vcombine.low %v189_v48, %v193_v49 }
  0x68   :  { %1258 = vmatprep.subr.bf16.mxu0 %v6113_v62  ;;  %1344 = vmatprep.subr.bf16.mxu1 %v6115_v13  ;;  %v208_v55 = vld [vmem:[#allocation3 + $0x3a0] sm:$0xff]  ;;  %v6163_v1 = vcombine.high %v197_v57, %v201_v58  ;;  %v205_v2 = vld [vmem:[#allocation3 + $0x388] sm:$0xff] }
  0x69   :  { %v6169_v60 = vcombine.high %v204_v54, %v208_v55  ;;  %v212_v62 = vld [vmem:[#allocation3 + $0x3c0] sm:$0xff]  ;;  %v209_v3 = vld [vmem:[#allocation3 + $0x3a8] sm:$0xff]  ;;  %v6168_v4 = vcombine.low %v204_v54, %v208_v55 }
  0x6a   :  { %v216_v63 = vld [vmem:[#allocation3 + $0x3e0] sm:$0xff]  ;;  %v6171_v9 = vcombine.high %v205_v2, %v209_v3  ;;  %v213_v10 = vld [vmem:[#allocation3 + $0x3c8] sm:$0xff]  ;;  %v6170_v16 = vcombine.low %v205_v2, %v209_v3 }
  0x6b   :  { %1259 = vmatpush1.bf16.msra.mxu0 %v6112_v6  ;;  %1345 = vmatpush1.bf16.msra.mxu1 %v6114_v19  ;;  %v6177_v5 = vcombine.high %v212_v62, %v216_v63  ;;  %v6162_v6 = vcombine.low %v197_v57, %v201_v58  ;;  %v224_v8 = vld [vmem:[#allocation3 + $0x420] sm:$0xff]  ;;  %v217_v11 = vld [vmem:[#allocation3 + $0x3e8] sm:$0xff]  ;;  %v6176_v12 = vcombine.low %v212_v62, %v216_v63 }
  0x6c   :  { %1260 = vmatprep.subr.bf16.mxu0 %v6121_v7  ;;  %1346 = vmatprep.subr.bf16.mxu1 %v6123_v22  ;;  %v220_v7 = vld [vmem:[#allocation3 + $0x400] sm:$0xff]  ;;  %v225_v19 = vld [vmem:[#allocation3 + $0x428] sm:$0xff]  ;;  %v6178_v24 = vcombine.low %v213_v10, %v217_v11 }
  0x6d   :  { %v6185_v13 = vcombine.high %v220_v7, %v224_v8  ;;  %v228_v14 = vld [vmem:[#allocation3 + $0x440] sm:$0xff]  ;;  %v6184_v20 = vcombine.low %v220_v7, %v224_v8  ;;  %v253_v49 = vld [vmem:[#allocation3 + $0x508] sm:$0xff]  ;;  %v94_v8 = vld [vmem:[#allocation3 + $0x10] sm:$0xff] }
  0x6e   :  { %v232_v15 = vld [vmem:[#allocation3 + $0x460] sm:$0xff]  ;;  %v261_v58 = vld [vmem:[#allocation3 + $0x548] sm:$0xff] }
  0x6f   :  { %1261 = vmatpush1.bf16.msra.mxu0 %v6120_v17  ;;  %1347 = vmatpush1.bf16.msra.mxu1 %v6122_v27  ;;  %v221_v17 = vld [vmem:[#allocation3 + $0x408] sm:$0xff]  ;;  %v6193_v21 = vcombine.high %v228_v14, %v232_v15  ;;  %v236_v22 = vld [vmem:[#allocation3 + $0x480] sm:$0xff]  ;;  %v6192_v28 = vcombine.low %v228_v14, %v232_v15 }
  0x70   :  { %1262 = vmatprep.subr.bf16.mxu0 %v6129_v18  ;;  %1348 = vmatprep.subr.bf16.mxu1 %v6131_v30  ;;  %v6179_v18 = vcombine.high %v213_v10, %v217_v11  ;;  %v240_v23 = vld [vmem:[#allocation3 + $0x4a0] sm:$0xff]  ;;  %v233_v27 = vld [vmem:[#allocation3 + $0x468] sm:$0xff]  ;;  %v6186_v32 = vcombine.low %v221_v17, %v225_v19 }
  0x71   :  { %v6201_v29 = vcombine.high %v236_v22, %v240_v23  ;;  %v244_v30 = vld [vmem:[#allocation3 + $0x4c0] sm:$0xff]  ;;  %v6200_v36 = vcombine.low %v236_v22, %v240_v23  ;;  %v269_v3 = vld [vmem:[#allocation3 + $0x588] sm:$0xff]  ;;  %v99_v22 = vld [vmem:[#allocation3 + $0x38] sm:$0xff] }
  0x72   :  { %v248_v31 = vld [vmem:[#allocation3 + $0x4e0] sm:$0xff]  ;;  %v277_v11 = vld [vmem:[#allocation3 + $0x5c8] sm:$0xff] }
  0x73   :  { %1263 = vmatpush1.bf16.msra.mxu0 %v6128_v25  ;;  %1349 = vmatpush1.bf16.msra.mxu1 %v6130_v35  ;;  %v6187_v25 = vcombine.high %v221_v17, %v225_v19  ;;  %v241_v35 = vld [vmem:[#allocation3 + $0x4a8] sm:$0xff]  ;;  %v6209_v37 = vcombine.high %v244_v30, %v248_v31  ;;  %v256_v39 = vld [vmem:[#allocation3 + $0x520] sm:$0xff]  ;;  %v6208_v44 = vcombine.low %v244_v30, %v248_v31  ;;  %v106_v17 = vld [vmem:[#allocation3 + $0x70] sm:$0xff] }
  0x74   :  { %1264 = vmatprep.subr.bf16.mxu0 %v6137_v26  ;;  %1350 = vmatprep.subr.bf16.mxu1 %v6139_v38  ;;  %v229_v26 = vld [vmem:[#allocation3 + $0x448] sm:$0xff]  ;;  %v252_v38 = vld [vmem:[#allocation3 + $0x500] sm:$0xff]  ;;  %v95_v19 = vld [vmem:[#allocation3 + $0x18] sm:$0xff] }
  0x75   :  { %v6194_v40 = vcombine.low %v229_v26, %v233_v27  ;;  %v6217_v45 = vcombine.high %v252_v38, %v256_v39  ;;  %v264_v48 = vld [vmem:[#allocation3 + $0x560] sm:$0xff]  ;;  %v107_v30 = vld [vmem:[#allocation3 + $0x78] sm:$0xff] }
  0x76   :  { %v268_v55 = vld [vmem:[#allocation3 + $0x580] sm:$0xff] }
  0x77   :  { %1265 = vmatpush1.bf16.msra.mxu0 %v6136_v33  ;;  %1351 = vmatpush1.bf16.msra.mxu1 %v6138_v43  ;;  %v237_v33 = vld [vmem:[#allocation3 + $0x488] sm:$0xff]  ;;  %v276_v63 = vld [vmem:[#allocation3 + $0x5c0] sm:$0xff] }
  0x78   :  { %1266 = vmatprep.subr.bf16.mxu0 %v6145_v34  ;;  %1352 = vmatprep.subr.bf16.mxu1 %v6147_v46  ;;  %v6195_v34 = vcombine.high %v229_v26, %v233_v27  ;;  %v249_v43 = vld [vmem:[#allocation3 + $0x4e8] sm:$0xff]  ;;  %v260_v46 = vld [vmem:[#allocation3 + $0x540] sm:$0xff]  ;;  %v114_v26 = vld [vmem:[#allocation3 + $0xb0] sm:$0xff] }
  0x79   :  { %v6225_v54 = vcombine.high %v260_v46, %v264_v48 }
  0x7b   :  { %1267 = vmatpush1.bf16.msra.mxu0 %v6144_v41  ;;  %1353 = vmatpush1.bf16.msra.mxu1 %v6146_v52  ;;  %v6203_v41 = vcombine.high %v237_v33, %v241_v35  ;;  %v6216_v52 = vcombine.low %v252_v38, %v256_v39  ;;  %v115_v38 = vld [vmem:[#allocation3 + $0xb8] sm:$0xff] }
  0x7c   :  { %1268 = vmatprep.subr.bf16.mxu0 %v6153_v42  ;;  %1354 = vmatprep.subr.bf16.mxu1 %v6155_v56  ;;  %v245_v42 = vld [vmem:[#allocation3 + $0x4c8] sm:$0xff]  ;;  %v272_v56 = vld [vmem:[#allocation3 + $0x5a0] sm:$0xff] }
  0x7d   :  { %v6210_v57 = vcombine.low %v245_v42, %v249_v43  ;;  %v6233_v62 = vcombine.high %v268_v55, %v272_v56 }
  0x7f   :  { %1269 = vmatpush1.bf16.msra.mxu0 %v6152_v50  ;;  %1355 = vmatpush1.bf16.msra.mxu1 %v6154_v61  ;;  %v6211_v50 = vcombine.high %v245_v42, %v249_v43  ;;  %v6224_v61 = vcombine.low %v260_v46, %v264_v48  ;;  %v130_v42 = vld [vmem:[#allocation3 + $0x130] sm:$0xff]  ;;  %v123_v46 = vld [vmem:[#allocation3 + $0xf8] sm:$0xff] }
  0x80   :  { %1270 = vmatprep.subr.bf16.mxu0 %v6161_v51  ;;  %1356 = vmatprep.subr.bf16.mxu1 %v6163_v1  ;;  %v257_v51 = vld [vmem:[#allocation3 + $0x528] sm:$0xff]  ;;  %v280_v1 = vld [vmem:[#allocation3 + $0x5e0] sm:$0xff] }
  0x81   :  { %v6218_v2 = vcombine.low %v253_v49, %v257_v51  ;;  %v6241_v7 = vcombine.high %v276_v63, %v280_v1  ;;  %v6240_v14 = vcombine.low %v276_v63, %v280_v1 }
  0x83   :  { %1271 = vmatpush1.bf16.msra.mxu0 %v6160_v59  ;;  %1357 = vmatpush1.bf16.msra.mxu1 %v6162_v6  ;;  %v6219_v59 = vcombine.high %v253_v49, %v257_v51  ;;  %v6232_v6 = vcombine.low %v268_v55, %v272_v56  ;;  %v134_v49 = vld [vmem:[#allocation3 + $0x150] sm:$0xff]  ;;  %v131_v55 = vld [vmem:[#allocation3 + $0x138] sm:$0xff] }
  0x84   :  { %1272 = vmatprep.subr.bf16.mxu0 %v6169_v60  ;;  %1358 = vmatprep.subr.bf16.mxu1 %v6171_v9  ;;  %v265_v60 = vld [vmem:[#allocation3 + $0x568] sm:$0xff]  ;;  %v98_v9 = vld [vmem:[#allocation3 + $0x30] sm:$0xff] }
  0x85   :  { %v6226_v10 = vcombine.low %v261_v58, %v265_v60  ;;  %v6061_v15 = vcombine.high %v94_v8, %v98_v9  ;;  %v6060_v23 = vcombine.low %v94_v8, %v98_v9 }
  0x87   :  { %1273 = vmatpush1.bf16.msra.mxu0 %v6168_v4  ;;  %1359 = vmatpush1.bf16.msra.mxu1 %v6170_v16  ;;  %v6227_v4 = vcombine.high %v261_v58, %v265_v60  ;;  %v102_v16 = vld [vmem:[#allocation3 + $0x50] sm:$0xff]  ;;  %v135_v60 = vld [vmem:[#allocation3 + $0x158] sm:$0xff] }
  0x88   :  { %1274 = vmatprep.subr.bf16.mxu0 %v6177_v5  ;;  %1360 = vmatprep.subr.bf16.mxu1 %v6179_v18  ;;  %v273_v5 = vld [vmem:[#allocation3 + $0x5a8] sm:$0xff]  ;;  %v6068_v31 = vcombine.low %v102_v16, %v106_v17  ;;  %v142_v58 = vld [vmem:[#allocation3 + $0x190] sm:$0xff] }
  0x89   :  { %v6234_v18 = vcombine.low %v269_v3, %v273_v5 }
  0x8b   :  { %1275 = vmatpush1.bf16.msra.mxu0 %v6176_v12  ;;  %1361 = vmatpush1.bf16.msra.mxu1 %v6178_v24  ;;  %v6235_v12 = vcombine.high %v269_v3, %v273_v5  ;;  %v6069_v24 = vcombine.high %v102_v16, %v106_v17  ;;  %v154_v3 = vld [vmem:[#allocation3 + $0x1f0] sm:$0xff]  ;;  %v143_v5 = vld [vmem:[#allocation3 + $0x198] sm:$0xff] }
  0x8c   :  { %1287 = vmatprep.subr.bf16.mxu0 %v6185_v13  ;;  %1373 = vmatprep.subr.bf16.mxu1 %v6187_v25  ;;  %v281_v13 = vld [vmem:[#allocation3 + $0x5e8] sm:$0xff]  ;;  %v110_v25 = vld [vmem:[#allocation3 + $0x90] sm:$0xff] }
  0x8d   :  { %v6242_v27 = vcombine.low %v277_v11, %v281_v13  ;;  %v6076_v39 = vcombine.low %v110_v25, %v114_v26 }
  0x8e   :  { %1277 = vmatmul.mubr.bf16.vlgmr.msra.gmra.mrb[0].mxu0 %v7255_v53  ;;  %1363 = vmatmul.mubr.bf16.vlgmr.msra.gmra.mrb[0].mxu1 %v7255_v53  ;;  %v6202_v53 = vcombine.low %v237_v33, %v241_v35  ;;  %v118_v33 = vld [vmem:[#allocation3 + $0xd0] sm:$0xff]  ;;  %v6062_v35 = vcombine.low %v95_v19, %v99_v22 }
  0x8f   :  { %1288 = vmatpush1.bf16.msra.mxu0 %v6184_v20  ;;  %1319 = vmatprep.mubr.bf16.mxu0 %v7153_v0  ;;  %v7269_v20 = vld [vmem:[#allocation2 + $0x10] sm:$0xff] }
  0x90   :  { %1289 = vmatprep.subr.bf16.mxu0 %v6193_v21  ;;  %1374 = vmatpush1.bf16.msra.mxu1 %v6186_v32  ;;  %v6243_v21 = vcombine.high %v277_v11, %v281_v13  ;;  %v6077_v32 = vcombine.high %v110_v25, %v114_v26  ;;  %v162_v11 = vld [vmem:[#allocation3 + $0x230] sm:$0xff]  ;;  %v151_v13 = vld [vmem:[#allocation3 + $0x1d8] sm:$0xff] }
  0x91   :  { %1375 = vmatprep.subr.bf16.mxu1 %v6195_v34  ;;  %1405 = vmatprep.mubr.bf16.mxu1 %v7153_v0  ;;  %v122_v34 = vld [vmem:[#allocation3 + $0xf0] sm:$0xff] }
  0x92   :  { %v6084_v48 = vcombine.low %v118_v33, %v122_v34 }
  0x93   :  { %1290 = vmatpush1.bf16.msra.mxu0 %v6192_v28  ;;  %v103_v28 = vld [vmem:[#allocation3 + $0x58] sm:$0xff] }
  0x94   :  { %1291 = vmatprep.subr.bf16.mxu0 %v6201_v29  ;;  %1376 = vmatpush1.bf16.msra.mxu1 %v6194_v40  ;;  %v6063_v29 = vcombine.high %v95_v19, %v99_v22  ;;  %v6085_v40 = vcombine.high %v118_v33, %v122_v34  ;;  %v6070_v43 = vcombine.low %v103_v28, %v107_v30  ;;  %v170_v19 = vld [vmem:[#allocation3 + $0x270] sm:$0xff]  ;;  %v159_v22 = vld [vmem:[#allocation3 + $0x218] sm:$0xff] }
  0x95   :  { %1377 = vmatprep.subr.bf16.mxu1 %v6203_v41  ;;  %v126_v41 = vld [vmem:[#allocation3 + $0x110] sm:$0xff] }
  0x96   :  { %v6092_v56 = vcombine.low %v126_v41, %v130_v42 }
  0x97   :  { %1292 = vmatpush1.bf16.msra.mxu0 %v6200_v36  ;;  %v111_v36 = vld [vmem:[#allocation3 + $0x98] sm:$0xff] }
  0x98   :  { %1293 = vmatprep.subr.bf16.mxu0 %v6209_v37  ;;  %1378 = vmatpush1.bf16.msra.mxu1 %v6202_v53  ;;  %v6071_v37 = vcombine.high %v103_v28, %v107_v30  ;;  %v6093_v53 = vcombine.high %v126_v41, %v130_v42  ;;  %v6078_v51 = vcombine.low %v111_v36, %v115_v38  ;;  %v174_v28 = vld [vmem:[#allocation3 + $0x290] sm:$0xff] }
  0x99   :  { %1379 = vmatprep.subr.bf16.mxu1 %v6211_v50  ;;  %v138_v50 = vld [vmem:[#allocation3 + $0x170] sm:$0xff] }
  0x9a   :  { %v6100_v63 = vcombine.low %v134_v49, %v138_v50 }
  0x9b   :  { %1294 = vmatpush1.bf16.msra.mxu0 %v6208_v44  ;;  %v119_v44 = vld [vmem:[#allocation3 + $0xd8] sm:$0xff] }
  0x9c   :  { %1295 = vmatprep.subr.bf16.mxu0 %v6217_v45  ;;  %1380 = vmatpush1.bf16.msra.mxu1 %v6210_v57  ;;  %v6079_v45 = vcombine.high %v111_v36, %v115_v38  ;;  %v6101_v57 = vcombine.high %v134_v49, %v138_v50  ;;  %v182_v36 = vld [vmem:[#allocation3 + $0x2d0] sm:$0xff] }
  0x9d   :  { %1381 = vmatprep.subr.bf16.mxu1 %v6219_v59  ;;  %v146_v59 = vld [vmem:[#allocation3 + $0x1b0] sm:$0xff] }
  0x9e   :  { %v6109_v1 = vcombine.high %v142_v58, %v146_v59  ;;  %v6108_v8 = vcombine.low %v142_v58, %v146_v59 }
  0x9f   :  { %1296 = vmatpush1.bf16.msra.mxu0 %v6216_v52  ;;  %v127_v52 = vld [vmem:[#allocation3 + $0x118] sm:$0xff] }
  0xa0   :  { %1297 = vmatprep.subr.bf16.mxu0 %v6225_v54  ;;  %1382 = vmatpush1.bf16.msra.mxu1 %v6218_v2  ;;  %v6087_v54 = vcombine.high %v119_v44, %v123_v46  ;;  %v150_v2 = vld [vmem:[#allocation3 + $0x1d0] sm:$0xff] }
  0xa1   :  { %1383 = vmatprep.subr.bf16.mxu1 %v6227_v4  ;;  %v6094_v4 = vcombine.low %v127_v52, %v131_v55  ;;  %v6117_v9 = vcombine.high %v150_v2, %v154_v3  ;;  %v6116_v16 = vcombine.low %v150_v2, %v154_v3 }
  0xa3   :  { %1298 = vmatpush1.bf16.msra.mxu0 %v6224_v61  ;;  %v6095_v61 = vcombine.high %v127_v52, %v131_v55  ;;  %v198_v52 = vld [vmem:[#allocation3 + $0x350] sm:$0xff] }
  0xa4   :  { %1299 = vmatprep.subr.bf16.mxu0 %v6233_v62  ;;  %1384 = vmatpush1.bf16.msra.mxu1 %v6226_v10  ;;  %v139_v62 = vld [vmem:[#allocation3 + $0x178] sm:$0xff]  ;;  %v158_v10 = vld [vmem:[#allocation3 + $0x210] sm:$0xff] }
  0xa5   :  { %1385 = vmatprep.subr.bf16.mxu1 %v6235_v12  ;;  %v6102_v12 = vcombine.low %v135_v60, %v139_v62  ;;  %v6125_v17 = vcombine.high %v158_v10, %v162_v11  ;;  %v6124_v25 = vcombine.low %v158_v10, %v162_v11 }
  0xa7   :  { %1300 = vmatpush1.bf16.msra.mxu0 %v6232_v6  ;;  %v6103_v6 = vcombine.high %v135_v60, %v139_v62  ;;  %v206_v60 = vld [vmem:[#allocation3 + $0x390] sm:$0xff] }
  0xa8   :  { %1301 = vmatprep.subr.bf16.mxu0 %v6241_v7  ;;  %1386 = vmatpush1.bf16.msra.mxu1 %v6234_v18  ;;  %v147_v7 = vld [vmem:[#allocation3 + $0x1b8] sm:$0xff]  ;;  %v166_v18 = vld [vmem:[#allocation3 + $0x250] sm:$0xff] }
  0xa9   :  { %1387 = vmatprep.subr.bf16.mxu1 %v6243_v21  ;;  %v6110_v21 = vcombine.low %v143_v5, %v147_v7  ;;  %v6133_v26 = vcombine.high %v166_v18, %v170_v19  ;;  %v6132_v33 = vcombine.low %v166_v18, %v170_v19 }
  0xab   :  { %1302 = vmatpush1.bf16.msra.mxu0 %v6240_v14  ;;  %v6111_v14 = vcombine.high %v143_v5, %v147_v7  ;;  %v214_v5 = vld [vmem:[#allocation3 + $0x3d0] sm:$0xff] }
  0xac   :  { %1416 = vmatprep.subr.bf16.mxu0 %v6061_v15  ;;  %1388 = vmatpush1.bf16.msra.mxu1 %v6242_v27  ;;  %v155_v15 = vld [vmem:[#allocation3 + $0x1f8] sm:$0xff] }
  0xad   :  { %1502 = vmatprep.subr.bf16.mxu1 %v6063_v29  ;;  %v6118_v27 = vcombine.low %v151_v13, %v155_v15  ;;  %v178_v29 = vld [vmem:[#allocation3 + $0x2b0] sm:$0xff] }
  0xae   :  { %1320 = vmatmul.mubr.bf16.vlgmr.msra.gmra.mrb[0].mxu0 %v7269_v20  ;;  %v6141_v34 = vcombine.high %v174_v28, %v178_v29  ;;  %v6140_v41 = vcombine.low %v174_v28, %v178_v29 }
  0xaf   :  { %1417 = vmatpush1.bf16.msra.mxu0 %v6060_v23  ;;  %1448 = vmatprep.mubr.bf16.mxu0 %v7246_v47  ;;  %v6119_v23 = vcombine.high %v151_v13, %v155_v15  ;;  %v222_v13 = vld [vmem:[#allocation3 + $0x410] sm:$0xff] }
  0xb0   :  { %1418 = vmatprep.subr.bf16.mxu0 %v6069_v24  ;;  %1406 = vmatmul.mubr.bf16.vlgmr.msra.gmra.mrb[0].mxu1 %v7269_v20  ;;  %v163_v24 = vld [vmem:[#allocation3 + $0x238] sm:$0xff] }
  0xb1   :  { %1503 = vmatpush1.bf16.msra.mxu1 %v6062_v35  ;;  %1534 = vmatprep.mubr.bf16.mxu1 %v7246_v47  ;;  %v6086_v47 = vcombine.low %v119_v44, %v123_v46  ;;  %v6127_v30 = vcombine.high %v159_v22, %v163_v24  ;;  %v6126_v35 = vcombine.low %v159_v22, %v163_v24  ;;  %v190_v44 = vld [vmem:[#allocation3 + $0x310] sm:$0xff] }
  0xb2   :  { %1504 = vmatprep.subr.bf16.mxu1 %v6071_v37  ;;  %v186_v37 = vld [vmem:[#allocation3 + $0x2f0] sm:$0xff] }
  0xb3   :  { %1419 = vmatpush1.bf16.msra.mxu0 %v6068_v31  ;;  %v167_v31 = vld [vmem:[#allocation3 + $0x258] sm:$0xff]  ;;  %v6149_v42 = vcombine.high %v182_v36, %v186_v37  ;;  %v6148_v49 = vcombine.low %v182_v36, %v186_v37  ;;  %v230_v22 = vld [vmem:[#allocation3 + $0x450] sm:$0xff] }
  0xb4   :  { %1420 = vmatprep.subr.bf16.mxu0 %v6077_v32  ;;  %v171_v32 = vld [vmem:[#allocation3 + $0x278] sm:$0xff] }
  0xb5   :  { %1505 = vmatpush1.bf16.msra.mxu1 %v6070_v43  ;;  %v6135_v38 = vcombine.high %v167_v31, %v171_v32  ;;  %v6134_v43 = vcombine.low %v167_v31, %v171_v32  ;;  %v242_v31 = vld [vmem:[#allocation3 + $0x4b0] sm:$0xff] }
  0xb6   :  { %1506 = vmatprep.subr.bf16.mxu1 %v6079_v45  ;;  %v194_v45 = vld [vmem:[#allocation3 + $0x330] sm:$0xff] }
  0xb7   :  { %1421 = vmatpush1.bf16.msra.mxu0 %v6076_v39  ;;  %v175_v39 = vld [vmem:[#allocation3 + $0x298] sm:$0xff]  ;;  %v6157_v50 = vcombine.high %v190_v44, %v194_v45  ;;  %v6156_v58 = vcombine.low %v190_v44, %v194_v45 }
  0xb8   :  { %1422 = vmatprep.subr.bf16.mxu0 %v6085_v40  ;;  %v179_v40 = vld [vmem:[#allocation3 + $0x2b8] sm:$0xff] }
  0xb9   :  { %1507 = vmatpush1.bf16.msra.mxu1 %v6078_v51  ;;  %v6143_v46 = vcombine.high %v175_v39, %v179_v40  ;;  %v6142_v51 = vcombine.low %v175_v39, %v179_v40  ;;  %v246_v39 = vld [vmem:[#allocation3 + $0x4d0] sm:$0xff] }
  0xba   :  { %1508 = vmatprep.subr.bf16.mxu1 %v6087_v54  ;;  %v202_v54 = vld [vmem:[#allocation3 + $0x370] sm:$0xff] }
  0xbb   :  { %1423 = vmatpush1.bf16.msra.mxu0 %v6084_v48  ;;  %v183_v48 = vld [vmem:[#allocation3 + $0x2d8] sm:$0xff]  ;;  %v6165_v59 = vcombine.high %v198_v52, %v202_v54  ;;  %v6164_v2 = vcombine.low %v198_v52, %v202_v54  ;;  %v250_v40 = vld [vmem:[#allocation3 + $0x4f0] sm:$0xff] }
  0xbc   :  { %1424 = vmatprep.subr.bf16.mxu0 %v6093_v53  ;;  %v187_v53 = vld [vmem:[#allocation3 + $0x2f8] sm:$0xff]  ;;  %v6213_v45 = vcombine.high %v246_v39, %v250_v40  ;;  %v6212_v52 = vcombine.low %v246_v39, %v250_v40 }
  0xbd   :  { %1509 = vmatpush1.bf16.msra.mxu1 %v6086_v47  ;;  %v6151_v55 = vcombine.high %v183_v48, %v187_v53  ;;  %v6150_v47 = vcombine.low %v183_v48, %v187_v53  ;;  %v254_v48 = vld [vmem:[#allocation3 + $0x510] sm:$0xff] }
  0xbe   :  { %1510 = vmatprep.subr.bf16.mxu1 %v6095_v61  ;;  %v210_v61 = vld [vmem:[#allocation3 + $0x3b0] sm:$0xff] }
  0xbf   :  { %1425 = vmatpush1.bf16.msra.mxu0 %v6092_v56  ;;  %v191_v56 = vld [vmem:[#allocation3 + $0x318] sm:$0xff]  ;;  %v6173_v3 = vcombine.high %v206_v60, %v210_v61  ;;  %v6172_v10 = vcombine.low %v206_v60, %v210_v61  ;;  %v258_v53 = vld [vmem:[#allocation3 + $0x530] sm:$0xff] }
  0xc0   :  { %1426 = vmatprep.subr.bf16.mxu0 %v6101_v57  ;;  %v195_v57 = vld [vmem:[#allocation3 + $0x338] sm:$0xff]  ;;  %v6221_v54 = vcombine.high %v254_v48, %v258_v53  ;;  %v6220_v60 = vcombine.low %v254_v48, %v258_v53 }
  0xc1   :  { %1511 = vmatpush1.bf16.msra.mxu1 %v6094_v4  ;;  %v6159_v62 = vcombine.high %v191_v56, %v195_v57  ;;  %v6158_v4 = vcombine.low %v191_v56, %v195_v57  ;;  %v262_v56 = vld [vmem:[#allocation3 + $0x550] sm:$0xff] }
  0xc2   :  { %1512 = vmatprep.subr.bf16.mxu1 %v6103_v6  ;;  %v218_v6 = vld [vmem:[#allocation3 + $0x3f0] sm:$0xff] }
  0xc3   :  { %1427 = vmatpush1.bf16.msra.mxu0 %v6100_v63  ;;  %v199_v63 = vld [vmem:[#allocation3 + $0x358] sm:$0xff]  ;;  %v6181_v11 = vcombine.high %v214_v5, %v218_v6  ;;  %v6180_v18 = vcombine.low %v214_v5, %v218_v6  ;;  %v266_v57 = vld [vmem:[#allocation3 + $0x570] sm:$0xff] }
  0xc4   :  { %1428 = vmatprep.subr.bf16.mxu0 %v6109_v1  ;;  %v203_v1 = vld [vmem:[#allocation3 + $0x378] sm:$0xff]  ;;  %v6229_v61 = vcombine.high %v262_v56, %v266_v57 }
  0xc5   :  { %1513 = vmatpush1.bf16.msra.mxu1 %v6102_v12  ;;  %v6167_v7 = vcombine.high %v199_v63, %v203_v1  ;;  %v6166_v12 = vcombine.low %v199_v63, %v203_v1  ;;  %v274_v63 = vld [vmem:[#allocation3 + $0x5b0] sm:$0xff] }
  0xc6   :  { %1514 = vmatprep.subr.bf16.mxu1 %v6111_v14  ;;  %v226_v14 = vld [vmem:[#allocation3 + $0x430] sm:$0xff] }
  0xc7   :  { %1429 = vmatpush1.bf16.msra.mxu0 %v6108_v8  ;;  %v207_v8 = vld [vmem:[#allocation3 + $0x398] sm:$0xff]  ;;  %v6189_v19 = vcombine.high %v222_v13, %v226_v14 }
  0xc8   :  { %1430 = vmatprep.subr.bf16.mxu0 %v6117_v9  ;;  %v211_v9 = vld [vmem:[#allocation3 + $0x3b8] sm:$0xff] }
  0xc9   :  { %1515 = vmatpush1.bf16.msra.mxu1 %v6110_v21  ;;  %v6175_v15 = vcombine.high %v207_v8, %v211_v9  ;;  %v6174_v21 = vcombine.low %v207_v8, %v211_v9  ;;  %v282_v8 = vld [vmem:[#allocation3 + $0x5f0] sm:$0xff] }
  0xca   :  { %1516 = vmatprep.subr.bf16.mxu1 %v6119_v23  ;;  %v234_v23 = vld [vmem:[#allocation3 + $0x470] sm:$0xff] }
  0xcb   :  { %1431 = vmatpush1.bf16.msra.mxu0 %v6116_v16  ;;  %v215_v16 = vld [vmem:[#allocation3 + $0x3d8] sm:$0xff]  ;;  %v6197_v28 = vcombine.high %v230_v22, %v234_v23  ;;  %v6196_v36 = vcombine.low %v230_v22, %v234_v23 }
  0xcc   :  { %1432 = vmatprep.subr.bf16.mxu0 %v6125_v17  ;;  %v219_v17 = vld [vmem:[#allocation3 + $0x3f8] sm:$0xff] }
  0xcd   :  { %1517 = vmatpush1.bf16.msra.mxu1 %v6118_v27  ;;  %v6183_v24 = vcombine.high %v215_v16, %v219_v17  ;;  %v6188_v27 = vcombine.low %v222_v13, %v226_v14  ;;  %v6182_v29 = vcombine.low %v215_v16, %v219_v17  ;;  %v1596_v16 = vld [vmem:[#allocation5] sm:$0xff] }
  0xce   :  { %1518 = vmatprep.subr.bf16.mxu1 %v6127_v30  ;;  %v238_v30 = vld [vmem:[#allocation3 + $0x490] sm:$0xff]  ;;  %v1600_v17 = vld [vmem:[#allocation5 + $0x20] sm:$0xff] }
  0xcf   :  { %1433 = vmatpush1.bf16.msra.mxu0 %v6124_v25  ;;  %v223_v25 = vld [vmem:[#allocation3 + $0x418] sm:$0xff]  ;;  %v6205_v37 = vcombine.high %v238_v30, %v242_v31  ;;  %v6204_v44 = vcombine.low %v238_v30, %v242_v31  ;;  %v6249_v23 = vcombine.high %v1596_v16, %v1600_v17 }
  0xd0   :  { %1434 = vmatprep.subr.bf16.mxu0 %v6133_v26  ;;  %v227_v26 = vld [vmem:[#allocation3 + $0x438] sm:$0xff] }
  0xd1   :  { %1519 = vmatpush1.bf16.msra.mxu1 %v6126_v35  ;;  %v6191_v32 = vcombine.high %v223_v25, %v227_v26  ;;  %v235_v35 = vld [vmem:[#allocation3 + $0x478] sm:$0xff] }
  0xd2   :  { %1520 = vmatprep.subr.bf16.mxu1 %v6135_v38  ;;  %v6190_v38 = vcombine.low %v223_v25, %v227_v26  ;;  %v1604_v25 = vld [vmem:[#allocation5 + $0x40] sm:$0xff] }
  0xd3   :  { %1435 = vmatpush1.bf16.msra.mxu0 %v6132_v33  ;;  %v7050_v33 = vld [vmem:[#allocation2] sm:$0xff]  ;;  %v1608_v26 = vld [vmem:[#allocation5 + $0x60] sm:$0xff] }
  0xd4   :  { %1436 = vmatprep.subr.bf16.mxu0 %v6141_v34  ;;  %v231_v34 = vld [vmem:[#allocation3 + $0x458] sm:$0xff]  ;;  %v6257_v31 = vcombine.high %v1604_v25, %v1608_v26 }
  0xd5   :  { %1521 = vmatpush1.bf16.msra.mxu1 %v6134_v43  ;;  %v243_v43 = vld [vmem:[#allocation3 + $0x4b8] sm:$0xff] }
  0xd6   :  { %1522 = vmatprep.subr.bf16.mxu1 %v6143_v46  ;;  %v6198_v46 = vcombine.low %v231_v34, %v235_v35 }
  0xd7   :  { %1437 = vmatpush1.bf16.msra.mxu0 %v6140_v41  ;;  %v6199_v41 = vcombine.high %v231_v34, %v235_v35  ;;  %v1616_v34 = vld [vmem:[#allocation5 + $0xa0] sm:$0xff]  ;;  %v1605_v35 = vld [vmem:[#allocation5 + $0x48] sm:$0xff] }
  0xd8   :  { %1438 = vmatprep.subr.bf16.mxu0 %v6149_v42  ;;  %v239_v42 = vld [vmem:[#allocation3 + $0x498] sm:$0xff] }
  0xd9   :  { %1523 = vmatpush1.bf16.msra.mxu1 %v6142_v51  ;;  %v251_v51 = vld [vmem:[#allocation3 + $0x4f8] sm:$0xff] }
  0xda   :  { %1524 = vmatprep.subr.bf16.mxu1 %v6151_v55  ;;  %v6206_v55 = vcombine.low %v239_v42, %v243_v43 }
  0xdb   :  { %1439 = vmatpush1.bf16.msra.mxu0 %v6148_v49  ;;  %v6207_v49 = vcombine.high %v239_v42, %v243_v43  ;;  %v1624_v42 = vld [vmem:[#allocation5 + $0xe0] sm:$0xff]  ;;  %v1613_v43 = vld [vmem:[#allocation5 + $0x88] sm:$0xff] }
  0xdc   :  { %1440 = vmatprep.subr.bf16.mxu0 %v6157_v50  ;;  %v247_v50 = vld [vmem:[#allocation3 + $0x4d8] sm:$0xff] }
  0xdd   :  { %1525 = vmatpush1.bf16.msra.mxu1 %v6150_v47  ;;  %v259_v47 = vld [vmem:[#allocation3 + $0x538] sm:$0xff] }
  0xde   :  { %1526 = vmatprep.subr.bf16.mxu1 %v6159_v62  ;;  %v270_v62 = vld [vmem:[#allocation3 + $0x590] sm:$0xff] }
  0xdf   :  { %1441 = vmatpush1.bf16.msra.mxu0 %v6156_v58  ;;  %v6215_v58 = vcombine.high %v247_v50, %v251_v51  ;;  %v6237_v5 = vcombine.high %v270_v62, %v274_v63 }
  0xe0   :  { %1442 = vmatprep.subr.bf16.mxu0 %v6165_v59  ;;  %v255_v59 = vld [vmem:[#allocation3 + $0x518] sm:$0xff] }
  0xe1   :  { %1527 = vmatpush1.bf16.msra.mxu1 %v6158_v4  ;;  %v6223_v1 = vcombine.high %v255_v59, %v259_v47  ;;  %v6228_v4 = vcombine.low %v262_v56, %v266_v57  ;;  %v6222_v6 = vcombine.low %v255_v59, %v259_v47  ;;  %v1636_v57 = vld [vmem:[#allocation5 + $0x140] sm:$0xff]  ;;  %v1629_v59 = vld [vmem:[#allocation5 + $0x108] sm:$0xff] }
  0xe2   :  { %1528 = vmatprep.subr.bf16.mxu1 %v6167_v7  ;;  %v278_v7 = vld [vmem:[#allocation3 + $0x5d0] sm:$0xff]  ;;  %v1633_v47 = vld [vmem:[#allocation5 + $0x128] sm:$0xff] }
  0xe3   :  { %1443 = vmatpush1.bf16.msra.mxu0 %v6164_v2  ;;  %v263_v2 = vld [vmem:[#allocation3 + $0x558] sm:$0xff]  ;;  %v6245_v13 = vcombine.high %v278_v7, %v282_v8 }
  0xe4   :  { %1444 = vmatprep.subr.bf16.mxu0 %v6173_v3  ;;  %v267_v3 = vld [vmem:[#allocation3 + $0x578] sm:$0xff] }
  0xe5   :  { %1529 = vmatpush1.bf16.msra.mxu1 %v6166_v12  ;;  %v6231_v9 = vcombine.high %v263_v2, %v267_v3  ;;  %v6236_v12 = vcombine.low %v270_v62, %v274_v63  ;;  %v6230_v14 = vcombine.low %v263_v2, %v267_v3  ;;  %v6283_v62 = vcombine.high %v1629_v59, %v1633_v47  ;;  %v1644_v63 = vld [vmem:[#allocation5 + $0x180] sm:$0xff]  ;;  %v1637_v2 = vld [vmem:[#allocation5 + $0x148] sm:$0xff] }
  0xe6   :  { %1530 = vmatprep.subr.bf16.mxu1 %v6175_v15  ;;  %v1641_v3 = vld [vmem:[#allocation5 + $0x168] sm:$0xff] }
  0xe7   :  { %1445 = vmatpush1.bf16.msra.mxu0 %v6172_v10  ;;  %v271_v10 = vld [vmem:[#allocation3 + $0x598] sm:$0xff] }
  0xe8   :  { %1446 = vmatprep.subr.bf16.mxu0 %v6181_v11  ;;  %v275_v11 = vld [vmem:[#allocation3 + $0x5b8] sm:$0xff] }
  0xe9   :  { %1531 = vmatpush1.bf16.msra.mxu1 %v6174_v21  ;;  %v6239_v15 = vcombine.high %v271_v10, %v275_v11  ;;  %v6244_v21 = vcombine.low %v278_v7, %v282_v8  ;;  %v6238_v22 = vcombine.low %v271_v10, %v275_v11  ;;  %v6291_v7 = vcombine.high %v1637_v2, %v1641_v3  ;;  %v1652_v8 = vld [vmem:[#allocation5 + $0x1c0] sm:$0xff]  ;;  %v1645_v10 = vld [vmem:[#allocation5 + $0x188] sm:$0xff] }
  0xea   :  { %1532 = vmatprep.subr.bf16.mxu1 %v6183_v24  ;;  %v1649_v11 = vld [vmem:[#allocation5 + $0x1a8] sm:$0xff] }
  0xeb   :  { %1447 = vmatpush1.bf16.msra.mxu0 %v6180_v18  ;;  %v279_v18 = vld [vmem:[#allocation3 + $0x5d8] sm:$0xff] }
  0xec   :  { %1459 = vmatprep.subr.bf16.mxu0 %v6189_v19  ;;  %v283_v19 = vld [vmem:[#allocation3 + $0x5f8] sm:$0xff] }
  0xed   :  { %1533 = vmatpush1.bf16.msra.mxu1 %v6182_v29  ;;  %v6247_v24 = vcombine.high %v279_v18, %v283_v19  ;;  %v6248_v29 = vcombine.low %v1596_v16, %v1600_v17  ;;  %v6246_v30 = vcombine.low %v279_v18, %v283_v19  ;;  %v1660_v16 = vld [vmem:[#allocation5 + $0x200] sm:$0xff]  ;;  %v1653_v18 = vld [vmem:[#allocation5 + $0x1c8] sm:$0xff] }
  0xee   :  { %1449 = vmatmul.mubr.bf16.vlgmr.msra.gmra.mrb[4].mxu0 %v7050_v33  ;;  %1545 = vmatprep.subr.bf16.mxu1 %v6191_v32  ;;  %v1664_v17 = vld [vmem:[#allocation5 + $0x220] sm:$0xff]  ;;  %v1657_v19 = vld [vmem:[#allocation5 + $0x1e8] sm:$0xff] }
  0xef   :  { %1460 = vmatpush1.bf16.msra.mxu0 %v6188_v27  ;;  %1491 = vmatprep.mubr.bf16.mxu0 %v7153_v0  ;;  %v1597_v27 = vld [vmem:[#allocation5 + $0x8] sm:$0xff] }
  0xf0   :  { %1461 = vmatprep.subr.bf16.mxu0 %v6197_v28  ;;  %1535 = vmatmul.mubr.bf16.vlgmr.msra.gmra.mrb[4].mxu1 %v7050_v33  ;;  %v1601_v28 = vld [vmem:[#allocation5 + $0x28] sm:$0xff]  ;;  %v1612_v33 = vld [vmem:[#allocation5 + $0x80] sm:$0xff] }
  0xf1   :  { %1546 = vmatpush1.bf16.msra.mxu1 %v6190_v38  ;;  %1577 = vmatprep.mubr.bf16.mxu1 %v7153_v0  ;;  %v6214_v0 = vcombine.low %v247_v50, %v251_v51  ;;  %v6251_v32 = vcombine.high %v1597_v27, %v1601_v28  ;;  %v6250_v38 = vcombine.low %v1597_v27, %v1601_v28  ;;  %v1632_v50 = vld [vmem:[#allocation5 + $0x120] sm:$0xff]  ;;  %v1621_v51 = vld [vmem:[#allocation5 + $0xc8] sm:$0xff] }
  0xf2   :  { %1547 = vmatprep.subr.bf16.mxu1 %v6199_v41  ;;  %v6265_v39 = vcombine.high %v1612_v33, %v1616_v34  ;;  %v1620_v41 = vld [vmem:[#allocation5 + $0xc0] sm:$0xff]  ;;  %v1661_v27 = vld [vmem:[#allocation5 + $0x208] sm:$0xff] }
  0xf3   :  { %1462 = vmatpush1.bf16.msra.mxu0 %v6196_v36  ;;  %v1609_v36 = vld [vmem:[#allocation5 + $0x68] sm:$0xff]  ;;  %v6273_v48 = vcombine.high %v1620_v41, %v1624_v42 }
  0xf4   :  { %1463 = vmatprep.subr.bf16.mxu0 %v6205_v37  ;;  %v6256_v37 = vcombine.low %v1604_v25, %v1608_v26  ;;  %v6259_v40 = vcombine.high %v1605_v35, %v1609_v36  ;;  %v1668_v25 = vld [vmem:[#allocation5 + $0x240] sm:$0xff]  ;;  %v1665_v28 = vld [vmem:[#allocation5 + $0x228] sm:$0xff] }
  0xf5   :  { %1548 = vmatpush1.bf16.msra.mxu1 %v6198_v46  ;;  %v6258_v46 = vcombine.low %v1605_v35, %v1609_v36  ;;  %v1672_v26 = vld [vmem:[#allocation5 + $0x260] sm:$0xff]  ;;  %v1669_v35 = vld [vmem:[#allocation5 + $0x248] sm:$0xff] }
  0xf6   :  { %1549 = vmatprep.subr.bf16.mxu1 %v6207_v49  ;;  %v1628_v49 = vld [vmem:[#allocation5 + $0x100] sm:$0xff]  ;;  %v1673_v36 = vld [vmem:[#allocation5 + $0x268] sm:$0xff] }
  0xf7   :  { %1464 = vmatpush1.bf16.msra.mxu0 %v6204_v44  ;;  %v1617_v44 = vld [vmem:[#allocation5 + $0xa8] sm:$0xff]  ;;  %v6281_v56 = vcombine.high %v1628_v49, %v1632_v50 }
  0xf8   :  { %1465 = vmatprep.subr.bf16.mxu0 %v6213_v45  ;;  %v6264_v45 = vcombine.low %v1612_v33, %v1616_v34  ;;  %v6267_v53 = vcombine.high %v1613_v43, %v1617_v44  ;;  %v1676_v33 = vld [vmem:[#allocation5 + $0x280] sm:$0xff] }
  0xf9   :  { %1550 = vmatpush1.bf16.msra.mxu1 %v6206_v55  ;;  %v6266_v55 = vcombine.low %v1613_v43, %v1617_v44  ;;  %v1680_v34 = vld [vmem:[#allocation5 + $0x2a0] sm:$0xff]  ;;  %v1677_v43 = vld [vmem:[#allocation5 + $0x288] sm:$0xff] }
  0xfa   :  { %1551 = vmatprep.subr.bf16.mxu1 %v6215_v58  ;;  %v1640_v58 = vld [vmem:[#allocation5 + $0x160] sm:$0xff]  ;;  %v1681_v44 = vld [vmem:[#allocation5 + $0x2a8] sm:$0xff] }
  0xfb   :  { %1466 = vmatpush1.bf16.msra.mxu0 %v6212_v52  ;;  %v1625_v52 = vld [vmem:[#allocation5 + $0xe8] sm:$0xff] }
  0xfc   :  { %1467 = vmatprep.subr.bf16.mxu0 %v6221_v54  ;;  %v6272_v54 = vcombine.low %v1620_v41, %v1624_v42  ;;  %v1684_v41 = vld [vmem:[#allocation5 + $0x2c0] sm:$0xff] }
  0xfd   :  { %1552 = vmatpush1.bf16.msra.mxu1 %v6214_v0  ;;  %v6289_v0 = vcombine.high %v1636_v57, %v1640_v58  ;;  %v1688_v42 = vld [vmem:[#allocation5 + $0x2e0] sm:$0xff] }
  0xfe   :  { %1553 = vmatprep.subr.bf16.mxu1 %v6223_v1  ;;  %v1648_v1 = vld [vmem:[#allocation5 + $0x1a0] sm:$0xff] }
  0xff   :  { %1468 = vmatpush1.bf16.msra.mxu0 %v6220_v60  ;;  %v6280_v60 = vcombine.low %v1628_v49, %v1632_v50  ;;  %v1692_v49 = vld [vmem:[#allocation5 + $0x300] sm:$0xff] }
 0x100   :  { %1469 = vmatprep.subr.bf16.mxu0 %v6229_v61  ;;  %v6274_v61 = vcombine.low %v1621_v51, %v1625_v52  ;;  %v1696_v50 = vld [vmem:[#allocation5 + $0x320] sm:$0xff] }
 0x101   :  { %1554 = vmatpush1.bf16.msra.mxu1 %v6222_v6  ;;  %v6297_v6 = vcombine.high %v1644_v63, %v1648_v1 }
 0x102   :  { %1555 = vmatprep.subr.bf16.mxu1 %v6231_v9  ;;  %v1656_v9 = vld [vmem:[#allocation5 + $0x1e0] sm:$0xff] }
 0x103   :  { %1470 = vmatpush1.bf16.msra.mxu0 %v6228_v4  ;;  %v6288_v4 = vcombine.low %v1636_v57, %v1640_v58  ;;  %v1700_v57 = vld [vmem:[#allocation5 + $0x340] sm:$0xff] }
 0x104   :  { %1471 = vmatprep.subr.bf16.mxu0 %v6237_v5  ;;  %v6282_v5 = vcombine.low %v1629_v59, %v1633_v47  ;;  %v1704_v58 = vld [vmem:[#allocation5 + $0x360] sm:$0xff]  ;;  %v1693_v59 = vld [vmem:[#allocation5 + $0x308] sm:$0xff] }
 0x105   :  { %1556 = vmatpush1.bf16.msra.mxu1 %v6230_v14  ;;  %v6305_v14 = vcombine.high %v1652_v8, %v1656_v9  ;;  %v1697_v47 = vld [vmem:[#allocation5 + $0x328] sm:$0xff] }
 0x106   :  { %1557 = vmatprep.subr.bf16.mxu1 %v6239_v15  ;;  %v6299_v15 = vcombine.high %v1645_v10, %v1649_v11 }
 0x107   :  { %1472 = vmatpush1.bf16.msra.mxu0 %v6236_v12  ;;  %v6296_v12 = vcombine.low %v1644_v63, %v1648_v1  ;;  %v1708_v63 = vld [vmem:[#allocation5 + $0x380] sm:$0xff] }
 0x108   :  { %1473 = vmatprep.subr.bf16.mxu0 %v6245_v13  ;;  %v6290_v13 = vcombine.low %v1637_v2, %v1641_v3  ;;  %v1712_v1 = vld [vmem:[#allocation5 + $0x3a0] sm:$0xff]  ;;  %v1701_v2 = vld [vmem:[#allocation5 + $0x348] sm:$0xff] }
 0x109   :  { %1558 = vmatpush1.bf16.msra.mxu1 %v6238_v22  ;;  %v6298_v22 = vcombine.low %v1645_v10, %v1649_v11  ;;  %v1705_v3 = vld [vmem:[#allocation5 + $0x368] sm:$0xff] }
 0x10a   :  { %1559 = vmatprep.subr.bf16.mxu1 %v6247_v24  ;;  %v6307_v24 = vcombine.high %v1653_v18, %v1657_v19  ;;  %v1709_v10 = vld [vmem:[#allocation5 + $0x388] sm:$0xff] }
 0x10b   :  { %1474 = vmatpush1.bf16.msra.mxu0 %v6244_v21  ;;  %v6304_v21 = vcombine.low %v1652_v8, %v1656_v9  ;;  %v1716_v8 = vld [vmem:[#allocation5 + $0x3c0] sm:$0xff]  ;;  %v1713_v11 = vld [vmem:[#allocation5 + $0x3a8] sm:$0xff] }
 0x10c   :  { %4668 = vmatprep.subr.bf16.mxu0 %v6249_v23  ;;  %v6313_v23 = vcombine.high %v1660_v16, %v1664_v17  ;;  %v1720_v9 = vld [vmem:[#allocation5 + $0x3e0] sm:$0xff] }
 0x10d   :  { %1560 = vmatpush1.bf16.msra.mxu1 %v6246_v30  ;;  %v6306_v30 = vcombine.low %v1653_v18, %v1657_v19  ;;  %v1717_v18 = vld [vmem:[#allocation5 + $0x3c8] sm:$0xff] }
 0x10e   :  { %1492 = vmatmul.mubr.bf16.vlgmr.msra.gmra.mrb[4].mxu0 %v7269_v20  ;;  %4840 = vmatprep.subr.bf16.mxu1 %v6251_v32  ;;  %v6315_v32 = vcombine.high %v1661_v27, %v1665_v28  ;;  %v1721_v19 = vld [vmem:[#allocation5 + $0x3e8] sm:$0xff] }
 0x10f   :  { %4669 = vmatpush1.bf16.msra.mxu0 %v6248_v29  ;;  %v6312_v29 = vcombine.low %v1660_v16, %v1664_v17  ;;  %v1724_v16 = vld [vmem:[#allocation5 + $0x400] sm:$0xff] }
 0x110   :  { %4670 = vmatprep.subr.bf16.mxu0 %v6257_v31  ;;  %1578 = vmatmul.mubr.bf16.vlgmr.msra.gmra.mrb[4].mxu1 %v7269_v20  ;;  %v6275_v20 = vcombine.high %v1621_v51, %v1625_v52  ;;  %v6321_v31 = vcombine.high %v1668_v25, %v1672_v26  ;;  %v1685_v51 = vld [vmem:[#allocation5 + $0x2c8] sm:$0xff]  ;;  %v1728_v17 = vld [vmem:[#allocation5 + $0x420] sm:$0xff] }
 0x111   :  { %4841 = vmatpush1.bf16.msra.mxu1 %v6250_v38  ;;  %v6314_v38 = vcombine.low %v1661_v27, %v1665_v28  ;;  %v1689_v52 = vld [vmem:[#allocation5 + $0x2e8] sm:$0xff]  ;;  %v6370_v27 = vcombine.low %v1717_v18, %v1721_v19 }
 0x112   :  { %4842 = vmatprep.subr.bf16.mxu1 %v6259_v40  ;;  %v6323_v40 = vcombine.high %v1669_v35, %v1673_v36 }
 0x113   :  { %4671 = vmatpush1.bf16.msra.mxu0 %v6256_v37  ;;  %v6320_v37 = vcombine.low %v1668_v25, %v1672_v26  ;;  %v1725_v25 = vld [vmem:[#allocation5 + $0x408] sm:$0xff] }
 0x114   :  { %4672 = vmatprep.subr.bf16.mxu0 %v6265_v39  ;;  %v6329_v39 = vcombine.high %v1676_v33, %v1680_v34  ;;  %v1729_v26 = vld [vmem:[#allocation5 + $0x428] sm:$0xff] }
 0x115   :  { %4843 = vmatpush1.bf16.msra.mxu1 %v6258_v46  ;;  %v6322_v46 = vcombine.low %v1669_v35, %v1673_v36  ;;  %v6379_v28 = vcombine.high %v1725_v25, %v1729_v26  ;;  %v1737_v35 = vld [vmem:[#allocation5 + $0x468] sm:$0xff] }
 0x116   :  { %4844 = vmatprep.subr.bf16.mxu1 %v6267_v53  ;;  %v6331_v53 = vcombine.high %v1677_v43, %v1681_v44 }
 0x117   :  { %4673 = vmatpush1.bf16.msra.mxu0 %v6264_v45  ;;  %v6328_v45 = vcombine.low %v1676_v33, %v1680_v34  ;;  %v1736_v33 = vld [vmem:[#allocation5 + $0x460] sm:$0xff]  ;;  %v1733_v34 = vld [vmem:[#allocation5 + $0x448] sm:$0xff] }
 0x118   :  { %4674 = vmatprep.subr.bf16.mxu0 %v6273_v48  ;;  %v6337_v48 = vcombine.high %v1684_v41, %v1688_v42 }
 0x119   :  { %4845 = vmatpush1.bf16.msra.mxu1 %v6266_v55  ;;  %v6330_v55 = vcombine.low %v1677_v43, %v1681_v44  ;;  %v1740_v43 = vld [vmem:[#allocation5 + $0x480] sm:$0xff] }
 0x11a   :  { %4846 = vmatprep.subr.bf16.mxu1 %v6275_v20  ;;  %v6339_v20 = vcombine.high %v1685_v51, %v1689_v52 }
 0x11b   :  { %4675 = vmatpush1.bf16.msra.mxu0 %v6272_v54  ;;  %v6336_v54 = vcombine.low %v1684_v41, %v1688_v42  ;;  %v6387_v42 = vcombine.high %v1733_v34, %v1737_v35 }
 0x11c   :  { %4676 = vmatprep.subr.bf16.mxu0 %v6281_v56  ;;  %v6345_v56 = vcombine.high %v1692_v49, %v1696_v50 }
 0x11d   :  { %4847 = vmatpush1.bf16.msra.mxu1 %v6274_v61  ;;  %v6338_v61 = vcombine.low %v1685_v51, %v1689_v52  ;;  %v6386_v51 = vcombine.low %v1733_v34, %v1737_v35  ;;  %v1792_v34 = vld [vmem:[#allocation5 + $0x620] sm:$0xff]  ;;  %v1789_v35 = vld [vmem:[#allocation5 + $0x608] sm:$0xff] }
 0x11e   :  { %4848 = vmatprep.subr.bf16.mxu1 %v6283_v62  ;;  %v6347_v62 = vcombine.high %v1693_v59, %v1697_v47 }
 0x11f   :  { %4677 = vmatpush1.bf16.msra.mxu0 %v6280_v60  ;;  %v6344_v60 = vcombine.low %v1692_v49, %v1696_v50 }
 0x120   :  { %4678 = vmatprep.subr.bf16.mxu0 %v6289_v0  ;;  %v6353_v0 = vcombine.high %v1700_v57, %v1704_v58 }
 0x121   :  { %4849 = vmatpush1.bf16.msra.mxu1 %v6282_v5  ;;  %v6346_v5 = vcombine.low %v1693_v59, %v1697_v47  ;;  %v1749_v59 = vld [vmem:[#allocation5 + $0x4c8] sm:$0xff] }
 0x122   :  { %4850 = vmatprep.subr.bf16.mxu1 %v6291_v7  ;;  %v6355_v7 = vcombine.high %v1701_v2, %v1705_v3  ;;  %v1753_v47 = vld [vmem:[#allocation5 + $0x4e8] sm:$0xff] }
 0x123   :  { %4679 = vmatpush1.bf16.msra.mxu0 %v6288_v4  ;;  %v6352_v4 = vcombine.low %v1700_v57, %v1704_v58  ;;  %v1752_v58 = vld [vmem:[#allocation5 + $0x4e0] sm:$0xff] }
 0x124   :  { %4680 = vmatprep.subr.bf16.mxu0 %v6297_v6  ;;  %v6361_v6 = vcombine.high %v1708_v63, %v1712_v1 }
 0x125   :  { %4851 = vmatpush1.bf16.msra.mxu1 %v6290_v13  ;;  %v6354_v13 = vcombine.low %v1701_v2, %v1705_v3  ;;  %v1757_v2 = vld [vmem:[#allocation5 + $0x508] sm:$0xff] }
 0x126   :  { %4852 = vmatprep.subr.bf16.mxu1 %v6299_v15  ;;  %v6363_v15 = vcombine.high %v1709_v10, %v1713_v11  ;;  %v1761_v3 = vld [vmem:[#allocation5 + $0x528] sm:$0xff] }
 0x127   :  { %4681 = vmatpush1.bf16.msra.mxu0 %v6296_v12  ;;  %v6360_v12 = vcombine.low %v1708_v63, %v1712_v1  ;;  %v1756_v63 = vld [vmem:[#allocation5 + $0x500] sm:$0xff] }
 0x128   :  { %4682 = vmatprep.subr.bf16.mxu0 %v6305_v14  ;;  %v6369_v14 = vcombine.high %v1716_v8, %v1720_v9  ;;  %v1760_v1 = vld [vmem:[#allocation5 + $0x520] sm:$0xff] }
 0x129   :  { %4853 = vmatpush1.bf16.msra.mxu1 %v6298_v22  ;;  %v6362_v22 = vcombine.low %v1709_v10, %v1713_v11  ;;  %v1765_v10 = vld [vmem:[#allocation5 + $0x548] sm:$0xff] }
 0x12a   :  { %4854 = vmatprep.subr.bf16.mxu1 %v6307_v24  ;;  %v6371_v24 = vcombine.high %v1717_v18, %v1721_v19  ;;  %v1769_v11 = vld [vmem:[#allocation5 + $0x568] sm:$0xff] }
 0x12b   :  { %4683 = vmatpush1.bf16.msra.mxu0 %v6304_v21  ;;  %v6368_v21 = vcombine.low %v1716_v8, %v1720_v9  ;;  %v1764_v8 = vld [vmem:[#allocation5 + $0x540] sm:$0xff]  ;;  %v1773_v18 = vld [vmem:[#allocation5 + $0x588] sm:$0xff] }
 0x12c   :  { %4684 = vmatprep.subr.bf16.mxu0 %v6313_v23  ;;  %v6377_v23 = vcombine.high %v1724_v16, %v1728_v17  ;;  %v1768_v9 = vld [vmem:[#allocation5 + $0x560] sm:$0xff]  ;;  %v1777_v19 = vld [vmem:[#allocation5 + $0x5a8] sm:$0xff] }
 0x12d   :  { %4855 = vmatpush1.bf16.msra.mxu1 %v6306_v30 }
 0x12e   :  { %4856 = vmatprep.subr.bf16.mxu1 %v6315_v32 }
 0x12f   :  { %4685 = vmatpush1.bf16.msra.mxu0 %v6312_v29 }
 0x130   :  { %4686 = vmatprep.subr.bf16.mxu0 %v6321_v31  ;;  %v1732_v31 = vld [vmem:[#allocation5 + $0x440] sm:$0xff] }
 0x131   :  { %4857 = vmatpush1.bf16.msra.mxu1 %v6314_v38  ;;  %v6385_v41 = vcombine.high %v1732_v31, %v1736_v33  ;;  %v6384_v50 = vcombine.low %v1732_v31, %v1736_v33  ;;  %v1788_v33 = vld [vmem:[#allocation5 + $0x600] sm:$0xff] }
 0x132   :  { %4858 = vmatprep.subr.bf16.mxu1 %v6323_v40  ;;  %v6378_v40 = vcombine.low %v1725_v25, %v1729_v26  ;;  %v1780_v25 = vld [vmem:[#allocation5 + $0x5c0] sm:$0xff] }
 0x133   :  { %4687 = vmatpush1.bf16.msra.mxu0 %v6320_v37  ;;  %v1784_v26 = vld [vmem:[#allocation5 + $0x5e0] sm:$0xff] }
 0x134   :  { %4688 = vmatprep.subr.bf16.mxu0 %v6329_v39  ;;  %v6376_v39 = vcombine.low %v1724_v16, %v1728_v17  ;;  %v1772_v16 = vld [vmem:[#allocation5 + $0x580] sm:$0xff]  ;;  %v6433_v31 = vcombine.high %v1780_v25, %v1784_v26 }
 0x135   :  { %4859 = vmatpush1.bf16.msra.mxu1 %v6322_v46  ;;  %v1741_v46 = vld [vmem:[#allocation5 + $0x488] sm:$0xff]  ;;  %v1776_v17 = vld [vmem:[#allocation5 + $0x5a0] sm:$0xff] }
 0x136   :  { %4860 = vmatprep.subr.bf16.mxu1 %v6331_v53 }
 0x137   :  { %4689 = vmatpush1.bf16.msra.mxu0 %v6328_v45  ;;  %v1744_v45 = vld [vmem:[#allocation5 + $0x4a0] sm:$0xff] }
 0x138   :  { %4690 = vmatprep.subr.bf16.mxu0 %v6337_v48  ;;  %v1745_v48 = vld [vmem:[#allocation5 + $0x4a8] sm:$0xff] }
 0x139   :  { %4861 = vmatpush1.bf16.msra.mxu1 %v6330_v55  ;;  %v6393_v55 = vcombine.high %v1740_v43, %v1744_v45 }
 0x13a   :  { %4862 = vmatprep.subr.bf16.mxu1 %v6339_v20  ;;  %v1748_v20 = vld [vmem:[#allocation5 + $0x4c0] sm:$0xff] }
 0x13b   :  { %4691 = vmatpush1.bf16.msra.mxu0 %v6336_v54 }
 0x13c   :  { %4692 = vmatprep.subr.bf16.mxu0 %v6345_v56  ;;  %v6395_v56 = vcombine.high %v1741_v46, %v1745_v48 }
 0x13d   :  { %4863 = vmatpush1.bf16.msra.mxu1 %v6338_v61  ;;  %v6394_v61 = vcombine.low %v1741_v46, %v1745_v48  ;;  %v1801_v46 = vld [vmem:[#allocation5 + $0x668] sm:$0xff]  ;;  %v6440_v48 = vcombine.low %v1788_v33, %v1792_v34 }
 0x13e   :  { %4864 = vmatprep.subr.bf16.mxu1 %v6347_v62  ;;  %v6403_v62 = vcombine.high %v1749_v59, %v1753_v47 }
 0x13f   :  { %4693 = vmatpush1.bf16.msra.mxu0 %v6344_v60  ;;  %v6392_v60 = vcombine.low %v1740_v43, %v1744_v45  ;;  %v1796_v43 = vld [vmem:[#allocation5 + $0x640] sm:$0xff]  ;;  %v1797_v45 = vld [vmem:[#allocation5 + $0x648] sm:$0xff] }
 0x140   :  { %4694 = vmatprep.subr.bf16.mxu0 %v6353_v0  ;;  %v6401_v0 = vcombine.high %v1748_v20, %v1752_v58 }
 0x141   :  { %4865 = vmatpush1.bf16.msra.mxu1 %v6346_v5  ;;  %v6402_v5 = vcombine.low %v1749_v59, %v1753_v47 }
 0x142   :  { %4866 = vmatprep.subr.bf16.mxu1 %v6355_v7  ;;  %v6411_v7 = vcombine.high %v1757_v2, %v1761_v3 }
 0x143   :  { %4695 = vmatpush1.bf16.msra.mxu0 %v6352_v4  ;;  %v6400_v4 = vcombine.low %v1748_v20, %v1752_v58  ;;  %v6450_v58 = vcombine.low %v1797_v45, %v1801_v46 }
 0x144   :  { %4696 = vmatprep.subr.bf16.mxu0 %v6361_v6  ;;  %v6409_v6 = vcombine.high %v1756_v63, %v1760_v1 }
 0x145   :  { %4867 = vmatpush1.bf16.msra.mxu1 %v6354_v13  ;;  %v6410_v13 = vcombine.low %v1757_v2, %v1761_v3 }
 0x146   :  { %4868 = vmatprep.subr.bf16.mxu1 %v6363_v15  ;;  %v6419_v15 = vcombine.high %v1765_v10, %v1769_v11 }
 0x147   :  { %4697 = vmatpush1.bf16.msra.mxu0 %v6360_v12  ;;  %v6408_v12 = vcombine.low %v1756_v63, %v1760_v1 }
 0x148   :  { %4698 = vmatprep.subr.bf16.mxu0 %v6369_v14  ;;  %v6417_v14 = vcombine.high %v1764_v8, %v1768_v9 }
 0x149   :  { %4869 = vmatpush1.bf16.msra.mxu1 %v6362_v22  ;;  %v6418_v22 = vcombine.low %v1765_v10, %v1769_v11 }
 0x14a   :  { %4870 = vmatprep.subr.bf16.mxu1 %v6371_v24  ;;  %v6427_v24 = vcombine.high %v1773_v18, %v1777_v19 }
 0x14b   :  { %4699 = vmatpush1.bf16.msra.mxu0 %v6368_v21  ;;  %v6416_v21 = vcombine.low %v1764_v8, %v1768_v9 }
 0x14c   :  { %4711 = vmatprep.subr.bf16.mxu0 %v6377_v23  ;;  %v6425_v23 = vcombine.high %v1772_v16, %v1776_v17 }
 0x14d   :  { %4871 = vmatpush1.bf16.msra.mxu1 %v6370_v27  ;;  %v1781_v27 = vld [vmem:[#allocation5 + $0x5c8] sm:$0xff] }
 0x14e   :  { %4883 = vmatprep.subr.bf16.mxu1 %v6379_v28  ;;  %v1785_v28 = vld [vmem:[#allocation5 + $0x5e8] sm:$0xff] }
 0x181   :  { %v1321_v29 = vpop.f32.mrb[0].mxu0 }
 0x182   :  { %v1323_v30 = vpop.f32.mrb[1].mxu0 }
 0x183   :  { %v1325_v32 = vpop.f32.mrb[2].mxu0  ;;  %v1407_v44 = vpop.f32.mrb[0].mxu1 }
 0x184   :  { %v7279_v36 = vpack.c.bf16 %v1325_v32, %v1321_v29  ;;  %v1327_v37 = vpop.f32.mrb[3].mxu0  ;;  %v1409_v53 = vpop.f32.mrb[1].mxu1  ;;  %v6424_v29 = vcombine.low %v1772_v16, %v1776_v17  ;;  %v6435_v32 = vcombine.high %v1781_v27, %v1785_v28 }
 0x185   :  { %v7281_v38 = vpack.c.bf16 %v1327_v37, %v1323_v30  ;;  %v1411_v49 = vpop.f32.mrb[2].mxu1  ;;  %v6426_v30 = vcombine.low %v1773_v18, %v1777_v19  ;;  %v1793_v37 = vld [vmem:[#allocation5 + $0x628] sm:$0xff] }
 0x186   :  { %v7287_v52 = vpack.c.bf16 %v1411_v49, %v1407_v44  ;;  %v1413_v54 = vpop.f32.mrb[3].mxu1  ;;  %v1800_v44 = vld [vmem:[#allocation5 + $0x660] sm:$0xff] }
 0x187   :  { %4700 = vmatprep.mubr.bf16.mxu0 %v7281_v38  ;;  %4872 = vmatprep.mubr.bf16.mxu1 %v7281_v38  ;;  %v7289_v57 = vpack.c.bf16 %v1413_v54, %v1409_v53  ;;  %v6442_v53 = vcombine.low %v1789_v35, %v1793_v37  ;;  %v6449_v49 = vcombine.high %v1796_v43, %v1800_v44  ;;  %v1808_v54 = vld [vmem:[#allocation5 + $0x6a0] sm:$0xff] }
 0x188   :  { %4701 = vmatmul.mubr.bf16.vlgmr.msra.gmra.mrb[8].mxu0 %v7279_v36  ;;  %4873 = vmatmul.mubr.bf16.vlgmr.msra.gmra.mrb[8].mxu1 %v7279_v36  ;;  %v6448_v20 = vcombine.low %v1796_v43, %v1800_v44 }
 0x189   :  { %4712 = vmatpush1.bf16.msra.mxu0 %v6376_v39  ;;  %4884 = vmatpush1.bf16.msra.mxu1 %v6378_v40  ;;  %v6432_v39 = vcombine.low %v1780_v25, %v1784_v26  ;;  %v6434_v40 = vcombine.low %v1781_v27, %v1785_v28 }
 0x18a   :  { %4713 = vmatprep.subr.bf16.mxu0 %v6385_v41  ;;  %4885 = vmatprep.subr.bf16.mxu1 %v6387_v42  ;;  %v6441_v41 = vcombine.high %v1788_v33, %v1792_v34  ;;  %v6443_v42 = vcombine.high %v1789_v35, %v1793_v37 }
 0x18b   :  { %4743 = vmatprep.mubr.bf16.mxu0 %v7289_v57  ;;  %4915 = vmatprep.mubr.bf16.mxu1 %v7289_v57 }
 0x18d   :  { %4714 = vmatpush1.bf16.msra.mxu0 %v6384_v50  ;;  %4886 = vmatpush1.bf16.msra.mxu1 %v6386_v51  ;;  %v6451_v50 = vcombine.high %v1797_v45, %v1801_v46  ;;  %v1804_v51 = vld [vmem:[#allocation5 + $0x680] sm:$0xff] }
 0x18e   :  { %4715 = vmatprep.subr.bf16.mxu0 %v6393_v55  ;;  %4887 = vmatprep.subr.bf16.mxu1 %v6395_v56  ;;  %v1805_v55 = vld [vmem:[#allocation5 + $0x688] sm:$0xff]  ;;  %v6457_v59 = vcombine.high %v1804_v51, %v1808_v54  ;;  %v6456_v63 = vcombine.low %v1804_v51, %v1808_v54 }
 0x18f   :  { %v1809_v56 = vld [vmem:[#allocation5 + $0x6a8] sm:$0xff] }
 0x190   :  { %v6459_v47 = vcombine.high %v1805_v55, %v1809_v56  ;;  %v6458_v1 = vcombine.low %v1805_v55, %v1809_v56 }
 0x191   :  { %4716 = vmatpush1.bf16.msra.mxu0 %v6392_v60  ;;  %4888 = vmatpush1.bf16.msra.mxu1 %v6394_v61  ;;  %v1812_v60 = vld [vmem:[#allocation5 + $0x6c0] sm:$0xff] }
 0x192   :  { %4717 = vmatprep.subr.bf16.mxu0 %v6401_v0  ;;  %4889 = vmatprep.subr.bf16.mxu1 %v6403_v62  ;;  %v1816_v61 = vld [vmem:[#allocation5 + $0x6e0] sm:$0xff]  ;;  %v1813_v0 = vld [vmem:[#allocation5 + $0x6c8] sm:$0xff] }
 0x193   :  { %v1817_v62 = vld [vmem:[#allocation5 + $0x6e8] sm:$0xff]  ;;  %v6465_v2 = vcombine.high %v1812_v60, %v1816_v61  ;;  %v6464_v8 = vcombine.low %v1812_v60, %v1816_v61 }
 0x194   :  { %v6467_v3 = vcombine.high %v1813_v0, %v1817_v62  ;;  %v6466_v9 = vcombine.low %v1813_v0, %v1817_v62 }
 0x195   :  { %4718 = vmatpush1.bf16.msra.mxu0 %v6400_v4  ;;  %4890 = vmatpush1.bf16.msra.mxu1 %v6402_v5  ;;  %v1820_v4 = vld [vmem:[#allocation5 + $0x700] sm:$0xff] }
 0x196   :  { %4719 = vmatprep.subr.bf16.mxu0 %v6409_v6  ;;  %4891 = vmatprep.subr.bf16.mxu1 %v6411_v7  ;;  %v1824_v5 = vld [vmem:[#allocation5 + $0x720] sm:$0xff]  ;;  %v1821_v6 = vld [vmem:[#allocation5 + $0x708] sm:$0xff] }
 0x197   :  { %v1825_v7 = vld [vmem:[#allocation5 + $0x728] sm:$0xff]  ;;  %v6473_v10 = vcombine.high %v1820_v4, %v1824_v5  ;;  %v6472_v16 = vcombine.low %v1820_v4, %v1824_v5 }
 0x198   :  { %v6475_v11 = vcombine.high %v1821_v6, %v1825_v7  ;;  %v6474_v17 = vcombine.low %v1821_v6, %v1825_v7 }
 0x199   :  { %4720 = vmatpush1.bf16.msra.mxu0 %v6408_v12  ;;  %4892 = vmatpush1.bf16.msra.mxu1 %v6410_v13  ;;  %v1828_v12 = vld [vmem:[#allocation5 + $0x740] sm:$0xff] }
 0x19a   :  { %4721 = vmatprep.subr.bf16.mxu0 %v6417_v14  ;;  %4893 = vmatprep.subr.bf16.mxu1 %v6419_v15  ;;  %v1832_v13 = vld [vmem:[#allocation5 + $0x760] sm:$0xff]  ;;  %v1829_v14 = vld [vmem:[#allocation5 + $0x748] sm:$0xff] }
 0x19b   :  { %v1833_v15 = vld [vmem:[#allocation5 + $0x768] sm:$0xff]  ;;  %v6481_v18 = vcombine.high %v1828_v12, %v1832_v13  ;;  %v6480_v25 = vcombine.low %v1828_v12, %v1832_v13 }
 0x19c   :  { %v6483_v19 = vcombine.high %v1829_v14, %v1833_v15  ;;  %v6482_v26 = vcombine.low %v1829_v14, %v1833_v15 }
 0x19d   :  { %4722 = vmatpush1.bf16.msra.mxu0 %v6416_v21  ;;  %4894 = vmatpush1.bf16.msra.mxu1 %v6418_v22  ;;  %v1836_v21 = vld [vmem:[#allocation5 + $0x780] sm:$0xff] }
 0x19e   :  { %4723 = vmatprep.subr.bf16.mxu0 %v6425_v23  ;;  %4895 = vmatprep.subr.bf16.mxu1 %v6427_v24  ;;  %v1840_v22 = vld [vmem:[#allocation5 + $0x7a0] sm:$0xff]  ;;  %v1837_v23 = vld [vmem:[#allocation5 + $0x788] sm:$0xff] }
 0x19f   :  { %v1841_v24 = vld [vmem:[#allocation5 + $0x7a8] sm:$0xff]  ;;  %v6489_v27 = vcombine.high %v1836_v21, %v1840_v22  ;;  %v6488_v33 = vcombine.low %v1836_v21, %v1840_v22 }
 0x1a0   :  { %v6491_v28 = vcombine.high %v1837_v23, %v1841_v24  ;;  %v6490_v34 = vcombine.low %v1837_v23, %v1841_v24 }
 0x1a1   :  { %4724 = vmatpush1.bf16.msra.mxu0 %v6424_v29  ;;  %4896 = vmatpush1.bf16.msra.mxu1 %v6426_v30  ;;  %v1844_v29 = vld [vmem:[#allocation5 + $0x7c0] sm:$0xff] }
 0x1a2   :  { %4725 = vmatprep.subr.bf16.mxu0 %v6433_v31  ;;  %4897 = vmatprep.subr.bf16.mxu1 %v6435_v32  ;;  %v1848_v30 = vld [vmem:[#allocation5 + $0x7e0] sm:$0xff]  ;;  %v1845_v31 = vld [vmem:[#allocation5 + $0x7c8] sm:$0xff] }
 0x1a3   :  { %v1849_v32 = vld [vmem:[#allocation5 + $0x7e8] sm:$0xff]  ;;  %v6497_v35 = vcombine.high %v1844_v29, %v1848_v30  ;;  %v6496_v43 = vcombine.low %v1844_v29, %v1848_v30 }
 0x1a4   :  { %v6499_v37 = vcombine.high %v1845_v31, %v1849_v32  ;;  %v6498_v44 = vcombine.low %v1845_v31, %v1849_v32 }
 0x1a5   :  { %4726 = vmatpush1.bf16.msra.mxu0 %v6432_v39  ;;  %4898 = vmatpush1.bf16.msra.mxu1 %v6434_v40  ;;  %v1852_v39 = vld [vmem:[#allocation5 + $0x800] sm:$0xff] }
 0x1a6   :  { %4727 = vmatprep.subr.bf16.mxu0 %v6441_v41  ;;  %4899 = vmatprep.subr.bf16.mxu1 %v6443_v42  ;;  %v1856_v40 = vld [vmem:[#allocation5 + $0x820] sm:$0xff]  ;;  %v1853_v41 = vld [vmem:[#allocation5 + $0x808] sm:$0xff] }
 0x1a7   :  { %v1857_v42 = vld [vmem:[#allocation5 + $0x828] sm:$0xff]  ;;  %v6505_v45 = vcombine.high %v1852_v39, %v1856_v40  ;;  %v6504_v51 = vcombine.low %v1852_v39, %v1856_v40 }
 0x1a8   :  { %v6507_v46 = vcombine.high %v1853_v41, %v1857_v42  ;;  %v6506_v54 = vcombine.low %v1853_v41, %v1857_v42 }
 0x1a9   :  { %4728 = vmatpush1.bf16.msra.mxu0 %v6440_v48  ;;  %4900 = vmatpush1.bf16.msra.mxu1 %v6442_v53  ;;  %v1860_v48 = vld [vmem:[#allocation5 + $0x840] sm:$0xff] }
 0x1aa   :  { %4729 = vmatprep.subr.bf16.mxu0 %v6449_v49  ;;  %4901 = vmatprep.subr.bf16.mxu1 %v6451_v50  ;;  %v1864_v53 = vld [vmem:[#allocation5 + $0x860] sm:$0xff]  ;;  %v1861_v49 = vld [vmem:[#allocation5 + $0x848] sm:$0xff] }
 0x1ab   :  { %v1865_v50 = vld [vmem:[#allocation5 + $0x868] sm:$0xff]  ;;  %v6513_v55 = vcombine.high %v1860_v48, %v1864_v53  ;;  %v6512_v60 = vcombine.low %v1860_v48, %v1864_v53 }
 0x1ac   :  { %v6515_v56 = vcombine.high %v1861_v49, %v1865_v50  ;;  %v6514_v61 = vcombine.low %v1861_v49, %v1865_v50 }
 0x1ad   :  { %4730 = vmatpush1.bf16.msra.mxu0 %v6448_v20  ;;  %4902 = vmatpush1.bf16.msra.mxu1 %v6450_v58  ;;  %v1868_v20 = vld [vmem:[#allocation5 + $0x880] sm:$0xff] }
 0x1ae   :  { %4731 = vmatprep.subr.bf16.mxu0 %v6457_v59  ;;  %4903 = vmatprep.subr.bf16.mxu1 %v6459_v47  ;;  %v1872_v58 = vld [vmem:[#allocation5 + $0x8a0] sm:$0xff]  ;;  %v1869_v59 = vld [vmem:[#allocation5 + $0x888] sm:$0xff] }
 0x1af   :  { %v1873_v47 = vld [vmem:[#allocation5 + $0x8a8] sm:$0xff]  ;;  %v6521_v0 = vcombine.high %v1868_v20, %v1872_v58  ;;  %v6520_v4 = vcombine.low %v1868_v20, %v1872_v58  ;;  %v1928_v20 = vld [vmem:[#allocation5 + $0xa60] sm:$0xff] }
 0x1b0   :  { %v6523_v62 = vcombine.high %v1869_v59, %v1873_v47  ;;  %v6522_v5 = vcombine.low %v1869_v59, %v1873_v47  ;;  %v1925_v58 = vld [vmem:[#allocation5 + $0xa48] sm:$0xff] }
 0x1b1   :  { %4732 = vmatpush1.bf16.msra.mxu0 %v6456_v63  ;;  %4904 = vmatpush1.bf16.msra.mxu1 %v6458_v1  ;;  %v1876_v63 = vld [vmem:[#allocation5 + $0x8c0] sm:$0xff]  ;;  %v1929_v59 = vld [vmem:[#allocation5 + $0xa68] sm:$0xff] }
 0x1b2   :  { %4733 = vmatprep.subr.bf16.mxu0 %v6465_v2  ;;  %4905 = vmatprep.subr.bf16.mxu1 %v6467_v3  ;;  %v1880_v1 = vld [vmem:[#allocation5 + $0x8e0] sm:$0xff]  ;;  %v1877_v2 = vld [vmem:[#allocation5 + $0x8c8] sm:$0xff] }
 0x1b3   :  { %v1881_v3 = vld [vmem:[#allocation5 + $0x8e8] sm:$0xff]  ;;  %v6529_v6 = vcombine.high %v1876_v63, %v1880_v1  ;;  %v6528_v12 = vcombine.low %v1876_v63, %v1880_v1  ;;  %v6579_v1 = vcombine.high %v1925_v58, %v1929_v59 }
 0x1b4   :  { %v6531_v7 = vcombine.high %v1877_v2, %v1881_v3  ;;  %v6530_v13 = vcombine.low %v1877_v2, %v1881_v3  ;;  %v1932_v2 = vld [vmem:[#allocation5 + $0xa80] sm:$0xff] }
 0x1b5   :  { %4734 = vmatpush1.bf16.msra.mxu0 %v6464_v8  ;;  %4906 = vmatpush1.bf16.msra.mxu1 %v6466_v9  ;;  %v1884_v8 = vld [vmem:[#allocation5 + $0x900] sm:$0xff] }
 0x1b6   :  { %4735 = vmatprep.subr.bf16.mxu0 %v6473_v10  ;;  %4907 = vmatprep.subr.bf16.mxu1 %v6475_v11  ;;  %v1888_v9 = vld [vmem:[#allocation5 + $0x920] sm:$0xff]  ;;  %v1885_v10 = vld [vmem:[#allocation5 + $0x908] sm:$0xff] }
 0x1b7   :  { %v1889_v11 = vld [vmem:[#allocation5 + $0x928] sm:$0xff]  ;;  %v6537_v14 = vcombine.high %v1884_v8, %v1888_v9  ;;  %v6536_v21 = vcombine.low %v1884_v8, %v1888_v9 }
 0x1b8   :  { %v6539_v15 = vcombine.high %v1885_v10, %v1889_v11  ;;  %v6538_v22 = vcombine.low %v1885_v10, %v1889_v11  ;;  %v6578_v10 = vcombine.low %v1925_v58, %v1929_v59 }
 0x1b9   :  { %4736 = vmatpush1.bf16.msra.mxu0 %v6472_v16  ;;  %4908 = vmatpush1.bf16.msra.mxu1 %v6474_v17  ;;  %v1892_v16 = vld [vmem:[#allocation5 + $0x940] sm:$0xff] }
 0x1ba   :  { %4737 = vmatprep.subr.bf16.mxu0 %v6481_v18  ;;  %4909 = vmatprep.subr.bf16.mxu1 %v6483_v19  ;;  %v1896_v17 = vld [vmem:[#allocation5 + $0x960] sm:$0xff]  ;;  %v1893_v18 = vld [vmem:[#allocation5 + $0x948] sm:$0xff] }
 0x1bb   :  { %v1897_v19 = vld [vmem:[#allocation5 + $0x968] sm:$0xff]  ;;  %v6545_v23 = vcombine.high %v1892_v16, %v1896_v17  ;;  %v6544_v29 = vcombine.low %v1892_v16, %v1896_v17  ;;  %v1944_v17 = vld [vmem:[#allocation5 + $0xae0] sm:$0xff] }
 0x1bc   :  { %v6547_v24 = vcombine.high %v1893_v18, %v1897_v19  ;;  %v6546_v30 = vcombine.low %v1893_v18, %v1897_v19  ;;  %v1941_v18 = vld [vmem:[#allocation5 + $0xac8] sm:$0xff] }
 0x1bd   :  { %4738 = vmatpush1.bf16.msra.mxu0 %v6480_v25  ;;  %4910 = vmatpush1.bf16.msra.mxu1 %v6482_v26  ;;  %v1900_v25 = vld [vmem:[#allocation5 + $0x980] sm:$0xff]  ;;  %v1945_v19 = vld [vmem:[#allocation5 + $0xae8] sm:$0xff] }
 0x1be   :  { %4739 = vmatprep.subr.bf16.mxu0 %v6489_v27  ;;  %4911 = vmatprep.subr.bf16.mxu1 %v6491_v28  ;;  %v1904_v26 = vld [vmem:[#allocation5 + $0x9a0] sm:$0xff]  ;;  %v1901_v27 = vld [vmem:[#allocation5 + $0x988] sm:$0xff] }
 0x1bf   :  { %v1905_v28 = vld [vmem:[#allocation5 + $0x9a8] sm:$0xff]  ;;  %v6553_v31 = vcombine.high %v1900_v25, %v1904_v26  ;;  %v6552_v39 = vcombine.low %v1900_v25, %v1904_v26  ;;  %v1948_v25 = vld [vmem:[#allocation5 + $0xb00] sm:$0xff] }
 0x1c0   :  { %v6555_v32 = vcombine.high %v1901_v27, %v1905_v28  ;;  %v6554_v40 = vcombine.low %v1901_v27, %v1905_v28  ;;  %v1952_v26 = vld [vmem:[#allocation5 + $0xb20] sm:$0xff]  ;;  %v1949_v27 = vld [vmem:[#allocation5 + $0xb08] sm:$0xff] }
 0x1c1   :  { %4740 = vmatpush1.bf16.msra.mxu0 %v6488_v33  ;;  %4912 = vmatpush1.bf16.msra.mxu1 %v6490_v34  ;;  %v1908_v33 = vld [vmem:[#allocation5 + $0x9c0] sm:$0xff]  ;;  %v1953_v28 = vld [vmem:[#allocation5 + $0xb28] sm:$0xff] }
 0x1c2   :  { %4741 = vmatprep.subr.bf16.mxu0 %v6497_v35  ;;  %4913 = vmatprep.subr.bf16.mxu1 %v6499_v37  ;;  %v1912_v34 = vld [vmem:[#allocation5 + $0x9e0] sm:$0xff]  ;;  %v1909_v35 = vld [vmem:[#allocation5 + $0x9c8] sm:$0xff] }
 0x1c3   :  { %v1913_v37 = vld [vmem:[#allocation5 + $0x9e8] sm:$0xff]  ;;  %v6561_v41 = vcombine.high %v1908_v33, %v1912_v34  ;;  %v6560_v53 = vcombine.low %v1908_v33, %v1912_v34  ;;  %v1956_v33 = vld [vmem:[#allocation5 + $0xb40] sm:$0xff] }
 0x1c4   :  { %v6563_v42 = vcombine.high %v1909_v35, %v1913_v37  ;;  %v6562_v49 = vcombine.low %v1909_v35, %v1913_v37  ;;  %v1960_v34 = vld [vmem:[#allocation5 + $0xb60] sm:$0xff]  ;;  %v1957_v35 = vld [vmem:[#allocation5 + $0xb48] sm:$0xff] }
 0x1c5   :  { %4742 = vmatpush1.bf16.msra.mxu0 %v6496_v43  ;;  %4914 = vmatpush1.bf16.msra.mxu1 %v6498_v44  ;;  %v1916_v43 = vld [vmem:[#allocation5 + $0xa00] sm:$0xff]  ;;  %v1961_v37 = vld [vmem:[#allocation5 + $0xb68] sm:$0xff] }
 0x1c6   :  { %4754 = vmatprep.subr.bf16.mxu0 %v6505_v45  ;;  %4926 = vmatprep.subr.bf16.mxu1 %v6507_v46  ;;  %v1920_v44 = vld [vmem:[#allocation5 + $0xa20] sm:$0xff]  ;;  %v1917_v45 = vld [vmem:[#allocation5 + $0xa08] sm:$0xff] }
 0x1c7   :  { %v1921_v46 = vld [vmem:[#allocation5 + $0xa28] sm:$0xff] }
 0x1c8   :  { %4744 = vmatmul.mubr.bf16.vlgmr.msra.gmra.mrb[8].mxu0 %v7287_v52  ;;  %4916 = vmatmul.mubr.bf16.vlgmr.msra.gmra.mrb[8].mxu1 %v7287_v52 }
 0x1c9   :  { %4755 = vmatpush1.bf16.msra.mxu0 %v6504_v51  ;;  %4927 = vmatpush1.bf16.msra.mxu1 %v6506_v54  ;;  %v6569_v51 = vcombine.high %v1916_v43, %v1920_v44  ;;  %v6571_v54 = vcombine.high %v1917_v45, %v1921_v46 }
 0x1ca   :  { %4756 = vmatprep.subr.bf16.mxu0 %v6513_v55  ;;  %4928 = vmatprep.subr.bf16.mxu1 %v6515_v56  ;;  %v1924_v55 = vld [vmem:[#allocation5 + $0xa40] sm:$0xff] }
 0x1cb   :  { %v6577_v63 = vcombine.high %v1924_v55, %v1928_v20  ;;  %v6576_v9 = vcombine.low %v1924_v55, %v1928_v20  ;;  %v1973_v55 = vld [vmem:[#allocation5 + $0xbc8] sm:$0xff] }
 0x1cd   :  { %4757 = vmatpush1.bf16.msra.mxu0 %v6512_v60  ;;  %4929 = vmatpush1.bf16.msra.mxu1 %v6514_v61 }
 0x1ce   :  { %4758 = vmatprep.subr.bf16.mxu0 %v6521_v0  ;;  %4930 = vmatprep.subr.bf16.mxu1 %v6523_v62  ;;  %v6568_v0 = vcombine.low %v1916_v43, %v1920_v44  ;;  %v6570_v62 = vcombine.low %v1917_v45, %v1921_v46  ;;  %v1964_v43 = vld [vmem:[#allocation5 + $0xb80] sm:$0xff]  ;;  %v1965_v45 = vld [vmem:[#allocation5 + $0xb88] sm:$0xff] }
 0x1cf   :  { %v1968_v44 = vld [vmem:[#allocation5 + $0xba0] sm:$0xff]  ;;  %v1969_v46 = vld [vmem:[#allocation5 + $0xba8] sm:$0xff] }
 0x1d0   :  { %v6616_v20 = vcombine.low %v1964_v43, %v1968_v44  ;;  %v6618_v58 = vcombine.low %v1965_v45, %v1969_v46 }
 0x1d1   :  { %4759 = vmatpush1.bf16.msra.mxu0 %v6520_v4  ;;  %4931 = vmatpush1.bf16.msra.mxu1 %v6522_v5  ;;  %v1936_v4 = vld [vmem:[#allocation5 + $0xaa0] sm:$0xff]  ;;  %v1933_v5 = vld [vmem:[#allocation5 + $0xa88] sm:$0xff] }
 0x1d2   :  { %4760 = vmatprep.subr.bf16.mxu0 %v6529_v6  ;;  %4932 = vmatprep.subr.bf16.mxu1 %v6531_v7  ;;  %v1937_v6 = vld [vmem:[#allocation5 + $0xaa8] sm:$0xff] }
 0x1d5   :  { %4761 = vmatpush1.bf16.msra.mxu0 %v6528_v12  ;;  %4933 = vmatpush1.bf16.msra.mxu1 %v6530_v13  ;;  %v6585_v13 = vcombine.high %v1932_v2, %v1936_v4 }
 0x1d6   :  { %4762 = vmatprep.subr.bf16.mxu0 %v6537_v14  ;;  %4934 = vmatprep.subr.bf16.mxu1 %v6539_v15  ;;  %v6587_v14 = vcombine.high %v1933_v5, %v1937_v6  ;;  %v1940_v15 = vld [vmem:[#allocation5 + $0xac0] sm:$0xff] }
 0x1d9   :  { %4763 = vmatpush1.bf16.msra.mxu0 %v6536_v21  ;;  %4935 = vmatpush1.bf16.msra.mxu1 %v6538_v22  ;;  %v6584_v21 = vcombine.low %v1932_v2, %v1936_v4  ;;  %v6586_v22 = vcombine.low %v1933_v5, %v1937_v6  ;;  %v1988_v6 = vld [vmem:[#allocation5 + $0xc40] sm:$0xff] }
 0x1da   :  { %4764 = vmatprep.subr.bf16.mxu0 %v6545_v23  ;;  %4936 = vmatprep.subr.bf16.mxu1 %v6547_v24  ;;  %v6593_v23 = vcombine.high %v1940_v15, %v1944_v17  ;;  %v6595_v24 = vcombine.high %v1941_v18, %v1945_v19 }
 0x1dd   :  { %4765 = vmatpush1.bf16.msra.mxu0 %v6544_v29  ;;  %4937 = vmatpush1.bf16.msra.mxu1 %v6546_v30  ;;  %v6592_v29 = vcombine.low %v1940_v15, %v1944_v17  ;;  %v6594_v30 = vcombine.low %v1941_v18, %v1945_v19  ;;  %v1996_v15 = vld [vmem:[#allocation5 + $0xc80] sm:$0xff]  ;;  %v1997_v18 = vld [vmem:[#allocation5 + $0xc88] sm:$0xff] }
 0x1de   :  { %4766 = vmatprep.subr.bf16.mxu0 %v6553_v31  ;;  %4938 = vmatprep.subr.bf16.mxu1 %v6555_v32  ;;  %v6601_v31 = vcombine.high %v1948_v25, %v1952_v26  ;;  %v6603_v32 = vcombine.high %v1949_v27, %v1953_v28  ;;  %v2000_v17 = vld [vmem:[#allocation5 + $0xca0] sm:$0xff]  ;;  %v2001_v19 = vld [vmem:[#allocation5 + $0xca8] sm:$0xff] }
 0x1e1   :  { %4767 = vmatpush1.bf16.msra.mxu0 %v6552_v39  ;;  %4939 = vmatpush1.bf16.msra.mxu1 %v6554_v40  ;;  %v1493_v48 = vpop.f32.mrb[4].mxu0  ;;  %v6600_v39 = vcombine.low %v1948_v25, %v1952_v26  ;;  %v6602_v40 = vcombine.low %v1949_v27, %v1953_v28  ;;  %v2004_v25 = vld [vmem:[#allocation5 + $0xcc0] sm:$0xff]  ;;  %v2005_v27 = vld [vmem:[#allocation5 + $0xcc8] sm:$0xff] }
 0x1e2   :  { %v1495_v50 = vpop.f32.mrb[5].mxu0  ;;  %4768 = vmatprep.subr.bf16.mxu0 %v6561_v41  ;;  %4940 = vmatprep.subr.bf16.mxu1 %v6563_v42  ;;  %v6609_v41 = vcombine.high %v1956_v33, %v1960_v34  ;;  %v6611_v42 = vcombine.high %v1957_v35, %v1961_v37  ;;  %v2008_v26 = vld [vmem:[#allocation5 + $0xce0] sm:$0xff]  ;;  %v2009_v28 = vld [vmem:[#allocation5 + $0xce8] sm:$0xff] }
 0x1e3   :  { %v1497_v56 = vpop.f32.mrb[6].mxu0  ;;  %v1579_v3 = vpop.f32.mrb[4].mxu1 }
 0x1e4   :  { %v7295_v47 = vpack.c.bf16 %v1497_v56, %v1493_v48  ;;  %v1499_v60 = vpop.f32.mrb[7].mxu0  ;;  %v1581_v7 = vpop.f32.mrb[5].mxu1  ;;  %v6608_v48 = vcombine.low %v1956_v33, %v1960_v34  ;;  %v1977_v56 = vld [vmem:[#allocation5 + $0xbe8] sm:$0xff]  ;;  %v2012_v33 = vld [vmem:[#allocation5 + $0xd00] sm:$0xff] }
 0x1e5   :  { %v7297_v61 = vpack.c.bf16 %v1499_v60, %v1495_v50  ;;  %4769 = vmatpush1.bf16.msra.mxu0 %v6560_v53  ;;  %4941 = vmatpush1.bf16.msra.mxu1 %v6562_v49  ;;  %v1583_v8 = vpop.f32.mrb[6].mxu1  ;;  %v6610_v53 = vcombine.low %v1957_v35, %v1961_v37  ;;  %v6617_v49 = vcombine.high %v1964_v43, %v1968_v44  ;;  %v2016_v34 = vld [vmem:[#allocation5 + $0xd20] sm:$0xff]  ;;  %v2013_v35 = vld [vmem:[#allocation5 + $0xd08] sm:$0xff] }
 0x1e6   :  { %4770 = vmatprep.subr.bf16.mxu0 %v6569_v51  ;;  %4942 = vmatprep.subr.bf16.mxu1 %v6571_v54  ;;  %v7301_v11 = vpack.c.bf16 %v1583_v8, %v1579_v3  ;;  %v1585_v12 = vpop.f32.mrb[7].mxu1  ;;  %v6619_v50 = vcombine.high %v1965_v45, %v1969_v46  ;;  %v1972_v51 = vld [vmem:[#allocation5 + $0xbc0] sm:$0xff]  ;;  %v6627_v60 = vcombine.high %v1973_v55, %v1977_v56  ;;  %v1989_v8 = vld [vmem:[#allocation5 + $0xc48] sm:$0xff] }
 0x1e7   :  { %4786 = vmatprep.mubr.bf16.mxu0 %v7297_v61  ;;  %4958 = vmatprep.mubr.bf16.mxu1 %v7297_v61  ;;  %v7303_v16 = vpack.c.bf16 %v1585_v12, %v1581_v7  ;;  %v1976_v54 = vld [vmem:[#allocation5 + $0xbe0] sm:$0xff]  ;;  %v6626_v3 = vcombine.low %v1973_v55, %v1977_v56  ;;  %v2017_v37 = vld [vmem:[#allocation5 + $0xd28] sm:$0xff] }
 0x1e8   :  { %v6625_v59 = vcombine.high %v1972_v51, %v1976_v54  ;;  %v6624_v2 = vcombine.low %v1972_v51, %v1976_v54  ;;  %v1992_v7 = vld [vmem:[#allocation5 + $0xc60] sm:$0xff]  ;;  %v2021_v45 = vld [vmem:[#allocation5 + $0xd48] sm:$0xff] }
 0x1e9   :  { %4771 = vmatpush1.bf16.msra.mxu0 %v6568_v0  ;;  %4943 = vmatpush1.bf16.msra.mxu1 %v6570_v62  ;;  %v1980_v0 = vld [vmem:[#allocation5 + $0xc00] sm:$0xff]  ;;  %v2025_v46 = vld [vmem:[#allocation5 + $0xd68] sm:$0xff] }
 0x1ea   :  { %4772 = vmatprep.subr.bf16.mxu0 %v6577_v63  ;;  %4944 = vmatprep.subr.bf16.mxu1 %v6579_v1  ;;  %v1984_v62 = vld [vmem:[#allocation5 + $0xc20] sm:$0xff]  ;;  %v1981_v63 = vld [vmem:[#allocation5 + $0xc08] sm:$0xff] }
 0x1eb   :  { %v1985_v1 = vld [vmem:[#allocation5 + $0xc28] sm:$0xff]  ;;  %v6633_v4 = vcombine.high %v1980_v0, %v1984_v62  ;;  %v2020_v43 = vld [vmem:[#allocation5 + $0xd40] sm:$0xff] }
 0x1ec   :  { %v6635_v5 = vcombine.high %v1981_v63, %v1985_v1  ;;  %v6634_v12 = vcombine.low %v1981_v63, %v1985_v1  ;;  %v2024_v44 = vld [vmem:[#allocation5 + $0xd60] sm:$0xff]  ;;  %v2029_v55 = vld [vmem:[#allocation5 + $0xd88] sm:$0xff] }
 0x1ed   :  { %4773 = vmatpush1.bf16.msra.mxu0 %v6576_v9  ;;  %4945 = vmatpush1.bf16.msra.mxu1 %v6578_v10  ;;  %v1993_v9 = vld [vmem:[#allocation5 + $0xc68] sm:$0xff]  ;;  %v6632_v10 = vcombine.low %v1980_v0, %v1984_v62  ;;  %v2028_v51 = vld [vmem:[#allocation5 + $0xd80] sm:$0xff] }
 0x1ee   :  { %4774 = vmatprep.subr.bf16.mxu0 %v6585_v13  ;;  %4946 = vmatprep.subr.bf16.mxu1 %v6587_v14  ;;  %v6641_v13 = vcombine.high %v1988_v6, %v1992_v7  ;;  %v6643_v14 = vcombine.high %v1989_v8, %v1993_v9  ;;  %v2032_v54 = vld [vmem:[#allocation5 + $0xda0] sm:$0xff]  ;;  %v2033_v56 = vld [vmem:[#allocation5 + $0xda8] sm:$0xff] }
 0x1ef   :  { %v2036_v0 = vld [vmem:[#allocation5 + $0xdc0] sm:$0xff]  ;;  %v2037_v63 = vld [vmem:[#allocation5 + $0xdc8] sm:$0xff] }
 0x1f0   :  { %v2040_v62 = vld [vmem:[#allocation5 + $0xde0] sm:$0xff]  ;;  %v2041_v1 = vld [vmem:[#allocation5 + $0xde8] sm:$0xff] }
 0x1f1   :  { %4775 = vmatpush1.bf16.msra.mxu0 %v6584_v21  ;;  %4947 = vmatpush1.bf16.msra.mxu1 %v6586_v22  ;;  %v6640_v21 = vcombine.low %v1988_v6, %v1992_v7  ;;  %v6642_v22 = vcombine.low %v1989_v8, %v1993_v9  ;;  %v2044_v6 = vld [vmem:[#allocation5 + $0xe00] sm:$0xff]  ;;  %v2045_v8 = vld [vmem:[#allocation5 + $0xe08] sm:$0xff] }
 0x1f2   :  { %4776 = vmatprep.subr.bf16.mxu0 %v6593_v23  ;;  %4948 = vmatprep.subr.bf16.mxu1 %v6595_v24  ;;  %v6649_v23 = vcombine.high %v1996_v15, %v2000_v17  ;;  %v6651_v24 = vcombine.high %v1997_v18, %v2001_v19  ;;  %v2048_v7 = vld [vmem:[#allocation5 + $0xe20] sm:$0xff]  ;;  %v2049_v9 = vld [vmem:[#allocation5 + $0xe28] sm:$0xff] }
 0x1f5   :  { %4777 = vmatpush1.bf16.msra.mxu0 %v6592_v29  ;;  %4949 = vmatpush1.bf16.msra.mxu1 %v6594_v30  ;;  %v6648_v29 = vcombine.low %v1996_v15, %v2000_v17  ;;  %v6650_v30 = vcombine.low %v1997_v18, %v2001_v19  ;;  %v2052_v15 = vld [vmem:[#allocation5 + $0xe40] sm:$0xff]  ;;  %v2053_v18 = vld [vmem:[#allocation5 + $0xe48] sm:$0xff] }
 0x1f6   :  { %4778 = vmatprep.subr.bf16.mxu0 %v6601_v31  ;;  %4950 = vmatprep.subr.bf16.mxu1 %v6603_v32  ;;  %v6657_v31 = vcombine.high %v2004_v25, %v2008_v26  ;;  %v6659_v32 = vcombine.high %v2005_v27, %v2009_v28  ;;  %v2056_v17 = vld [vmem:[#allocation5 + $0xe60] sm:$0xff]  ;;  %v2057_v19 = vld [vmem:[#allocation5 + $0xe68] sm:$0xff] }
 0x1f9   :  { %4779 = vmatpush1.bf16.msra.mxu0 %v6600_v39  ;;  %4951 = vmatpush1.bf16.msra.mxu1 %v6602_v40  ;;  %v6656_v39 = vcombine.low %v2004_v25, %v2008_v26  ;;  %v6658_v40 = vcombine.low %v2005_v27, %v2009_v28  ;;  %v2060_v25 = vld [vmem:[#allocation5 + $0xe80] sm:$0xff]  ;;  %v2061_v27 = vld [vmem:[#allocation5 + $0xe88] sm:$0xff] }
 0x1fa   :  { %4780 = vmatprep.subr.bf16.mxu0 %v6609_v41  ;;  %4952 = vmatprep.subr.bf16.mxu1 %v6611_v42  ;;  %v6665_v41 = vcombine.high %v2012_v33, %v2016_v34  ;;  %v6667_v42 = vcombine.high %v2013_v35, %v2017_v37  ;;  %v2064_v26 = vld [vmem:[#allocation5 + $0xea0] sm:$0xff]  ;;  %v2065_v28 = vld [vmem:[#allocation5 + $0xea8] sm:$0xff] }
 0x1fd   :  { %4781 = vmatpush1.bf16.msra.mxu0 %v6608_v48  ;;  %4953 = vmatpush1.bf16.msra.mxu1 %v6610_v53  ;;  %v6664_v48 = vcombine.low %v2012_v33, %v2016_v34  ;;  %v6666_v53 = vcombine.low %v2013_v35, %v2017_v37  ;;  %v2068_v33 = vld [vmem:[#allocation5 + $0xec0] sm:$0xff]  ;;  %v2069_v35 = vld [vmem:[#allocation5 + $0xec8] sm:$0xff] }
 0x1fe   :  { %4782 = vmatprep.subr.bf16.mxu0 %v6617_v49  ;;  %4954 = vmatprep.subr.bf16.mxu1 %v6619_v50  ;;  %v6673_v49 = vcombine.high %v2020_v43, %v2024_v44  ;;  %v6675_v50 = vcombine.high %v2021_v45, %v2025_v46  ;;  %v2072_v34 = vld [vmem:[#allocation5 + $0xee0] sm:$0xff]  ;;  %v2073_v37 = vld [vmem:[#allocation5 + $0xee8] sm:$0xff] }
 0x201   :  { %4783 = vmatpush1.bf16.msra.mxu0 %v6616_v20  ;;  %4955 = vmatpush1.bf16.msra.mxu1 %v6618_v58  ;;  %v6672_v20 = vcombine.low %v2020_v43, %v2024_v44  ;;  %v6674_v58 = vcombine.low %v2021_v45, %v2025_v46  ;;  %v2076_v43 = vld [vmem:[#allocation5 + $0xf00] sm:$0xff]  ;;  %v2077_v45 = vld [vmem:[#allocation5 + $0xf08] sm:$0xff] }
 0x202   :  { %4784 = vmatprep.subr.bf16.mxu0 %v6625_v59  ;;  %4956 = vmatprep.subr.bf16.mxu1 %v6627_v60  ;;  %v6681_v59 = vcombine.high %v2028_v51, %v2032_v54  ;;  %v6683_v60 = vcombine.high %v2029_v55, %v2033_v56  ;;  %v2080_v44 = vld [vmem:[#allocation5 + $0xf20] sm:$0xff]  ;;  %v2081_v46 = vld [vmem:[#allocation5 + $0xf28] sm:$0xff] }
 0x205   :  { %4785 = vmatpush1.bf16.msra.mxu0 %v6624_v2  ;;  %4957 = vmatpush1.bf16.msra.mxu1 %v6626_v3  ;;  %v6680_v2 = vcombine.low %v2028_v51, %v2032_v54  ;;  %v6682_v3 = vcombine.low %v2029_v55, %v2033_v56  ;;  %v2084_v51 = vld [vmem:[#allocation5 + $0xf40] sm:$0xff]  ;;  %v2085_v55 = vld [vmem:[#allocation5 + $0xf48] sm:$0xff] }
 0x206   :  { %4797 = vmatprep.subr.bf16.mxu0 %v6633_v4  ;;  %4969 = vmatprep.subr.bf16.mxu1 %v6635_v5  ;;  %v6689_v4 = vcombine.high %v2036_v0, %v2040_v62  ;;  %v6691_v5 = vcombine.high %v2037_v63, %v2041_v1  ;;  %v2088_v54 = vld [vmem:[#allocation5 + $0xf60] sm:$0xff]  ;;  %v2089_v56 = vld [vmem:[#allocation5 + $0xf68] sm:$0xff] }
 0x208   :  { %4787 = vmatmul.mubr.bf16.vlgmr.msra.gmra.mrb[8].mxu0 %v7295_v47  ;;  %4959 = vmatmul.mubr.bf16.vlgmr.msra.gmra.mrb[8].mxu1 %v7295_v47 }
 0x209   :  { %4798 = vmatpush1.bf16.msra.mxu0 %v6632_v10  ;;  %4829 = vmatprep.mubr.bf16.mxu0 %v7303_v16  ;;  %v6688_v10 = vcombine.low %v2036_v0, %v2040_v62  ;;  %v2092_v0 = vld [vmem:[#allocation5 + $0xf80] sm:$0xff] }
 0x20a   :  { %4970 = vmatpush1.bf16.msra.mxu1 %v6634_v12  ;;  %5001 = vmatprep.mubr.bf16.mxu1 %v7303_v16  ;;  %v6690_v12 = vcombine.low %v2037_v63, %v2041_v1  ;;  %v2096_v62 = vld [vmem:[#allocation5 + $0xfa0] sm:$0xff]  ;;  %v2093_v63 = vld [vmem:[#allocation5 + $0xf88] sm:$0xff] }
 0x20b   :  { %4799 = vmatprep.subr.bf16.mxu0 %v6641_v13  ;;  %4971 = vmatprep.subr.bf16.mxu1 %v6643_v14  ;;  %v6697_v13 = vcombine.high %v2044_v6, %v2048_v7  ;;  %v6699_v14 = vcombine.high %v2045_v8, %v2049_v9  ;;  %v2097_v1 = vld [vmem:[#allocation5 + $0xfa8] sm:$0xff] }
 0x20d   :  { %4800 = vmatpush1.bf16.msra.mxu0 %v6640_v21  ;;  %v6696_v21 = vcombine.low %v2044_v6, %v2048_v7  ;;  %v2100_v6 = vld [vmem:[#allocation5 + $0xfc0] sm:$0xff] }
 0x20e   :  { %4972 = vmatpush1.bf16.msra.mxu1 %v6642_v22  ;;  %4801 = vmatprep.subr.bf16.mxu0 %v6649_v23  ;;  %v6698_v22 = vcombine.low %v2045_v8, %v2049_v9  ;;  %v6705_v23 = vcombine.high %v2052_v15, %v2056_v17  ;;  %v2104_v7 = vld [vmem:[#allocation5 + $0xfe0] sm:$0xff]  ;;  %v2101_v8 = vld [vmem:[#allocation5 + $0xfc8] sm:$0xff] }
 0x20f   :  { %4973 = vmatprep.subr.bf16.mxu1 %v6651_v24  ;;  %v6707_v24 = vcombine.high %v2053_v18, %v2057_v19  ;;  %v2105_v9 = vld [vmem:[#allocation5 + $0xfe8] sm:$0xff] }
 0x211   :  { %4802 = vmatpush1.bf16.msra.mxu0 %v6648_v29  ;;  %v6704_v29 = vcombine.low %v2052_v15, %v2056_v17  ;;  %v1598_v15 = vld [vmem:[#allocation5 + $0x10] sm:$0xff] }
 0x212   :  { %4974 = vmatpush1.bf16.msra.mxu1 %v6650_v30  ;;  %4803 = vmatprep.subr.bf16.mxu0 %v6657_v31  ;;  %v6706_v30 = vcombine.low %v2053_v18, %v2057_v19  ;;  %v6713_v31 = vcombine.high %v2060_v25, %v2064_v26  ;;  %v1602_v17 = vld [vmem:[#allocation5 + $0x30] sm:$0xff]  ;;  %v1599_v18 = vld [vmem:[#allocation5 + $0x18] sm:$0xff] }
 0x213   :  { %4975 = vmatprep.subr.bf16.mxu1 %v6659_v32  ;;  %v6715_v32 = vcombine.high %v2061_v27, %v2065_v28  ;;  %v1603_v19 = vld [vmem:[#allocation5 + $0x38] sm:$0xff] }
 0x215   :  { %4804 = vmatpush1.bf16.msra.mxu0 %v6656_v39  ;;  %v6712_v39 = vcombine.low %v2060_v25, %v2064_v26  ;;  %v1606_v25 = vld [vmem:[#allocation5 + $0x50] sm:$0xff] }
 0x216   :  { %4976 = vmatpush1.bf16.msra.mxu1 %v6658_v40  ;;  %4805 = vmatprep.subr.bf16.mxu0 %v6665_v41  ;;  %v6714_v40 = vcombine.low %v2061_v27, %v2065_v28  ;;  %v6721_v41 = vcombine.high %v2068_v33, %v2072_v34  ;;  %v1610_v26 = vld [vmem:[#allocation5 + $0x70] sm:$0xff]  ;;  %v6252_v27 = vcombine.low %v1598_v15, %v1602_v17  ;;  %v1607_v28 = vld [vmem:[#allocation5 + $0x58] sm:$0xff] }
 0x217   :  { %4977 = vmatprep.subr.bf16.mxu1 %v6667_v42  ;;  %v6723_v42 = vcombine.high %v2069_v35, %v2073_v37 }
 0x219   :  { %4806 = vmatpush1.bf16.msra.mxu0 %v6664_v48  ;;  %v6720_v48 = vcombine.low %v2068_v33, %v2072_v34  ;;  %v1618_v33 = vld [vmem:[#allocation5 + $0xb0] sm:$0xff] }
 0x21a   :  { %4978 = vmatpush1.bf16.msra.mxu1 %v6666_v53  ;;  %4807 = vmatprep.subr.bf16.mxu0 %v6673_v49  ;;  %v6722_v53 = vcombine.low %v2069_v35, %v2073_v37  ;;  %v6729_v49 = vcombine.high %v2076_v43, %v2080_v44  ;;  %v1615_v35 = vld [vmem:[#allocation5 + $0x98] sm:$0xff] }
 0x21b   :  { %4979 = vmatprep.subr.bf16.mxu1 %v6675_v50  ;;  %v6731_v50 = vcombine.high %v2077_v45, %v2081_v46  ;;  %v1619_v37 = vld [vmem:[#allocation5 + $0xb8] sm:$0xff] }
 0x21d   :  { %4808 = vmatpush1.bf16.msra.mxu0 %v6672_v20  ;;  %v6728_v20 = vcombine.low %v2076_v43, %v2080_v44  ;;  %v1622_v43 = vld [vmem:[#allocation5 + $0xd0] sm:$0xff] }
 0x21e   :  { %4980 = vmatpush1.bf16.msra.mxu1 %v6674_v58  ;;  %4809 = vmatprep.subr.bf16.mxu0 %v6681_v59  ;;  %v6730_v58 = vcombine.low %v2077_v45, %v2081_v46  ;;  %v6737_v59 = vcombine.high %v2084_v51, %v2088_v54  ;;  %v1626_v44 = vld [vmem:[#allocation5 + $0xf0] sm:$0xff]  ;;  %v1623_v45 = vld [vmem:[#allocation5 + $0xd8] sm:$0xff] }
 0x21f   :  { %4981 = vmatprep.subr.bf16.mxu1 %v6683_v60  ;;  %v6739_v60 = vcombine.high %v2085_v55, %v2089_v56  ;;  %v1627_v46 = vld [vmem:[#allocation5 + $0xf8] sm:$0xff] }
 0x221   :  { %4810 = vmatpush1.bf16.msra.mxu0 %v6680_v2  ;;  %v6736_v2 = vcombine.low %v2084_v51, %v2088_v54  ;;  %v1630_v51 = vld [vmem:[#allocation5 + $0x110] sm:$0xff] }
 0x222   :  { %4982 = vmatpush1.bf16.msra.mxu1 %v6682_v3  ;;  %4811 = vmatprep.subr.bf16.mxu0 %v6689_v4  ;;  %v6738_v3 = vcombine.low %v2085_v55, %v2089_v56  ;;  %v6745_v4 = vcombine.high %v2092_v0, %v2096_v62  ;;  %v1634_v54 = vld [vmem:[#allocation5 + $0x130] sm:$0xff]  ;;  %v1631_v55 = vld [vmem:[#allocation5 + $0x118] sm:$0xff] }
 0x223   :  { %4983 = vmatprep.subr.bf16.mxu1 %v6691_v5  ;;  %v6747_v5 = vcombine.high %v2093_v63, %v2097_v1  ;;  %v1635_v56 = vld [vmem:[#allocation5 + $0x138] sm:$0xff] }
 0x225   :  { %4812 = vmatpush1.bf16.msra.mxu0 %v6688_v10  ;;  %v6744_v10 = vcombine.low %v2092_v0, %v2096_v62  ;;  %v1642_v0 = vld [vmem:[#allocation5 + $0x170] sm:$0xff]  ;;  %v1639_v62 = vld [vmem:[#allocation5 + $0x158] sm:$0xff] }
 0x226   :  { %4984 = vmatpush1.bf16.msra.mxu1 %v6690_v12  ;;  %4813 = vmatprep.subr.bf16.mxu0 %v6697_v13  ;;  %v6746_v12 = vcombine.low %v2093_v63, %v2097_v1  ;;  %v6753_v13 = vcombine.high %v2100_v6, %v2104_v7  ;;  %v1643_v63 = vld [vmem:[#allocation5 + $0x178] sm:$0xff]  ;;  %v6284_v1 = vcombine.low %v1630_v51, %v1634_v54 }
 0x227   :  { %4985 = vmatprep.subr.bf16.mxu1 %v6699_v14  ;;  %v6755_v14 = vcombine.high %v2101_v8, %v2105_v9 }
 0x229   :  { %4814 = vmatpush1.bf16.msra.mxu0 %v6696_v21  ;;  %v6752_v21 = vcombine.low %v2100_v6, %v2104_v7  ;;  %v1650_v6 = vld [vmem:[#allocation5 + $0x1b0] sm:$0xff]  ;;  %v1647_v7 = vld [vmem:[#allocation5 + $0x198] sm:$0xff] }
 0x22a   :  { %4986 = vmatpush1.bf16.msra.mxu1 %v6698_v22  ;;  %4815 = vmatprep.subr.bf16.mxu0 %v6705_v23  ;;  %v6754_v22 = vcombine.low %v2101_v8, %v2105_v9  ;;  %v6253_v23 = vcombine.high %v1598_v15, %v1602_v17  ;;  %v1651_v8 = vld [vmem:[#allocation5 + $0x1b8] sm:$0xff]  ;;  %v1658_v15 = vld [vmem:[#allocation5 + $0x1f0] sm:$0xff] }
 0x22b   :  { %4987 = vmatprep.subr.bf16.mxu1 %v6707_v24  ;;  %v6255_v24 = vcombine.high %v1599_v18, %v1603_v19  ;;  %v1655_v17 = vld [vmem:[#allocation5 + $0x1d8] sm:$0xff] }
 0x22d   :  { %4816 = vmatpush1.bf16.msra.mxu0 %v6704_v29  ;;  %v1611_v29 = vld [vmem:[#allocation5 + $0x78] sm:$0xff] }
 0x22e   :  { %4988 = vmatpush1.bf16.msra.mxu1 %v6706_v30  ;;  %4817 = vmatprep.subr.bf16.mxu0 %v6713_v31  ;;  %v6254_v30 = vcombine.low %v1599_v18, %v1603_v19  ;;  %v6261_v31 = vcombine.high %v1606_v25, %v1610_v26  ;;  %v6263_v34 = vcombine.high %v1607_v28, %v1611_v29  ;;  %v1659_v18 = vld [vmem:[#allocation5 + $0x1f8] sm:$0xff] }
 0x22f   :  { %4989 = vmatprep.subr.bf16.mxu1 %v6715_v32  ;;  %v1614_v32 = vld [vmem:[#allocation5 + $0x90] sm:$0xff] }
 0x231   :  { %4818 = vmatpush1.bf16.msra.mxu0 %v6712_v39  ;;  %v6260_v39 = vcombine.low %v1606_v25, %v1610_v26  ;;  %v1666_v25 = vld [vmem:[#allocation5 + $0x230] sm:$0xff]  ;;  %v1663_v26 = vld [vmem:[#allocation5 + $0x218] sm:$0xff] }
 0x232   :  { %4990 = vmatpush1.bf16.msra.mxu1 %v6714_v40  ;;  %4819 = vmatprep.subr.bf16.mxu0 %v6721_v41  ;;  %v6262_v40 = vcombine.low %v1607_v28, %v1611_v29  ;;  %v6269_v41 = vcombine.high %v1614_v32, %v1618_v33  ;;  %v6310_v29 = vcombine.low %v1655_v17, %v1659_v18 }
 0x233   :  { %4991 = vmatprep.subr.bf16.mxu1 %v6723_v42  ;;  %v6271_v42 = vcombine.high %v1615_v35, %v1619_v37 }
 0x235   :  { %4820 = vmatpush1.bf16.msra.mxu0 %v6720_v48  ;;  %v6268_v48 = vcombine.low %v1614_v32, %v1618_v33  ;;  %v1670_v32 = vld [vmem:[#allocation5 + $0x250] sm:$0xff] }
 0x236   :  { %4992 = vmatpush1.bf16.msra.mxu1 %v6722_v53  ;;  %4821 = vmatprep.subr.bf16.mxu0 %v6729_v49  ;;  %v6270_v53 = vcombine.low %v1615_v35, %v1619_v37  ;;  %v6277_v49 = vcombine.high %v1622_v43, %v1626_v44  ;;  %v1674_v33 = vld [vmem:[#allocation5 + $0x270] sm:$0xff]  ;;  %v1675_v35 = vld [vmem:[#allocation5 + $0x278] sm:$0xff] }
 0x237   :  { %4993 = vmatprep.subr.bf16.mxu1 %v6731_v50  ;;  %v6279_v50 = vcombine.high %v1623_v45, %v1627_v46 }
 0x239   :  { %4822 = vmatpush1.bf16.msra.mxu0 %v6728_v20  ;;  %v6278_v20 = vcombine.low %v1623_v45, %v1627_v46  ;;  %v1683_v45 = vld [vmem:[#allocation5 + $0x2b8] sm:$0xff]  ;;  %v6324_v46 = vcombine.low %v1670_v32, %v1674_v33 }
 0x23a   :  { %4994 = vmatpush1.bf16.msra.mxu1 %v6730_v58  ;;  %4823 = vmatprep.subr.bf16.mxu0 %v6737_v59  ;;  %v6285_v58 = vcombine.high %v1630_v51, %v1634_v54  ;;  %v6287_v59 = vcombine.high %v1631_v55, %v1635_v56  ;;  %v1690_v51 = vld [vmem:[#allocation5 + $0x2f0] sm:$0xff]  ;;  %v1687_v54 = vld [vmem:[#allocation5 + $0x2d8] sm:$0xff] }
 0x23b   :  { %4995 = vmatprep.subr.bf16.mxu1 %v6739_v60  ;;  %v1638_v60 = vld [vmem:[#allocation5 + $0x150] sm:$0xff] }
 0x23c   :  { %v6292_v9 = vcombine.low %v1638_v60, %v1642_v0 }
 0x23d   :  { %4824 = vmatpush1.bf16.msra.mxu0 %v6736_v2  ;;  %v6286_v2 = vcombine.low %v1631_v55, %v1635_v56  ;;  %v1691_v55 = vld [vmem:[#allocation5 + $0x2f8] sm:$0xff] }
 0x23e   :  { %4996 = vmatpush1.bf16.msra.mxu1 %v6738_v3  ;;  %4825 = vmatprep.subr.bf16.mxu0 %v6745_v4  ;;  %v6293_v3 = vcombine.high %v1638_v60, %v1642_v0  ;;  %v6295_v4 = vcombine.high %v1639_v62, %v1643_v63  ;;  %v1698_v60 = vld [vmem:[#allocation5 + $0x330] sm:$0xff]  ;;  %v1695_v0 = vld [vmem:[#allocation5 + $0x318] sm:$0xff] }
 0x23f   :  { %4997 = vmatprep.subr.bf16.mxu1 %v6747_v5  ;;  %v1646_v5 = vld [vmem:[#allocation5 + $0x190] sm:$0xff] }
 0x240   :  { %v6300_v19 = vcombine.low %v1646_v5, %v1650_v6 }
 0x241   :  { %4826 = vmatpush1.bf16.msra.mxu0 %v6744_v10  ;;  %v6294_v10 = vcombine.low %v1639_v62, %v1643_v63  ;;  %v1699_v62 = vld [vmem:[#allocation5 + $0x338] sm:$0xff] }
 0x242   :  { %4998 = vmatpush1.bf16.msra.mxu1 %v6746_v12  ;;  %4827 = vmatprep.subr.bf16.mxu0 %v6753_v13  ;;  %v6301_v12 = vcombine.high %v1646_v5, %v1650_v6  ;;  %v6303_v13 = vcombine.high %v1647_v7, %v1651_v8  ;;  %v1706_v5 = vld [vmem:[#allocation5 + $0x370] sm:$0xff]  ;;  %v1703_v6 = vld [vmem:[#allocation5 + $0x358] sm:$0xff] }
 0x243   :  { %4999 = vmatprep.subr.bf16.mxu1 %v6755_v14  ;;  %v1654_v14 = vld [vmem:[#allocation5 + $0x1d0] sm:$0xff] }
 0x244   :  { %v6308_v28 = vcombine.low %v1654_v14, %v1658_v15 }
 0x245   :  { %4828 = vmatpush1.bf16.msra.mxu0 %v6752_v21  ;;  %v6302_v21 = vcombine.low %v1647_v7, %v1651_v8  ;;  %v1707_v7 = vld [vmem:[#allocation5 + $0x378] sm:$0xff] }
 0x246   :  { %5000 = vmatpush1.bf16.msra.mxu1 %v6754_v22  ;;  %5012 = vmatprep.subr.bf16.mxu0 %v6253_v23  ;;  %v6309_v22 = vcombine.high %v1654_v14, %v1658_v15  ;;  %v6311_v23 = vcombine.high %v1655_v17, %v1659_v18  ;;  %v1714_v14 = vld [vmem:[#allocation5 + $0x3b0] sm:$0xff]  ;;  %v1711_v15 = vld [vmem:[#allocation5 + $0x398] sm:$0xff] }
 0x247   :  { %5184 = vmatprep.subr.bf16.mxu1 %v6255_v24  ;;  %v1662_v24 = vld [vmem:[#allocation5 + $0x210] sm:$0xff]  ;;  %v1715_v17 = vld [vmem:[#allocation5 + $0x3b8] sm:$0xff] }
 0x248   :  { %4830 = vmatmul.mubr.bf16.vlgmr.msra.gmra.mrb[8].mxu0 %v7301_v11  ;;  %v6316_v37 = vcombine.low %v1662_v24, %v1666_v25 }
 0x249   :  { %5002 = vmatmul.mubr.bf16.vlgmr.msra.gmra.mrb[8].mxu1 %v7301_v11  ;;  %5013 = vmatpush1.bf16.msra.mxu0 %v6252_v27  ;;  %v1667_v27 = vld [vmem:[#allocation5 + $0x238] sm:$0xff] }
 0x24a   :  { %5044 = vmatprep.mubr.bf16.mxu0 %v7281_v38  ;;  %5185 = vmatpush1.bf16.msra.mxu1 %v6254_v30  ;;  %v6317_v30 = vcombine.high %v1662_v24, %v1666_v25  ;;  %v1722_v24 = vld [vmem:[#allocation5 + $0x3f0] sm:$0xff]  ;;  %v1719_v25 = vld [vmem:[#allocation5 + $0x3d8] sm:$0xff] }
 0x24b   :  { %5216 = vmatprep.mubr.bf16.mxu1 %v7281_v38  ;;  %5014 = vmatprep.subr.bf16.mxu0 %v6261_v31  ;;  %v6276_v38 = vcombine.low %v1622_v43, %v1626_v44  ;;  %v6319_v31 = vcombine.high %v1663_v26, %v1667_v27  ;;  %v1682_v43 = vld [vmem:[#allocation5 + $0x2b0] sm:$0xff]  ;;  %v1679_v44 = vld [vmem:[#allocation5 + $0x298] sm:$0xff] }
 0x24c   :  { %5186 = vmatprep.subr.bf16.mxu1 %v6263_v34  ;;  %v1671_v34 = vld [vmem:[#allocation5 + $0x258] sm:$0xff] }
 0x24d   :  { %5015 = vmatpush1.bf16.msra.mxu0 %v6260_v39  ;;  %v6318_v39 = vcombine.low %v1663_v26, %v1667_v27  ;;  %v1723_v26 = vld [vmem:[#allocation5 + $0x3f8] sm:$0xff] }
 0x24e   :  { %5187 = vmatpush1.bf16.msra.mxu1 %v6262_v40  ;;  %5016 = vmatprep.subr.bf16.mxu0 %v6269_v41  ;;  %v6325_v40 = vcombine.high %v1670_v32, %v1674_v33  ;;  %v6327_v41 = vcombine.high %v1671_v34, %v1675_v35  ;;  %v1730_v32 = vld [vmem:[#allocation5 + $0x430] sm:$0xff]  ;;  %v1727_v33 = vld [vmem:[#allocation5 + $0x418] sm:$0xff] }
 0x24f   :  { %5188 = vmatprep.subr.bf16.mxu1 %v6271_v42  ;;  %v1678_v42 = vld [vmem:[#allocation5 + $0x290] sm:$0xff] }
 0x250   :  { %v6332_v56 = vcombine.low %v1678_v42, %v1682_v43 }
 0x251   :  { %5017 = vmatpush1.bf16.msra.mxu0 %v6268_v48  ;;  %v6326_v48 = vcombine.low %v1671_v34, %v1675_v35  ;;  %v1731_v34 = vld [vmem:[#allocation5 + $0x438] sm:$0xff] }
 0x252   :  { %5189 = vmatpush1.bf16.msra.mxu1 %v6270_v53  ;;  %5018 = vmatprep.subr.bf16.mxu0 %v6277_v49  ;;  %v6333_v53 = vcombine.high %v1678_v42, %v1682_v43  ;;  %v6335_v49 = vcombine.high %v1679_v44, %v1683_v45  ;;  %v1738_v42 = vld [vmem:[#allocation5 + $0x470] sm:$0xff] }
 0x253   :  { %5190 = vmatprep.subr.bf16.mxu1 %v6279_v50  ;;  %v1686_v50 = vld [vmem:[#allocation5 + $0x2d0] sm:$0xff] }
 0x254   :  { %v6340_v63 = vcombine.low %v1686_v50, %v1690_v51 }
 0x255   :  { %5019 = vmatpush1.bf16.msra.mxu0 %v6276_v38  ;;  %v6334_v38 = vcombine.low %v1679_v44, %v1683_v45  ;;  %v1735_v44 = vld [vmem:[#allocation5 + $0x458] sm:$0xff] }
 0x256   :  { %5191 = vmatpush1.bf16.msra.mxu1 %v6278_v20  ;;  %5020 = vmatprep.subr.bf16.mxu0 %v6285_v58  ;;  %v6341_v20 = vcombine.high %v1686_v50, %v1690_v51  ;;  %v6343_v58 = vcombine.high %v1687_v54, %v1691_v55  ;;  %v1739_v45 = vld [vmem:[#allocation5 + $0x478] sm:$0xff] }
 0x257   :  { %5192 = vmatprep.subr.bf16.mxu1 %v6287_v59  ;;  %v1694_v59 = vld [vmem:[#allocation5 + $0x310] sm:$0xff]  ;;  %v6391_v50 = vcombine.high %v1735_v44, %v1739_v45  ;;  %v1743_v51 = vld [vmem:[#allocation5 + $0x498] sm:$0xff] }
 0x258   :  { %v6348_v8 = vcombine.low %v1694_v59, %v1698_v60 }
 0x259   :  { %5021 = vmatpush1.bf16.msra.mxu0 %v6284_v1  ;;  %v6342_v1 = vcombine.low %v1687_v54, %v1691_v55  ;;  %v1747_v54 = vld [vmem:[#allocation5 + $0x4b8] sm:$0xff] }
 0x25a   :  { %5193 = vmatpush1.bf16.msra.mxu1 %v6286_v2  ;;  %5022 = vmatprep.subr.bf16.mxu0 %v6293_v3  ;;  %v6349_v2 = vcombine.high %v1694_v59, %v1698_v60  ;;  %v6351_v3 = vcombine.high %v1695_v0, %v1699_v62  ;;  %v1754_v59 = vld [vmem:[#allocation5 + $0x4f0] sm:$0xff]  ;;  %v1751_v60 = vld [vmem:[#allocation5 + $0x4d8] sm:$0xff] }
 0x25b   :  { %5194 = vmatprep.subr.bf16.mxu1 %v6295_v4  ;;  %v1702_v4 = vld [vmem:[#allocation5 + $0x350] sm:$0xff] }
 0x25c   :  { %v6356_v18 = vcombine.low %v1702_v4, %v1706_v5 }
 0x25d   :  { %5023 = vmatpush1.bf16.msra.mxu0 %v6292_v9  ;;  %v6350_v9 = vcombine.low %v1695_v0, %v1699_v62  ;;  %v1755_v0 = vld [vmem:[#allocation5 + $0x4f8] sm:$0xff] }
 0x25e   :  { %5195 = vmatpush1.bf16.msra.mxu1 %v6294_v10  ;;  %5024 = vmatprep.subr.bf16.mxu0 %v6301_v12  ;;  %v6357_v10 = vcombine.high %v1702_v4, %v1706_v5  ;;  %v6359_v12 = vcombine.high %v1703_v6, %v1707_v7  ;;  %v1759_v4 = vld [vmem:[#allocation5 + $0x518] sm:$0xff] }
 0x25f   :  { %5196 = vmatprep.subr.bf16.mxu1 %v6303_v13  ;;  %v1710_v13 = vld [vmem:[#allocation5 + $0x390] sm:$0xff]  ;;  %v1763_v5 = vld [vmem:[#allocation5 + $0x538] sm:$0xff] }
 0x260   :  { %v6364_v27 = vcombine.low %v1710_v13, %v1714_v14 }
 0x261   :  { %5025 = vmatpush1.bf16.msra.mxu0 %v6300_v19  ;;  %v6358_v19 = vcombine.low %v1703_v6, %v1707_v7  ;;  %v6406_v6 = vcombine.low %v1751_v60, %v1755_v0 }
 0x262   :  { %5197 = vmatpush1.bf16.msra.mxu1 %v6302_v21  ;;  %5026 = vmatprep.subr.bf16.mxu0 %v6309_v22  ;;  %v6365_v21 = vcombine.high %v1710_v13, %v1714_v14  ;;  %v6367_v22 = vcombine.high %v1711_v15, %v1715_v17  ;;  %v1771_v13 = vld [vmem:[#allocation5 + $0x578] sm:$0xff] }
 0x263   :  { %5198 = vmatprep.subr.bf16.mxu1 %v6311_v23  ;;  %v1718_v23 = vld [vmem:[#allocation5 + $0x3d0] sm:$0xff] }
 0x264   :  { %v6372_v35 = vcombine.low %v1718_v23, %v1722_v24 }
 0x265   :  { %5027 = vmatpush1.bf16.msra.mxu0 %v6308_v28  ;;  %v6366_v28 = vcombine.low %v1711_v15, %v1715_v17  ;;  %v6414_v15 = vcombine.low %v1759_v4, %v1763_v5 }
 0x266   :  { %5199 = vmatpush1.bf16.msra.mxu1 %v6310_v29  ;;  %5028 = vmatprep.subr.bf16.mxu0 %v6317_v30  ;;  %v6373_v29 = vcombine.high %v1718_v23, %v1722_v24  ;;  %v6375_v30 = vcombine.high %v1719_v25, %v1723_v26  ;;  %v1779_v23 = vld [vmem:[#allocation5 + $0x5b8] sm:$0xff] }
 0x267   :  { %5200 = vmatprep.subr.bf16.mxu1 %v6319_v31  ;;  %v1726_v31 = vld [vmem:[#allocation5 + $0x410] sm:$0xff] }
 0x268   :  { %v6380_v43 = vcombine.low %v1726_v31, %v1730_v32 }
 0x269   :  { %5029 = vmatpush1.bf16.msra.mxu0 %v6316_v37  ;;  %v6374_v37 = vcombine.low %v1719_v25, %v1723_v26 }
 0x26a   :  { %5201 = vmatpush1.bf16.msra.mxu1 %v6318_v39  ;;  %5030 = vmatprep.subr.bf16.mxu0 %v6325_v40  ;;  %v6381_v39 = vcombine.high %v1726_v31, %v1730_v32  ;;  %v6383_v40 = vcombine.high %v1727_v33, %v1731_v34  ;;  %v1787_v31 = vld [vmem:[#allocation5 + $0x5f8] sm:$0xff] }
 0x26b   :  { %5202 = vmatprep.subr.bf16.mxu1 %v6327_v41  ;;  %v1734_v41 = vld [vmem:[#allocation5 + $0x450] sm:$0xff] }
 0x26c   :  { %v6388_v55 = vcombine.low %v1734_v41, %v1738_v42 }
 0x26d   :  { %5031 = vmatpush1.bf16.msra.mxu0 %v6324_v46  ;;  %v6382_v46 = vcombine.low %v1727_v33, %v1731_v34 }
 0x26e   :  { %5203 = vmatpush1.bf16.msra.mxu1 %v6326_v48  ;;  %5032 = vmatprep.subr.bf16.mxu0 %v6333_v53  ;;  %v6389_v48 = vcombine.high %v1734_v41, %v1738_v42  ;;  %v1742_v53 = vld [vmem:[#allocation5 + $0x490] sm:$0xff]  ;;  %v1795_v41 = vld [vmem:[#allocation5 + $0x638] sm:$0xff] }
 0x26f   :  { %5204 = vmatprep.subr.bf16.mxu1 %v6335_v49  ;;  %v1746_v49 = vld [vmem:[#allocation5 + $0x4b0] sm:$0xff] }
 0x270   :  { %v6396_v62 = vcombine.low %v1742_v53, %v1746_v49 }
 0x271   :  { %5033 = vmatpush1.bf16.msra.mxu0 %v6332_v56  ;;  %v6390_v56 = vcombine.low %v1735_v44, %v1739_v45 }
 0x272   :  { %5205 = vmatpush1.bf16.msra.mxu1 %v6334_v38  ;;  %5034 = vmatprep.subr.bf16.mxu0 %v6341_v20  ;;  %v6397_v38 = vcombine.high %v1742_v53, %v1746_v49  ;;  %v6399_v20 = vcombine.high %v1743_v51, %v1747_v54  ;;  %v1799_v53 = vld [vmem:[#allocation5 + $0x658] sm:$0xff] }
 0x273   :  { %5206 = vmatprep.subr.bf16.mxu1 %v6343_v58  ;;  %v1750_v58 = vld [vmem:[#allocation5 + $0x4d0] sm:$0xff]  ;;  %v1803_v49 = vld [vmem:[#allocation5 + $0x678] sm:$0xff] }
 0x275   :  { %5035 = vmatpush1.bf16.msra.mxu0 %v6340_v63  ;;  %v6405_v63 = vcombine.high %v1750_v58, %v1754_v59 }
 0x276   :  { %5207 = vmatpush1.bf16.msra.mxu1 %v6342_v1  ;;  %5036 = vmatprep.subr.bf16.mxu0 %v6349_v2  ;;  %v6407_v1 = vcombine.high %v1751_v60, %v1755_v0  ;;  %v1758_v2 = vld [vmem:[#allocation5 + $0x510] sm:$0xff]  ;;  %v6454_v60 = vcombine.low %v1799_v53, %v1803_v49 }
 0x277   :  { %5208 = vmatprep.subr.bf16.mxu1 %v6351_v3  ;;  %v1762_v3 = vld [vmem:[#allocation5 + $0x530] sm:$0xff] }
 0x278   :  { %v6413_v7 = vcombine.high %v1758_v2, %v1762_v3  ;;  %v6412_v14 = vcombine.low %v1758_v2, %v1762_v3  ;;  %v1819_v2 = vld [vmem:[#allocation5 + $0x6f8] sm:$0xff] }
 0x279   :  { %5037 = vmatpush1.bf16.msra.mxu0 %v6348_v8  ;;  %v6415_v8 = vcombine.high %v1759_v4, %v1763_v5 }
 0x27a   :  { %5209 = vmatpush1.bf16.msra.mxu1 %v6350_v9  ;;  %5038 = vmatprep.subr.bf16.mxu0 %v6357_v10  ;;  %v1766_v9 = vld [vmem:[#allocation5 + $0x550] sm:$0xff] }
 0x27b   :  { %5210 = vmatprep.subr.bf16.mxu1 %v6359_v12  ;;  %v1770_v10 = vld [vmem:[#allocation5 + $0x570] sm:$0xff]  ;;  %v1767_v12 = vld [vmem:[#allocation5 + $0x558] sm:$0xff] }
 0x27c   :  { %v6421_v17 = vcombine.high %v1766_v9, %v1770_v10  ;;  %v6420_v24 = vcombine.low %v1766_v9, %v1770_v10  ;;  %v6422_v25 = vcombine.low %v1767_v12, %v1771_v13  ;;  %v1827_v9 = vld [vmem:[#allocation5 + $0x738] sm:$0xff] }
 0x27d   :  { %5039 = vmatpush1.bf16.msra.mxu0 %v6356_v18  ;;  %v6423_v18 = vcombine.high %v1767_v12, %v1771_v13 }
 0x27e   :  { %5211 = vmatpush1.bf16.msra.mxu1 %v6358_v19  ;;  %5040 = vmatprep.subr.bf16.mxu0 %v6365_v21  ;;  %v1774_v19 = vld [vmem:[#allocation5 + $0x590] sm:$0xff] }
 0x27f   :  { %5212 = vmatprep.subr.bf16.mxu1 %v6367_v22  ;;  %v1778_v21 = vld [vmem:[#allocation5 + $0x5b0] sm:$0xff]  ;;  %v1775_v22 = vld [vmem:[#allocation5 + $0x598] sm:$0xff] }
 0x280   :  { %v6429_v26 = vcombine.high %v1774_v19, %v1778_v21  ;;  %v6428_v32 = vcombine.low %v1774_v19, %v1778_v21  ;;  %v6430_v33 = vcombine.low %v1775_v22, %v1779_v23  ;;  %v1835_v19 = vld [vmem:[#allocation5 + $0x778] sm:$0xff] }
 0x281   :  { %5041 = vmatpush1.bf16.msra.mxu0 %v6364_v27  ;;  %v6431_v27 = vcombine.high %v1775_v22, %v1779_v23 }
 0x282   :  { %5213 = vmatpush1.bf16.msra.mxu1 %v6366_v28  ;;  %5042 = vmatprep.subr.bf16.mxu0 %v6373_v29  ;;  %v1782_v28 = vld [vmem:[#allocation5 + $0x5d0] sm:$0xff] }
 0x283   :  { %5214 = vmatprep.subr.bf16.mxu1 %v6375_v30  ;;  %v1786_v29 = vld [vmem:[#allocation5 + $0x5f0] sm:$0xff]  ;;  %v1783_v30 = vld [vmem:[#allocation5 + $0x5d8] sm:$0xff] }
 0x284   :  { %v6437_v34 = vcombine.high %v1782_v28, %v1786_v29  ;;  %v6436_v42 = vcombine.low %v1782_v28, %v1786_v29  ;;  %v1843_v28 = vld [vmem:[#allocation5 + $0x7b8] sm:$0xff] }
 0x285   :  { %5043 = vmatpush1.bf16.msra.mxu0 %v6372_v35  ;;  %v6439_v35 = vcombine.high %v1783_v30, %v1787_v31 }
 0x286   :  { %5215 = vmatpush1.bf16.msra.mxu1 %v6374_v37  ;;  %5055 = vmatprep.subr.bf16.mxu0 %v6381_v39  ;;  %v1790_v37 = vld [vmem:[#allocation5 + $0x610] sm:$0xff] }
 0x287   :  { %5227 = vmatprep.subr.bf16.mxu1 %v6383_v40  ;;  %v1794_v39 = vld [vmem:[#allocation5 + $0x630] sm:$0xff]  ;;  %v1791_v40 = vld [vmem:[#allocation5 + $0x618] sm:$0xff] }
 0x288   :  { %5045 = vmatmul.mubr.bf16.vlgmr.msra.gmra.mrb[12].mxu0 %v7279_v36  ;;  %v6445_v44 = vcombine.high %v1790_v37, %v1794_v39  ;;  %v6447_v45 = vcombine.high %v1791_v40, %v1795_v41 }
 0x289   :  { %5217 = vmatmul.mubr.bf16.vlgmr.msra.gmra.mrb[12].mxu1 %v7279_v36  ;;  %5056 = vmatpush1.bf16.msra.mxu0 %v6380_v43  ;;  %v6398_v36 = vcombine.low %v1743_v51, %v1747_v54  ;;  %v6438_v43 = vcombine.low %v1783_v30, %v1787_v31  ;;  %v6446_v51 = vcombine.low %v1791_v40, %v1795_v41 }
 0x28a   :  { %5087 = vmatprep.mubr.bf16.mxu0 %v7289_v57  ;;  %5228 = vmatpush1.bf16.msra.mxu1 %v6382_v46  ;;  %v1798_v46 = vld [vmem:[#allocation5 + $0x650] sm:$0xff] }
 0x28b   :  { %5259 = vmatprep.mubr.bf16.mxu1 %v7289_v57  ;;  %5057 = vmatprep.subr.bf16.mxu0 %v6389_v48  ;;  %v6404_v57 = vcombine.low %v1750_v58, %v1754_v59  ;;  %v1802_v48 = vld [vmem:[#allocation5 + $0x670] sm:$0xff]  ;;  %v1811_v58 = vld [vmem:[#allocation5 + $0x6b8] sm:$0xff] }
 0x28c   :  { %5229 = vmatprep.subr.bf16.mxu1 %v6391_v50  ;;  %v6444_v50 = vcombine.low %v1790_v37, %v1794_v39  ;;  %v6453_v54 = vcombine.high %v1798_v46, %v1802_v48  ;;  %v6452_v59 = vcombine.low %v1798_v46, %v1802_v48  ;;  %v1851_v37 = vld [vmem:[#allocation5 + $0x7f8] sm:$0xff] }
 0x28d   :  { %5058 = vmatpush1.bf16.msra.mxu0 %v6388_v55  ;;  %v6455_v55 = vcombine.high %v1799_v53, %v1803_v49  ;;  %v1859_v46 = vld [vmem:[#allocation5 + $0x838] sm:$0xff] }
 0x28e   :  { %5230 = vmatpush1.bf16.msra.mxu1 %v6390_v56  ;;  %5059 = vmatprep.subr.bf16.mxu0 %v6397_v38  ;;  %v1806_v56 = vld [vmem:[#allocation5 + $0x690] sm:$0xff] }
 0x28f   :  { %5231 = vmatprep.subr.bf16.mxu1 %v6399_v20  ;;  %v1810_v38 = vld [vmem:[#allocation5 + $0x6b0] sm:$0xff]  ;;  %v1807_v20 = vld [vmem:[#allocation5 + $0x698] sm:$0xff] }
 0x290   :  { %v6461_v0 = vcombine.high %v1806_v56, %v1810_v38  ;;  %v6460_v3 = vcombine.low %v1806_v56, %v1810_v38  ;;  %v6462_v4 = vcombine.low %v1807_v20, %v1811_v58  ;;  %v1863_v56 = vld [vmem:[#allocation5 + $0x858] sm:$0xff] }
 0x291   :  { %5060 = vmatpush1.bf16.msra.mxu0 %v6396_v62  ;;  %v6463_v62 = vcombine.high %v1807_v20, %v1811_v58  ;;  %v1867_v38 = vld [vmem:[#allocation5 + $0x878] sm:$0xff] }
 0x292   :  { %5232 = vmatpush1.bf16.msra.mxu1 %v6398_v36  ;;  %5061 = vmatprep.subr.bf16.mxu0 %v6405_v63  ;;  %v1814_v36 = vld [vmem:[#allocation5 + $0x6d0] sm:$0xff] }
 0x293   :  { %5233 = vmatprep.subr.bf16.mxu1 %v6407_v1  ;;  %v1818_v63 = vld [vmem:[#allocation5 + $0x6f0] sm:$0xff]  ;;  %v1815_v1 = vld [vmem:[#allocation5 + $0x6d8] sm:$0xff] }
 0x294   :  { %v6469_v5 = vcombine.high %v1814_v36, %v1818_v63  ;;  %v6468_v10 = vcombine.low %v1814_v36, %v1818_v63  ;;  %v6470_v12 = vcombine.low %v1815_v1, %v1819_v2  ;;  %v1875_v36 = vld [vmem:[#allocation5 + $0x8b8] sm:$0xff] }
 0x295   :  { %5062 = vmatpush1.bf16.msra.mxu0 %v6404_v57  ;;  %v6471_v57 = vcombine.high %v1815_v1, %v1819_v2  ;;  %v6518_v1 = vcombine.low %v1863_v56, %v1867_v38 }
 0x296   :  { %5234 = vmatpush1.bf16.msra.mxu1 %v6406_v6  ;;  %5063 = vmatprep.subr.bf16.mxu0 %v6413_v7  ;;  %v1822_v6 = vld [vmem:[#allocation5 + $0x710] sm:$0xff] }
 0x297   :  { %5235 = vmatprep.subr.bf16.mxu1 %v6415_v8  ;;  %v1826_v7 = vld [vmem:[#allocation5 + $0x730] sm:$0xff]  ;;  %v1823_v8 = vld [vmem:[#allocation5 + $0x718] sm:$0xff] }
 0x298   :  { %v6477_v13 = vcombine.high %v1822_v6, %v1826_v7  ;;  %v6476_v21 = vcombine.low %v1822_v6, %v1826_v7  ;;  %v6478_v22 = vcombine.low %v1823_v8, %v1827_v9  ;;  %v1883_v6 = vld [vmem:[#allocation5 + $0x8f8] sm:$0xff] }
 0x299   :  { %5064 = vmatpush1.bf16.msra.mxu0 %v6412_v14  ;;  %v6479_v14 = vcombine.high %v1823_v8, %v1827_v9 }
 0x29a   :  { %5236 = vmatpush1.bf16.msra.mxu1 %v6414_v15  ;;  %5065 = vmatprep.subr.bf16.mxu0 %v6421_v17  ;;  %v1830_v15 = vld [vmem:[#allocation5 + $0x750] sm:$0xff] }
 0x29b   :  { %5237 = vmatprep.subr.bf16.mxu1 %v6423_v18  ;;  %v1834_v17 = vld [vmem:[#allocation5 + $0x770] sm:$0xff]  ;;  %v1831_v18 = vld [vmem:[#allocation5 + $0x758] sm:$0xff] }
 0x29c   :  { %v6485_v23 = vcombine.high %v1830_v15, %v1834_v17  ;;  %v6484_v29 = vcombine.low %v1830_v15, %v1834_v17  ;;  %v6486_v30 = vcombine.low %v1831_v18, %v1835_v19 }
 0x29d   :  { %5066 = vmatpush1.bf16.msra.mxu0 %v6420_v24  ;;  %v6487_v24 = vcombine.high %v1831_v18, %v1835_v19  ;;  %v1894_v19 = vld [vmem:[#allocation5 + $0x950] sm:$0xff] }
 0x29e   :  { %5238 = vmatpush1.bf16.msra.mxu1 %v6422_v25  ;;  %5067 = vmatprep.subr.bf16.mxu0 %v6429_v26  ;;  %v1838_v25 = vld [vmem:[#allocation5 + $0x790] sm:$0xff] }
 0x29f   :  { %5239 = vmatprep.subr.bf16.mxu1 %v6431_v27  ;;  %v1842_v26 = vld [vmem:[#allocation5 + $0x7b0] sm:$0xff]  ;;  %v1839_v27 = vld [vmem:[#allocation5 + $0x798] sm:$0xff] }
 0x2a0   :  { %v6493_v31 = vcombine.high %v1838_v25, %v1842_v26  ;;  %v6492_v39 = vcombine.low %v1838_v25, %v1842_v26  ;;  %v6494_v40 = vcombine.low %v1839_v27, %v1843_v28 }
 0x2a1   :  { %5068 = vmatpush1.bf16.msra.mxu0 %v6428_v32  ;;  %v6495_v32 = vcombine.high %v1839_v27, %v1843_v28  ;;  %v1902_v28 = vld [vmem:[#allocation5 + $0x990] sm:$0xff] }
 0x2a2   :  { %5240 = vmatpush1.bf16.msra.mxu1 %v6430_v33  ;;  %5069 = vmatprep.subr.bf16.mxu0 %v6437_v34  ;;  %v1846_v33 = vld [vmem:[#allocation5 + $0x7d0] sm:$0xff] }
 0x2a3   :  { %5241 = vmatprep.subr.bf16.mxu1 %v6439_v35  ;;  %v1850_v34 = vld [vmem:[#allocation5 + $0x7f0] sm:$0xff]  ;;  %v1847_v35 = vld [vmem:[#allocation5 + $0x7d8] sm:$0xff] }
 0x2a4   :  { %v6501_v41 = vcombine.high %v1846_v33, %v1850_v34  ;;  %v6500_v48 = vcombine.low %v1846_v33, %v1850_v34  ;;  %v6502_v53 = vcombine.low %v1847_v35, %v1851_v37 }
 0x2a5   :  { %5070 = vmatpush1.bf16.msra.mxu0 %v6436_v42  ;;  %v6503_v42 = vcombine.high %v1847_v35, %v1851_v37  ;;  %v1910_v37 = vld [vmem:[#allocation5 + $0x9d0] sm:$0xff] }
 0x2a6   :  { %5242 = vmatpush1.bf16.msra.mxu1 %v6438_v43  ;;  %5071 = vmatprep.subr.bf16.mxu0 %v6445_v44  ;;  %v1854_v43 = vld [vmem:[#allocation5 + $0x810] sm:$0xff] }
 0x2a7   :  { %5243 = vmatprep.subr.bf16.mxu1 %v6447_v45  ;;  %v1858_v44 = vld [vmem:[#allocation5 + $0x830] sm:$0xff]  ;;  %v1855_v45 = vld [vmem:[#allocation5 + $0x818] sm:$0xff] }
 0x2a8   :  { %v6509_v49 = vcombine.high %v1854_v43, %v1858_v44  ;;  %v6510_v20 = vcombine.low %v1855_v45, %v1859_v46 }
 0x2a9   :  { %5072 = vmatpush1.bf16.msra.mxu0 %v6444_v50  ;;  %v6511_v50 = vcombine.high %v1855_v45, %v1859_v46  ;;  %v1918_v46 = vld [vmem:[#allocation5 + $0xa10] sm:$0xff] }
 0x2aa   :  { %5244 = vmatpush1.bf16.msra.mxu1 %v6446_v51  ;;  %5073 = vmatprep.subr.bf16.mxu0 %v6453_v54  ;;  %v1862_v51 = vld [vmem:[#allocation5 + $0x850] sm:$0xff] }
 0x2ab   :  { %5245 = vmatprep.subr.bf16.mxu1 %v6455_v55  ;;  %v1866_v54 = vld [vmem:[#allocation5 + $0x870] sm:$0xff]  ;;  %v6508_v55 = vcombine.low %v1854_v43, %v1858_v44 }
 0x2ac   :  { %v6517_v58 = vcombine.high %v1862_v51, %v1866_v54  ;;  %v6516_v63 = vcombine.low %v1862_v51, %v1866_v54 }
 0x2ad   :  { %5074 = vmatpush1.bf16.msra.mxu0 %v6452_v59  ;;  %v1870_v59 = vld [vmem:[#allocation5 + $0x890] sm:$0xff] }
 0x2ae   :  { %5246 = vmatpush1.bf16.msra.mxu1 %v6454_v60  ;;  %5075 = vmatprep.subr.bf16.mxu0 %v6461_v0  ;;  %v1874_v60 = vld [vmem:[#allocation5 + $0x8b0] sm:$0xff]  ;;  %v6519_v0 = vcombine.high %v1863_v56, %v1867_v38 }
 0x2af   :  { %5247 = vmatprep.subr.bf16.mxu1 %v6463_v62  ;;  %v1871_v62 = vld [vmem:[#allocation5 + $0x898] sm:$0xff]  ;;  %v6525_v2 = vcombine.high %v1870_v59, %v1874_v60  ;;  %v6524_v7 = vcombine.low %v1870_v59, %v1874_v60  ;;  %v1926_v56 = vld [vmem:[#allocation5 + $0xa50] sm:$0xff] }
 0x2b0   :  { %v1930_v38 = vld [vmem:[#allocation5 + $0xa70] sm:$0xff] }
 0x2b1   :  { %5076 = vmatpush1.bf16.msra.mxu0 %v6460_v3  ;;  %v6527_v3 = vcombine.high %v1871_v62, %v1875_v36 }
 0x2b2   :  { %5248 = vmatpush1.bf16.msra.mxu1 %v6462_v4  ;;  %5077 = vmatprep.subr.bf16.mxu0 %v6469_v5  ;;  %v1878_v4 = vld [vmem:[#allocation5 + $0x8d0] sm:$0xff] }
 0x2b3   :  { %5249 = vmatprep.subr.bf16.mxu1 %v6471_v57  ;;  %v1882_v5 = vld [vmem:[#allocation5 + $0x8f0] sm:$0xff]  ;;  %v1879_v57 = vld [vmem:[#allocation5 + $0x8d8] sm:$0xff] }
 0x2b4   :  { %v6533_v8 = vcombine.high %v1878_v4, %v1882_v5  ;;  %v6535_v9 = vcombine.high %v1879_v57, %v1883_v6  ;;  %v6534_v15 = vcombine.low %v1879_v57, %v1883_v6  ;;  %v1942_v6 = vld [vmem:[#allocation5 + $0xad0] sm:$0xff] }
 0x2b5   :  { %5078 = vmatpush1.bf16.msra.mxu0 %v6468_v10  ;;  %v1886_v10 = vld [vmem:[#allocation5 + $0x910] sm:$0xff] }
 0x2b6   :  { %5250 = vmatpush1.bf16.msra.mxu1 %v6470_v12  ;;  %5079 = vmatprep.subr.bf16.mxu0 %v6477_v13  ;;  %v1890_v12 = vld [vmem:[#allocation5 + $0x930] sm:$0xff]  ;;  %v1887_v13 = vld [vmem:[#allocation5 + $0x918] sm:$0xff] }
 0x2b7   :  { %5251 = vmatprep.subr.bf16.mxu1 %v6479_v14  ;;  %v1891_v14 = vld [vmem:[#allocation5 + $0x938] sm:$0xff]  ;;  %v6541_v17 = vcombine.high %v1886_v10, %v1890_v12 }
 0x2b8   :  { %v6543_v18 = vcombine.high %v1887_v13, %v1891_v14  ;;  %v6542_v25 = vcombine.low %v1887_v13, %v1891_v14  ;;  %v1950_v14 = vld [vmem:[#allocation5 + $0xb10] sm:$0xff] }
 0x2b9   :  { %5080 = vmatpush1.bf16.msra.mxu0 %v6476_v21  ;;  %v1898_v21 = vld [vmem:[#allocation5 + $0x970] sm:$0xff] }
 0x2ba   :  { %5252 = vmatpush1.bf16.msra.mxu1 %v6478_v22  ;;  %5081 = vmatprep.subr.bf16.mxu0 %v6485_v23  ;;  %v1895_v22 = vld [vmem:[#allocation5 + $0x958] sm:$0xff]  ;;  %v6549_v26 = vcombine.high %v1894_v19, %v1898_v21 }
 0x2bb   :  { %5253 = vmatprep.subr.bf16.mxu1 %v6487_v24  ;;  %v1899_v23 = vld [vmem:[#allocation5 + $0x978] sm:$0xff]  ;;  %v6540_v24 = vcombine.low %v1886_v10, %v1890_v12 }
 0x2bc   :  { %v6551_v27 = vcombine.high %v1895_v22, %v1899_v23  ;;  %v6550_v33 = vcombine.low %v1895_v22, %v1899_v23  ;;  %v1958_v23 = vld [vmem:[#allocation5 + $0xb50] sm:$0xff] }
 0x2bd   :  { %5082 = vmatpush1.bf16.msra.mxu0 %v6484_v29  ;;  %v1906_v29 = vld [vmem:[#allocation5 + $0x9b0] sm:$0xff] }
 0x2be   :  { %5254 = vmatpush1.bf16.msra.mxu1 %v6486_v30  ;;  %5083 = vmatprep.subr.bf16.mxu0 %v6493_v31  ;;  %v1903_v30 = vld [vmem:[#allocation5 + $0x998] sm:$0xff]  ;;  %v6557_v34 = vcombine.high %v1902_v28, %v1906_v29 }
 0x2bf   :  { %5255 = vmatprep.subr.bf16.mxu1 %v6495_v32  ;;  %v1907_v31 = vld [vmem:[#allocation5 + $0x9b8] sm:$0xff]  ;;  %v6548_v32 = vcombine.low %v1894_v19, %v1898_v21 }
 0x2c0   :  { %v6559_v35 = vcombine.high %v1903_v30, %v1907_v31  ;;  %v6558_v43 = vcombine.low %v1903_v30, %v1907_v31  ;;  %v1966_v31 = vld [vmem:[#allocation5 + $0xb90] sm:$0xff] }
 0x2c1   :  { %5084 = vmatpush1.bf16.msra.mxu0 %v6492_v39  ;;  %v1914_v39 = vld [vmem:[#allocation5 + $0x9f0] sm:$0xff] }
 0x2c2   :  { %5256 = vmatpush1.bf16.msra.mxu1 %v6494_v40  ;;  %5085 = vmatprep.subr.bf16.mxu0 %v6501_v41  ;;  %v1911_v40 = vld [vmem:[#allocation5 + $0x9d8] sm:$0xff]  ;;  %v6565_v44 = vcombine.high %v1910_v37, %v1914_v39 }
 0x2c3   :  { %5257 = vmatprep.subr.bf16.mxu1 %v6503_v42  ;;  %v1915_v41 = vld [vmem:[#allocation5 + $0x9f8] sm:$0xff]  ;;  %v6556_v42 = vcombine.low %v1902_v28, %v1906_v29 }
 0x2c4   :  { %v6567_v45 = vcombine.high %v1911_v40, %v1915_v41  ;;  %v6566_v51 = vcombine.low %v1911_v40, %v1915_v41  ;;  %v1974_v41 = vld [vmem:[#allocation5 + $0xbd0] sm:$0xff] }
 0x2c5   :  { %5086 = vmatpush1.bf16.msra.mxu0 %v6500_v48  ;;  %v1922_v48 = vld [vmem:[#allocation5 + $0xa30] sm:$0xff] }
 0x2c6   :  { %5258 = vmatpush1.bf16.msra.mxu1 %v6502_v53  ;;  %5098 = vmatprep.subr.bf16.mxu0 %v6509_v49  ;;  %v1919_v53 = vld [vmem:[#allocation5 + $0xa18] sm:$0xff]  ;;  %v6573_v54 = vcombine.high %v1918_v46, %v1922_v48  ;;  %v6572_v59 = vcombine.low %v1918_v46, %v1922_v48 }
 0x2c7   :  { %5270 = vmatprep.subr.bf16.mxu1 %v6511_v50  ;;  %v1923_v49 = vld [vmem:[#allocation5 + $0xa38] sm:$0xff]  ;;  %v6564_v50 = vcombine.low %v1910_v37, %v1914_v39 }
 0x2c8   :  { %5088 = vmatmul.mubr.bf16.vlgmr.msra.gmra.mrb[12].mxu0 %v7287_v52  ;;  %v6574_v60 = vcombine.low %v1919_v53, %v1923_v49 }
 0x2c9   :  { %5260 = vmatmul.mubr.bf16.vlgmr.msra.gmra.mrb[12].mxu1 %v7287_v52  ;;  %5099 = vmatpush1.bf16.msra.mxu0 %v6508_v55  ;;  %v6526_v52 = vcombine.low %v1871_v62, %v1875_v36  ;;  %v6575_v55 = vcombine.high %v1919_v53, %v1923_v49  ;;  %v1934_v36 = vld [vmem:[#allocation5 + $0xa90] sm:$0xff] }
 0x2ca   :  { %5130 = vmatprep.mubr.bf16.mxu0 %v7297_v61  ;;  %5271 = vmatpush1.bf16.msra.mxu1 %v6510_v20  ;;  %v1927_v20 = vld [vmem:[#allocation5 + $0xa58] sm:$0xff]  ;;  %v1982_v49 = vld [vmem:[#allocation5 + $0xc10] sm:$0xff] }
 0x2cb   :  { %5302 = vmatprep.mubr.bf16.mxu1 %v7297_v61  ;;  %5100 = vmatprep.subr.bf16.mxu0 %v6517_v58  ;;  %v6532_v61 = vcombine.low %v1878_v4, %v1882_v5  ;;  %v1931_v58 = vld [vmem:[#allocation5 + $0xa78] sm:$0xff] }
 0x2cc   :  { %5272 = vmatprep.subr.bf16.mxu1 %v6519_v0  ;;  %v6581_v0 = vcombine.high %v1926_v56, %v1930_v38  ;;  %v6583_v62 = vcombine.high %v1927_v20, %v1931_v58  ;;  %v6582_v4 = vcombine.low %v1927_v20, %v1931_v58  ;;  %v1990_v58 = vld [vmem:[#allocation5 + $0xc50] sm:$0xff] }
 0x2cd   :  { %5101 = vmatpush1.bf16.msra.mxu0 %v6516_v63  ;;  %v1938_v63 = vld [vmem:[#allocation5 + $0xab0] sm:$0xff] }
 0x2ce   :  { %5273 = vmatpush1.bf16.msra.mxu1 %v6518_v1  ;;  %5102 = vmatprep.subr.bf16.mxu0 %v6525_v2  ;;  %v1935_v1 = vld [vmem:[#allocation5 + $0xa98] sm:$0xff]  ;;  %v6589_v5 = vcombine.high %v1934_v36, %v1938_v63 }
 0x2cf   :  { %5274 = vmatprep.subr.bf16.mxu1 %v6527_v3  ;;  %v1939_v2 = vld [vmem:[#allocation5 + $0xab8] sm:$0xff]  ;;  %v6580_v3 = vcombine.low %v1926_v56, %v1930_v38 }
 0x2d0   :  { %v6591_v57 = vcombine.high %v1935_v1, %v1939_v2  ;;  %v6590_v10 = vcombine.low %v1935_v1, %v1939_v2  ;;  %v1998_v1 = vld [vmem:[#allocation5 + $0xc90] sm:$0xff] }
 0x2d1   :  { %5103 = vmatpush1.bf16.msra.mxu0 %v6524_v7  ;;  %v1946_v7 = vld [vmem:[#allocation5 + $0xaf0] sm:$0xff] }
 0x2d2   :  { %5275 = vmatpush1.bf16.msra.mxu1 %v6526_v52  ;;  %5104 = vmatprep.subr.bf16.mxu0 %v6533_v8  ;;  %v1943_v52 = vld [vmem:[#allocation5 + $0xad8] sm:$0xff]  ;;  %v6597_v12 = vcombine.high %v1942_v6, %v1946_v7  ;;  %v2002_v2 = vld [vmem:[#allocation5 + $0xcb0] sm:$0xff] }
 0x2d3   :  { %5276 = vmatprep.subr.bf16.mxu1 %v6535_v9  ;;  %v1947_v8 = vld [vmem:[#allocation5 + $0xaf8] sm:$0xff]  ;;  %v6588_v9 = vcombine.low %v1934_v36, %v1938_v63 }
 0x2d4   :  { %v6599_v13 = vcombine.high %v1943_v52, %v1947_v8  ;;  %v6598_v19 = vcombine.low %v1943_v52, %v1947_v8  ;;  %v2006_v8 = vld [vmem:[#allocation5 + $0xcd0] sm:$0xff] }
 0x2d5   :  { %5105 = vmatpush1.bf16.msra.mxu0 %v6532_v61  ;;  %v1954_v61 = vld [vmem:[#allocation5 + $0xb30] sm:$0xff] }
 0x2d6   :  { %5277 = vmatpush1.bf16.msra.mxu1 %v6534_v15  ;;  %5106 = vmatprep.subr.bf16.mxu0 %v6541_v17  ;;  %v1951_v15 = vld [vmem:[#allocation5 + $0xb18] sm:$0xff]  ;;  %v6605_v21 = vcombine.high %v1950_v14, %v1954_v61 }
 0x2d7   :  { %5278 = vmatprep.subr.bf16.mxu1 %v6543_v18  ;;  %v1955_v17 = vld [vmem:[#allocation5 + $0xb38] sm:$0xff]  ;;  %v6596_v18 = vcombine.low %v1942_v6, %v1946_v7  ;;  %v6653_v7 = vcombine.high %v1998_v1, %v2002_v2 }
 0x2d8   :  { %v6607_v22 = vcombine.high %v1951_v15, %v1955_v17  ;;  %v6606_v28 = vcombine.low %v1951_v15, %v1955_v17  ;;  %v2014_v15 = vld [vmem:[#allocation5 + $0xd10] sm:$0xff] }
 0x2d9   :  { %5107 = vmatpush1.bf16.msra.mxu0 %v6540_v24  ;;  %v1962_v24 = vld [vmem:[#allocation5 + $0xb70] sm:$0xff] }
 0x2da   :  { %5279 = vmatpush1.bf16.msra.mxu1 %v6542_v25  ;;  %5108 = vmatprep.subr.bf16.mxu0 %v6549_v26  ;;  %v1959_v25 = vld [vmem:[#allocation5 + $0xb58] sm:$0xff]  ;;  %v6613_v29 = vcombine.high %v1958_v23, %v1962_v24  ;;  %v2018_v17 = vld [vmem:[#allocation5 + $0xd30] sm:$0xff] }
 0x2db   :  { %5280 = vmatprep.subr.bf16.mxu1 %v6551_v27  ;;  %v1963_v26 = vld [vmem:[#allocation5 + $0xb78] sm:$0xff]  ;;  %v6604_v27 = vcombine.low %v1950_v14, %v1954_v61 }
 0x2dc   :  { %v6615_v30 = vcombine.high %v1959_v25, %v1963_v26  ;;  %v6614_v37 = vcombine.low %v1959_v25, %v1963_v26  ;;  %v2026_v25 = vld [vmem:[#allocation5 + $0xd70] sm:$0xff]  ;;  %v2023_v26 = vld [vmem:[#allocation5 + $0xd58] sm:$0xff] }
 0x2dd   :  { %5109 = vmatpush1.bf16.msra.mxu0 %v6548_v32  ;;  %v1970_v32 = vld [vmem:[#allocation5 + $0xbb0] sm:$0xff] }
 0x2de   :  { %5281 = vmatpush1.bf16.msra.mxu1 %v6550_v33  ;;  %5110 = vmatprep.subr.bf16.mxu0 %v6557_v34  ;;  %v1967_v33 = vld [vmem:[#allocation5 + $0xb98] sm:$0xff]  ;;  %v6621_v39 = vcombine.high %v1966_v31, %v1970_v32 }
 0x2df   :  { %5282 = vmatprep.subr.bf16.mxu1 %v6559_v35  ;;  %v1971_v34 = vld [vmem:[#allocation5 + $0xbb8] sm:$0xff]  ;;  %v6612_v35 = vcombine.low %v1958_v23, %v1962_v24  ;;  %v2022_v24 = vld [vmem:[#allocation5 + $0xd50] sm:$0xff] }
 0x2e0   :  { %v6623_v40 = vcombine.high %v1967_v33, %v1971_v34  ;;  %v6622_v46 = vcombine.low %v1967_v33, %v1971_v34  ;;  %v2034_v33 = vld [vmem:[#allocation5 + $0xdb0] sm:$0xff]  ;;  %v2031_v34 = vld [vmem:[#allocation5 + $0xd98] sm:$0xff] }
 0x2e1   :  { %5111 = vmatpush1.bf16.msra.mxu0 %v6556_v42  ;;  %v1978_v42 = vld [vmem:[#allocation5 + $0xbf0] sm:$0xff] }
 0x2e2   :  { %5283 = vmatpush1.bf16.msra.mxu1 %v6558_v43  ;;  %5112 = vmatprep.subr.bf16.mxu0 %v6565_v44  ;;  %v1975_v43 = vld [vmem:[#allocation5 + $0xbd8] sm:$0xff]  ;;  %v6629_v48 = vcombine.high %v1974_v41, %v1978_v42 }
 0x2e3   :  { %5284 = vmatprep.subr.bf16.mxu1 %v6567_v45  ;;  %v1979_v44 = vld [vmem:[#allocation5 + $0xbf8] sm:$0xff]  ;;  %v6620_v45 = vcombine.low %v1966_v31, %v1970_v32  ;;  %v2030_v32 = vld [vmem:[#allocation5 + $0xd90] sm:$0xff] }
 0x2e4   :  { %v6631_v53 = vcombine.high %v1975_v43, %v1979_v44  ;;  %v6630_v56 = vcombine.low %v1975_v43, %v1979_v44  ;;  %v2038_v43 = vld [vmem:[#allocation5 + $0xdd0] sm:$0xff] }
 0x2e5   :  { %5113 = vmatpush1.bf16.msra.mxu0 %v6564_v50  ;;  %v1986_v50 = vld [vmem:[#allocation5 + $0xc30] sm:$0xff] }
 0x2e6   :  { %5285 = vmatpush1.bf16.msra.mxu1 %v6566_v51  ;;  %5114 = vmatprep.subr.bf16.mxu0 %v6573_v54  ;;  %v1983_v51 = vld [vmem:[#allocation5 + $0xc18] sm:$0xff]  ;;  %v6637_v38 = vcombine.high %v1982_v49, %v1986_v50  ;;  %v2042_v44 = vld [vmem:[#allocation5 + $0xdf0] sm:$0xff] }
 0x2e7   :  { %5286 = vmatprep.subr.bf16.mxu1 %v6575_v55  ;;  %v1987_v54 = vld [vmem:[#allocation5 + $0xc38] sm:$0xff]  ;;  %v6628_v55 = vcombine.low %v1974_v41, %v1978_v42 }
 0x2e8   :  { %v6639_v20 = vcombine.high %v1983_v51, %v1987_v54  ;;  %v6638_v36 = vcombine.low %v1983_v51, %v1987_v54  ;;  %v6684_v51 = vcombine.low %v2030_v32, %v2034_v33 }
 0x2e9   :  { %5115 = vmatpush1.bf16.msra.mxu0 %v6572_v59  ;;  %v1994_v59 = vld [vmem:[#allocation5 + $0xc70] sm:$0xff] }
 0x2ea   :  { %5287 = vmatpush1.bf16.msra.mxu1 %v6574_v60  ;;  %5116 = vmatprep.subr.bf16.mxu0 %v6581_v0  ;;  %v6636_v60 = vcombine.low %v1982_v49, %v1986_v50  ;;  %v1991_v0 = vld [vmem:[#allocation5 + $0xc58] sm:$0xff]  ;;  %v6645_v63 = vcombine.high %v1990_v58, %v1994_v59 }
 0x2eb   :  { %5288 = vmatprep.subr.bf16.mxu1 %v6583_v62  ;;  %v1995_v62 = vld [vmem:[#allocation5 + $0xc78] sm:$0xff] }
 0x2ec   :  { %v6646_v6 = vcombine.low %v1991_v0, %v1995_v62 }
 0x2ed   :  { %5117 = vmatpush1.bf16.msra.mxu0 %v6580_v3  ;;  %v6647_v3 = vcombine.high %v1991_v0, %v1995_v62  ;;  %v2046_v62 = vld [vmem:[#allocation5 + $0xe10] sm:$0xff] }
 0x2ee   :  { %5289 = vmatpush1.bf16.msra.mxu1 %v6582_v4  ;;  %5118 = vmatprep.subr.bf16.mxu0 %v6589_v5  ;;  %v1999_v4 = vld [vmem:[#allocation5 + $0xc98] sm:$0xff] }
 0x2ef   :  { %5290 = vmatprep.subr.bf16.mxu1 %v6591_v57  ;;  %v2003_v5 = vld [vmem:[#allocation5 + $0xcb8] sm:$0xff]  ;;  %v6644_v57 = vcombine.low %v1990_v58, %v1994_v59 }
 0x2f0   :  { %v6655_v52 = vcombine.high %v1999_v4, %v2003_v5 }
 0x2f1   :  { %5119 = vmatpush1.bf16.msra.mxu0 %v6588_v9  ;;  %v2010_v9 = vld [vmem:[#allocation5 + $0xcf0] sm:$0xff] }
 0x2f2   :  { %5291 = vmatpush1.bf16.msra.mxu1 %v6590_v10  ;;  %5120 = vmatprep.subr.bf16.mxu0 %v6597_v12  ;;  %v2007_v10 = vld [vmem:[#allocation5 + $0xcd8] sm:$0xff]  ;;  %v6661_v14 = vcombine.high %v2006_v8, %v2010_v9 }
 0x2f3   :  { %5292 = vmatprep.subr.bf16.mxu1 %v6599_v13  ;;  %v2011_v12 = vld [vmem:[#allocation5 + $0xcf8] sm:$0xff]  ;;  %v6652_v13 = vcombine.low %v1998_v1, %v2002_v2 }
 0x2f4   :  { %v6663_v61 = vcombine.high %v2007_v10, %v2011_v12  ;;  %v2047_v1 = vld [vmem:[#allocation5 + $0xe18] sm:$0xff] }
 0x2f5   :  { %5121 = vmatpush1.bf16.msra.mxu0 %v6596_v18  ;;  %v2015_v18 = vld [vmem:[#allocation5 + $0xd18] sm:$0xff] }
 0x2f6   :  { %5293 = vmatpush1.bf16.msra.mxu1 %v6598_v19  ;;  %5122 = vmatprep.subr.bf16.mxu0 %v6605_v21  ;;  %v2019_v19 = vld [vmem:[#allocation5 + $0xd38] sm:$0xff]  ;;  %v6662_v21 = vcombine.low %v2007_v10, %v2011_v12 }
 0x2f7   :  { %5294 = vmatprep.subr.bf16.mxu1 %v6607_v22  ;;  %v6669_v22 = vcombine.high %v2014_v15, %v2018_v17  ;;  %v6671_v23 = vcombine.high %v2015_v18, %v2019_v19  ;;  %v2051_v2 = vld [vmem:[#allocation5 + $0xe38] sm:$0xff] }
 0x2f8   :  { %v6702_v10 = vcombine.low %v2047_v1, %v2051_v2 }
 0x2f9   :  { %5123 = vmatpush1.bf16.msra.mxu0 %v6604_v27  ;;  %v2027_v27 = vld [vmem:[#allocation5 + $0xd78] sm:$0xff] }
 0x2fa   :  { %5295 = vmatpush1.bf16.msra.mxu1 %v6606_v28  ;;  %5124 = vmatprep.subr.bf16.mxu0 %v6613_v29  ;;  %v6668_v28 = vcombine.low %v2014_v15, %v2018_v17  ;;  %v6670_v29 = vcombine.low %v2015_v18, %v2019_v19  ;;  %v6679_v31 = vcombine.high %v2023_v26, %v2027_v27  ;;  %v2067_v15 = vld [vmem:[#allocation5 + $0xeb8] sm:$0xff] }
 0x2fb   :  { %5296 = vmatprep.subr.bf16.mxu1 %v6615_v30  ;;  %v6677_v30 = vcombine.high %v2022_v24, %v2026_v25 }
 0x2fd   :  { %5125 = vmatpush1.bf16.msra.mxu0 %v6612_v35  ;;  %v2035_v35 = vld [vmem:[#allocation5 + $0xdb8] sm:$0xff] }
 0x2fe   :  { %5297 = vmatpush1.bf16.msra.mxu1 %v6614_v37  ;;  %5126 = vmatprep.subr.bf16.mxu0 %v6621_v39  ;;  %v6676_v37 = vcombine.low %v2022_v24, %v2026_v25  ;;  %v6678_v39 = vcombine.low %v2023_v26, %v2027_v27  ;;  %v6687_v42 = vcombine.high %v2031_v34, %v2035_v35  ;;  %v2075_v24 = vld [vmem:[#allocation5 + $0xef8] sm:$0xff] }
 0x2ff   :  { %5298 = vmatprep.subr.bf16.mxu1 %v6623_v40  ;;  %v6685_v40 = vcombine.high %v2030_v32, %v2034_v33  ;;  %v2083_v32 = vld [vmem:[#allocation5 + $0xf38] sm:$0xff] }
 0x301   :  { %5127 = vmatpush1.bf16.msra.mxu0 %v6620_v45 }
 0x302   :  { %5299 = vmatpush1.bf16.msra.mxu1 %v6622_v46  ;;  %5128 = vmatprep.subr.bf16.mxu0 %v6629_v48  ;;  %v2039_v48 = vld [vmem:[#allocation5 + $0xdd8] sm:$0xff] }
 0x303   :  { %5300 = vmatprep.subr.bf16.mxu1 %v6631_v53  ;;  %v2043_v53 = vld [vmem:[#allocation5 + $0xdf8] sm:$0xff] }
 0x304   :  { %v6695_v0 = vcombine.high %v2039_v48, %v2043_v53 }
 0x305   :  { %5129 = vmatpush1.bf16.msra.mxu0 %v6628_v55 }
 0x306   :  { %5301 = vmatpush1.bf16.msra.mxu1 %v6630_v56  ;;  %5141 = vmatprep.subr.bf16.mxu0 %v6637_v38  ;;  %v6686_v38 = vcombine.low %v2031_v34, %v2035_v35 }
 0x307   :  { %5313 = vmatprep.subr.bf16.mxu1 %v6639_v20  ;;  %v6693_v20 = vcombine.high %v2038_v43, %v2042_v44 }
 0x308   :  { %5131 = vmatmul.mubr.bf16.vlgmr.msra.gmra.mrb[12].mxu0 %v7295_v47 }
 0x309   :  { %5303 = vmatmul.mubr.bf16.vlgmr.msra.gmra.mrb[12].mxu1 %v7295_v47  ;;  %5142 = vmatpush1.bf16.msra.mxu0 %v6636_v60  ;;  %v6654_v47 = vcombine.low %v1999_v4, %v2003_v5  ;;  %v6694_v4 = vcombine.low %v2039_v48, %v2043_v53 }
 0x30a   :  { %5173 = vmatprep.mubr.bf16.mxu0 %v7303_v16  ;;  %5314 = vmatpush1.bf16.msra.mxu1 %v6638_v36  ;;  %v2050_v36 = vld [vmem:[#allocation5 + $0xe30] sm:$0xff] }
 0x30b   :  { %5345 = vmatprep.mubr.bf16.mxu1 %v7303_v16  ;;  %5143 = vmatprep.subr.bf16.mxu0 %v6645_v63  ;;  %v6660_v16 = vcombine.low %v2006_v8, %v2010_v9  ;;  %v6701_v5 = vcombine.high %v2046_v62, %v2050_v36  ;;  %v2059_v8 = vld [vmem:[#allocation5 + $0xe78] sm:$0xff]  ;;  %v6700_v9 = vcombine.low %v2046_v62, %v2050_v36 }
 0x30c   :  { %5315 = vmatprep.subr.bf16.mxu1 %v6647_v3  ;;  %v6692_v3 = vcombine.low %v2038_v43, %v2042_v44  ;;  %v2091_v43 = vld [vmem:[#allocation5 + $0xf78] sm:$0xff] }
 0x30d   :  { %5144 = vmatpush1.bf16.msra.mxu0 %v6644_v57  ;;  %v6703_v57 = vcombine.high %v2047_v1, %v2051_v2  ;;  %v2099_v62 = vld [vmem:[#allocation5 + $0xfb8] sm:$0xff] }
 0x30e   :  { %5316 = vmatpush1.bf16.msra.mxu1 %v6646_v6  ;;  %5145 = vmatprep.subr.bf16.mxu0 %v6653_v7  ;;  %v2054_v6 = vld [vmem:[#allocation5 + $0xe50] sm:$0xff] }
 0x30f   :  { %5317 = vmatprep.subr.bf16.mxu1 %v6655_v52  ;;  %v2058_v7 = vld [vmem:[#allocation5 + $0xe70] sm:$0xff]  ;;  %v2055_v52 = vld [vmem:[#allocation5 + $0xe58] sm:$0xff] }
 0x310   :  { %v6709_v12 = vcombine.high %v2054_v6, %v2058_v7  ;;  %v6708_v17 = vcombine.low %v2054_v6, %v2058_v7  ;;  %v6710_v18 = vcombine.low %v2055_v52, %v2059_v8  ;;  %v2107_v6 = vld [vmem:[#allocation5 + $0xff8] sm:$0xff] }
 0x311   :  { %5146 = vmatpush1.bf16.msra.mxu0 %v6652_v13  ;;  %v6711_v13 = vcombine.high %v2055_v52, %v2059_v8 }
 0x312   :  { %5318 = vmatpush1.bf16.msra.mxu1 %v6654_v47  ;;  %5147 = vmatprep.subr.bf16.mxu0 %v6661_v14  ;;  %v2062_v47 = vld [vmem:[#allocation5 + $0xe90] sm:$0xff] }
 0x313   :  { %5319 = vmatprep.subr.bf16.mxu1 %v6663_v61  ;;  %v2066_v14 = vld [vmem:[#allocation5 + $0xeb0] sm:$0xff]  ;;  %v2063_v61 = vld [vmem:[#allocation5 + $0xe98] sm:$0xff] }
 0x314   :  { %v6717_v19 = vcombine.high %v2062_v47, %v2066_v14  ;;  %v6716_v25 = vcombine.low %v2062_v47, %v2066_v14  ;;  %v6718_v26 = vcombine.low %v2063_v61, %v2067_v15  ;;  %v6987_v47 = vld [vmem:[#allocation7 + $0xc0] sm:$0xff]  }
 0x315   :  { %5148 = vmatpush1.bf16.msra.mxu0 %v6660_v16  ;;  %v6719_v16 = vcombine.high %v2063_v61, %v2067_v15  ;;  %v6988_v14 = vld [vmem:[#allocation7] sm:$0xff]   ;;  %v6990_v15 = vld [vmem:[#allocation7 + $0x48] sm:$0xff]  }
 0x316   :  { %5320 = vmatpush1.bf16.msra.mxu1 %v6662_v21  ;;  %5149 = vmatprep.subr.bf16.mxu0 %v6669_v22  ;;  %v2070_v21 = vld [vmem:[#allocation5 + $0xed0] sm:$0xff]  ;;  %v6989_v61 = vld [vmem:[#allocation7 + $0x80] sm:$0xff]  }
 0x317   :  { %5321 = vmatprep.subr.bf16.mxu1 %v6671_v23  ;;  %v2074_v22 = vld [vmem:[#allocation5 + $0xef0] sm:$0xff]  ;;  %v2071_v23 = vld [vmem:[#allocation5 + $0xed8] sm:$0xff] }
 0x318   :  { %v6725_v27 = vcombine.high %v2070_v21, %v2074_v22  ;;  %v6724_v33 = vcombine.low %v2070_v21, %v2074_v22  ;;  %v6726_v34 = vcombine.low %v2071_v23, %v2075_v24  ;;  %v6995_v21 = vld [vmem:[#allocation7 + $0xd0] sm:$0xff]  }
 0x319   :  { %5150 = vmatpush1.bf16.msra.mxu0 %v6668_v28  ;;  %v6727_v28 = vcombine.high %v2071_v23, %v2075_v24  ;;  %v6996_v22 = vld [vmem:[#allocation7 + $0x10] sm:$0xff]   ;;  %v6998_v23 = vld [vmem:[#allocation7 + $0x58] sm:$0xff]  }
 0x31a   :  { %5322 = vmatpush1.bf16.msra.mxu1 %v6670_v29  ;;  %5151 = vmatprep.subr.bf16.mxu0 %v6677_v30  ;;  %v2078_v29 = vld [vmem:[#allocation5 + $0xf10] sm:$0xff]  ;;  %v6999_v24 = vld [vmem:[#allocation7 + $0xd8] sm:$0xff]  }
 0x31b   :  { %v7325_v41 = vpop.f32.mrb[8].mxu0  ;;  %5323 = vmatprep.subr.bf16.mxu1 %v6679_v31  ;;  %v2082_v30 = vld [vmem:[#allocation5 + $0xf30] sm:$0xff]  ;;  %v2079_v31 = vld [vmem:[#allocation5 + $0xf18] sm:$0xff] }
 0x31c   :  { %v7327_v45 = vpop.f32.mrb[8].mxu1  ;;  %v7329_v46 = vpop.f32.mrb[9].mxu0  ;;  %v6733_v35 = vcombine.high %v2078_v29, %v2082_v30  ;;  %v6732_v44 = vcombine.low %v2078_v29, %v2082_v30  ;;  %v6734_v48 = vcombine.low %v2079_v31, %v2083_v32  ;;  %v7010_v29 = vld [vmem:[#allocation7 + $0x70] sm:$0xff]  }
 0x31d   :  { %v7331_v49 = vpop.f32.mrb[9].mxu1  ;;  %v7333_v50 = vpop.f32.mrb[10].mxu0  ;;  %5152 = vmatpush1.bf16.msra.mxu0 %v6676_v37  ;;  %v6735_v37 = vcombine.high %v2079_v31, %v2083_v32  ;;  %v7011_v30 = vld [vmem:[#allocation7 + $0xf0] sm:$0xff]  }
 0x31e   :  { %v5356_v54 = vpack.c.bf16 %v7333_v50, %v7325_v41  ;;  %v7337_v55 = vpop.f32.mrb[10].mxu1  ;;  %5324 = vmatpush1.bf16.msra.mxu1 %v6678_v39  ;;  %v7339_v56 = vpop.f32.mrb[11].mxu0  ;;  %5153 = vmatprep.subr.bf16.mxu0 %v6685_v40  ;;  %v2086_v39 = vld [vmem:[#allocation5 + $0xf50] sm:$0xff]  ;;  %v7031_v41 = vld [vmem:[#allocation7 + $0x1d8] sm:$0xff]  }
 0x31f   :  { %v5358_v58 = vpack.c.bf16 %v7337_v55, %v7327_v45  ;;  %v5357_v59 = vpack.c.bf16 %v7339_v56, %v7329_v46  ;;  %v7345_v60 = vpop.f32.mrb[11].mxu1  ;;  %5325 = vmatprep.subr.bf16.mxu1 %v6687_v42  ;;  %v2090_v40 = vld [vmem:[#allocation5 + $0xf70] sm:$0xff]  ;;  %v2087_v42 = vld [vmem:[#allocation5 + $0xf58] sm:$0xff]  ;;  %v7035_v55 = vld [vmem:[#allocation7 + $0x1e0] sm:$0xff]  }
 0x320   :  { %v5359_v63 = vpack.c.bf16 %v7345_v60, %v7331_v49  ;;  %v6741_v53 = vcombine.high %v2086_v39, %v2090_v40  ;;  %v6740_v36 = vcombine.low %v2086_v39, %v2090_v40  ;;  %v6742_v1 = vcombine.low %v2087_v42, %v2091_v43  ;;  %v7000_v46 = vld [vmem:[#allocation7 + $0x18] sm:$0xff]   ;;  %v7003_v49 = vld [vmem:[#allocation7 + $0xe0] sm:$0xff]   ;;  %v7012_v31 = vld [vmem:[#allocation7 + $0x30] sm:$0xff]  }
 0x321   :  { %5154 = vmatpush1.bf16.msra.mxu0 %v6684_v51  ;;  %v6743_v51 = vcombine.high %v2087_v42, %v2091_v43  ;;  %v7001_v56 = vld [vmem:[#allocation7 + $0x98] sm:$0xff]   ;;  %v7004_v60 = vld [vmem:[#allocation7 + $0x20] sm:$0xff]   ;;  %v7013_v32 = vld [vmem:[#allocation7 + $0xb0] sm:$0xff]  }
 0x322   :  { %5326 = vmatpush1.bf16.msra.mxu1 %v6686_v38  ;;  %5155 = vmatprep.subr.bf16.mxu0 %v6693_v20  ;;  %v2094_v38 = vld [vmem:[#allocation5 + $0xf90] sm:$0xff]  ;;  %v7018_v39 = vld [vmem:[#allocation7 + $0x140] sm:$0xff]   ;;  %v7032_v50 = vld [vmem:[#allocation7 + $0x118] sm:$0xff]  }
 0x323   :  { %5327 = vmatprep.subr.bf16.mxu1 %v6695_v0  ;;  %v2098_v20 = vld [vmem:[#allocation5 + $0xfb0] sm:$0xff]  ;;  %v2095_v0 = vld [vmem:[#allocation5 + $0xf98] sm:$0xff]  ;;  %v7019_v40 = vld [vmem:[#allocation7 + $0x1c0] sm:$0xff]  }
 0x324   :  { %v6749_v2 = vcombine.high %v2094_v38, %v2098_v20  ;;  %v6748_v7 = vcombine.low %v2094_v38, %v2098_v20  ;;  %v6750_v52 = vcombine.low %v2095_v0, %v2099_v62  ;;  %v7020_v42 = vld [vmem:[#allocation7 + $0x100] sm:$0xff]   ;;  %v7026_v38 = vld [vmem:[#allocation7 + $0x150] sm:$0xff]   ;;  %v7033_v45 = vld [vmem:[#allocation7 + $0x198] sm:$0xff]  }
 0x325   :  { %5156 = vmatpush1.bf16.msra.mxu0 %v6692_v3  ;;  %v6751_v3 = vcombine.high %v2095_v0, %v2099_v62  ;;  %v7021_v43 = vld [vmem:[#allocation7 + $0x180] sm:$0xff]   ;;  %v7027_v20 = vld [vmem:[#allocation7 + $0x1d0] sm:$0xff]  }
 0x326   :  { %5328 = vmatpush1.bf16.msra.mxu1 %v6694_v4  ;;  %5157 = vmatprep.subr.bf16.mxu0 %v6701_v5  ;;  %v2102_v4 = vld [vmem:[#allocation5 + $0xfd0] sm:$0xff] }
 0x327   :  { %5329 = vmatprep.subr.bf16.mxu1 %v6703_v57  ;;  %v2106_v5 = vld [vmem:[#allocation5 + $0xff0] sm:$0xff]  ;;  %v2103_v57 = vld [vmem:[#allocation5 + $0xfd8] sm:$0xff] }
 0x328   :  { %v6757_v8 = vcombine.high %v2102_v4, %v2106_v5  ;;  %v7028_v0 = vld [vmem:[#allocation7 + $0x110] sm:$0xff]  }
 0x329   :  { %5158 = vmatpush1.bf16.msra.mxu0 %v6700_v9  ;;  %v6759_v9 = vcombine.high %v2103_v57, %v2107_v6  ;;  %v7029_v62 = vld [vmem:[#allocation7 + $0x190] sm:$0xff]  }
 0x32a   :  { %5330 = vmatpush1.bf16.msra.mxu1 %v6702_v10  ;;  %5159 = vmatprep.subr.bf16.mxu0 %v6709_v12  ;;  %v6756_v10 = vcombine.low %v2102_v4, %v2106_v5  ;;  %v6758_v12 = vcombine.low %v2103_v57, %v2107_v6  ;;  %v7040_v4 = vld [vmem:[#allocation7 + $0x128] sm:$0xff]   ;;  %v7042_v57 = vld [vmem:[#allocation7 + $0x170] sm:$0xff]  }
 0x32b   :  { %5331 = vmatprep.subr.bf16.mxu1 %v6711_v13  ;;  %v6986_v13 = vld [vmem:[#allocation7 + $0x40] sm:$0xff]   ;;  %v7041_v5 = vld [vmem:[#allocation7 + $0x1a8] sm:$0xff]   ;;  %v7043_v6 = vld [vmem:[#allocation7 + $0x1f0] sm:$0xff]  }
 0x32d   :  { %5160 = vmatpush1.bf16.msra.mxu0 %v6708_v17  ;;  %v6991_v17 = vld [vmem:[#allocation7 + $0xc8] sm:$0xff]  }
 0x32e   :  { %5332 = vmatpush1.bf16.msra.mxu1 %v6710_v18  ;;  %5161 = vmatprep.subr.bf16.mxu0 %v6717_v19  ;;  %v6992_v18 = vld [vmem:[#allocation7 + $0x8] sm:$0xff]  }
 0x32f   :  { %5333 = vmatprep.subr.bf16.mxu1 %v6719_v16  ;;  %v6993_v19 = vld [vmem:[#allocation7 + $0x88] sm:$0xff]   ;;  %v6994_v16 = vld [vmem:[#allocation7 + $0x50] sm:$0xff]  }
 0x331   :  { %5162 = vmatpush1.bf16.msra.mxu0 %v6716_v25  ;;  %v7006_v25 = vld [vmem:[#allocation7 + $0x68] sm:$0xff]  }
 0x332   :  { %5334 = vmatpush1.bf16.msra.mxu1 %v6718_v26  ;;  %5163 = vmatprep.subr.bf16.mxu0 %v6725_v27  ;;  %v7007_v26 = vld [vmem:[#allocation7 + $0xe8] sm:$0xff]  }
 0x333   :  { %5335 = vmatprep.subr.bf16.mxu1 %v6727_v28  ;;  %v7008_v27 = vld [vmem:[#allocation7 + $0x28] sm:$0xff]  }
 0x334   :  { %v7009_v28 = vld [vmem:[#allocation7 + $0xa8] sm:$0xff]  }
 0x335   :  { %5164 = vmatpush1.bf16.msra.mxu0 %v6724_v33  ;;  %v7014_v33 = vld [vmem:[#allocation7 + $0x78] sm:$0xff]  }
 0x336   :  { %5336 = vmatpush1.bf16.msra.mxu1 %v6726_v34  ;;  %5165 = vmatprep.subr.bf16.mxu0 %v6733_v35  ;;  %v7015_v34 = vld [vmem:[#allocation7 + $0xf8] sm:$0xff]  }
 0x337   :  { %5337 = vmatprep.subr.bf16.mxu1 %v6735_v37  ;;  %v7016_v35 = vld [vmem:[#allocation7 + $0x38] sm:$0xff]  }
 0x338   :  { %v7017_v37 = vld [vmem:[#allocation7 + $0xb8] sm:$0xff]  }
 0x339   :  { %5166 = vmatpush1.bf16.msra.mxu0 %v6732_v44  ;;  %v7022_v44 = vld [vmem:[#allocation7 + $0x148] sm:$0xff]  }
 0x33a   :  { %5338 = vmatpush1.bf16.msra.mxu1 %v6734_v48  ;;  %5167 = vmatprep.subr.bf16.mxu0 %v6741_v53  ;;  %v7023_v48 = vld [vmem:[#allocation7 + $0x1c8] sm:$0xff]  }
 0x33b   :  { %5339 = vmatprep.subr.bf16.mxu1 %v6743_v51  ;;  %v7024_v53 = vld [vmem:[#allocation7 + $0x108] sm:$0xff]  }
 0x33c   :  { %v7025_v51 = vld [vmem:[#allocation7 + $0x188] sm:$0xff]  }
 0x33d   :  { %5168 = vmatpush1.bf16.msra.mxu0 %v6740_v36  ;;  %v7030_v36 = vld [vmem:[#allocation7 + $0x158] sm:$0xff]  }
 0x33e   :  { %5340 = vmatpush1.bf16.msra.mxu1 %v6742_v1  ;;  %5169 = vmatprep.subr.bf16.mxu0 %v6749_v2  ;;  %v7037_v1 = vld [vmem:[#allocation7 + $0x1a0] sm:$0xff]   ;;  %v7038_v2 = vld [vmem:[#allocation7 + $0x168] sm:$0xff]  }
 0x33f   :  { %5341 = vmatprep.subr.bf16.mxu1 %v6751_v3  ;;  %v7039_v3 = vld [vmem:[#allocation7 + $0x1e8] sm:$0xff]  }
 0x341   :  { %5170 = vmatpush1.bf16.msra.mxu0 %v6748_v7  ;;  %v7044_v7 = vld [vmem:[#allocation7 + $0x130] sm:$0xff]  }
 0x342   :  { %5342 = vmatpush1.bf16.msra.mxu1 %v6750_v52  ;;  %5171 = vmatprep.subr.bf16.mxu0 %v6757_v8  ;;  %v7045_v52 = vld [vmem:[#allocation7 + $0x1b0] sm:$0xff]   ;;  %v7046_v8 = vld [vmem:[#allocation7 + $0x178] sm:$0xff]  }
 0x343   :  { %5343 = vmatprep.subr.bf16.mxu1 %v6759_v9  ;;  %v7047_v9 = vld [vmem:[#allocation7 + $0x1f8] sm:$0xff]  }
 0x345   :  { %5172 = vmatpush1.bf16.msra.mxu0 %v6756_v10  ;;  %v7048_v10 = vld [vmem:[#allocation7 + $0x138] sm:$0xff]  }
 0x346   :  { %5344 = vmatpush1.bf16.msra.mxu1 %v6758_v12  ;;  %6825 = vmatprep.subr.bf16.mxu0 %v6986_v13  ;;  %v7049_v12 = vld [vmem:[#allocation7 + $0x1b8] sm:$0xff]  }
 0x347   :  { %6847 = vmatprep.subr.bf16.mxu1 %v6987_v47 }
 0x348   :  { %5174 = vmatmul.mubr.bf16.vlgmr.msra.gmra.mrb[12].mxu0 %v7301_v11 }
 0x349   :  { %5346 = vmatmul.mubr.bf16.vlgmr.msra.gmra.mrb[12].mxu1 %v7301_v11  ;;  %6826 = vmatpush3.bf16.msra.mxu0 %v6988_v14  ;;  %v6997_v11 = vld [vmem:[#allocation7 + $0x90] sm:$0xff]  }
 0x34a   :  { %5915 = vmatprep.mubr.bf16.mxu0 %v5357_v59  ;;  %6848 = vmatpush3.bf16.msra.mxu1 %v6989_v61  ;;  %v7002_v59 = vld [vmem:[#allocation7 + $0x60] sm:$0xff]  }
 0x34b   :  { %5956 = vmatprep.mubr.bf16.mxu1 %v5359_v63  ;;  %6827 = vmatprep.subr.bf16.mxu0 %v6990_v15  ;;  %v7005_v63 = vld [vmem:[#allocation7 + $0xa0] sm:$0xff]  }
 0x34c   :  { %6849 = vmatprep.subr.bf16.mxu1 %v6991_v17 }
 0x34d   :  { %6828 = vmatpush3.bf16.msra.mxu0 %v6992_v18 }
 0x34e   :  { %6850 = vmatpush3.bf16.msra.mxu1 %v6993_v19  ;;  %6829 = vmatprep.subr.bf16.mxu0 %v6994_v16 }
 0x34f   :  { %6851 = vmatprep.subr.bf16.mxu1 %v6995_v21 }
 0x351   :  { %6830 = vmatpush3.bf16.msra.mxu0 %v6996_v22 }
 0x352   :  { %6852 = vmatpush3.bf16.msra.mxu1 %v6997_v11  ;;  %6831 = vmatprep.subr.bf16.mxu0 %v6998_v23 }
 0x353   :  { %6853 = vmatprep.subr.bf16.mxu1 %v6999_v24 }
 0x355   :  { %6832 = vmatpush3.bf16.msra.mxu0 %v7000_v46  ;;  %v6760_v46 = vld [vmem:[#allocation8] ss:$0 sm:$0xff] }
 0x356   :  { %6854 = vmatpush3.bf16.msra.mxu1 %v7001_v56  ;;  %6833 = vmatprep.subr.bf16.mxu0 %v7002_v59 }
 0x357   :  { %6855 = vmatprep.subr.bf16.mxu1 %v7003_v49 }
 0x359   :  { %6834 = vmatpush3.bf16.msra.mxu0 %v7004_v60 }
 0x35a   :  { %6856 = vmatpush3.bf16.msra.mxu1 %v7005_v63  ;;  %6835 = vmatprep.subr.bf16.mxu0 %v7006_v25 }
 0x35b   :  { %6857 = vmatprep.subr.bf16.mxu1 %v7007_v26 }
 0x35d   :  { %6836 = vmatpush3.bf16.msra.mxu0 %v7008_v27 }
 0x35e   :  { %6858 = vmatpush3.bf16.msra.mxu1 %v7009_v28  ;;  %6837 = vmatprep.subr.bf16.mxu0 %v7010_v29 }
 0x35f   :  { %6859 = vmatprep.subr.bf16.mxu1 %v7011_v30 }
 0x361   :  { %6838 = vmatpush3.bf16.msra.mxu0 %v7012_v31 }
 0x362   :  { %6860 = vmatpush3.bf16.msra.mxu1 %v7013_v32  ;;  %6839 = vmatprep.subr.bf16.mxu0 %v7014_v33 }
 0x363   :  { %6861 = vmatprep.subr.bf16.mxu1 %v7015_v34 }
 0x365   :  { %6840 = vmatpush3.bf16.msra.mxu0 %v7016_v35 }
 0x366   :  { %6862 = vmatpush3.bf16.msra.mxu1 %v7017_v37  ;;  %6869 = vmatprep.subr.bf16.mxu0 %v7018_v39 }
 0x367   :  { %6891 = vmatprep.subr.bf16.mxu1 %v7019_v40 }
 0x368   :  { %5916 = vmatmul.mubr.bf16.vlgmr.msra.gmra.mrb[16].mxu0 %v5356_v54  ;;  %v7034_v54 = vld [vmem:[#allocation7 + $0x160] sm:$0xff]  }
 0x369   :  { %5957 = vmatmul.mubr.bf16.vlgmr.msra.gmra.mrb[16].mxu1 %v5358_v58  ;;  %6870 = vmatpush3.bf16.msra.mxu0 %v7020_v42  ;;  %v7036_v58 = vld [vmem:[#allocation7 + $0x120] sm:$0xff]  }
 0x36a   :  { %6892 = vmatpush3.bf16.msra.mxu1 %v7021_v43  ;;  %6871 = vmatprep.subr.bf16.mxu0 %v7022_v44 }
 0x36b   :  { %6893 = vmatprep.subr.bf16.mxu1 %v7023_v48 }
 0x36d   :  { %6872 = vmatpush3.bf16.msra.mxu0 %v7024_v53 }
 0x36e   :  { %6894 = vmatpush3.bf16.msra.mxu1 %v7025_v51  ;;  %6873 = vmatprep.subr.bf16.mxu0 %v7026_v38 }
 0x36f   :  { %6895 = vmatprep.subr.bf16.mxu1 %v7027_v20 }
 0x371   :  { %6874 = vmatpush3.bf16.msra.mxu0 %v7028_v0 }
 0x372   :  { %6896 = vmatpush3.bf16.msra.mxu1 %v7029_v62  ;;  %6875 = vmatprep.subr.bf16.mxu0 %v7030_v36 }
 0x373   :  { %6897 = vmatprep.subr.bf16.mxu1 %v7031_v41 }
 0x375   :  { %6876 = vmatpush3.bf16.msra.mxu0 %v7032_v50 }
 0x376   :  { %6898 = vmatpush3.bf16.msra.mxu1 %v7033_v45  ;;  %6877 = vmatprep.subr.bf16.mxu0 %v7034_v54 }
 0x377   :  { %6899 = vmatprep.subr.bf16.mxu1 %v7035_v55 }
 0x379   :  { %6878 = vmatpush3.bf16.msra.mxu0 %v7036_v58 }
 0x37a   :  { %6900 = vmatpush3.bf16.msra.mxu1 %v7037_v1  ;;  %6879 = vmatprep.subr.bf16.mxu0 %v7038_v2 }
 0x37b   :  { %6901 = vmatprep.subr.bf16.mxu1 %v7039_v3 }
 0x37d   :  { %6880 = vmatpush3.bf16.msra.mxu0 %v7040_v4 }
 0x37e   :  { %6902 = vmatpush3.bf16.msra.mxu1 %v7041_v5  ;;  %6881 = vmatprep.subr.bf16.mxu0 %v7042_v57 }
 0x37f   :  { %6903 = vmatprep.subr.bf16.mxu1 %v7043_v6 }
 0x381   :  { %6882 = vmatpush3.bf16.msra.mxu0 %v7044_v7 }
 0x382   :  { %6904 = vmatpush3.bf16.msra.mxu1 %v7045_v52  ;;  %6883 = vmatprep.subr.bf16.mxu0 %v7046_v8 }
 0x383   :  { %6905 = vmatprep.subr.bf16.mxu1 %v7047_v9 }
 0x385   :  { %6884 = vmatpush3.bf16.msra.mxu0 %v7048_v10 }
 0x386   :  { %6906 = vmatpush3.bf16.msra.mxu1 %v7049_v12 }
 0x41b   :  { %v5175_v13 = vpop.f32.mrb[12].mxu0 }
 0x41c   :  { %v5347_v47 = vpop.f32.mrb[12].mxu1  ;;  %v5177_v14 = vpop.f32.mrb[13].mxu0 }
 0x41d   :  { %v5349_v61 = vpop.f32.mrb[13].mxu1  ;;  %v5179_v15 = vpop.f32.mrb[14].mxu0 }
 0x41e   :  { %v5360_v17 = vpack.c.bf16 %v5179_v15, %v5175_v13  ;;  %v5351_v18 = vpop.f32.mrb[14].mxu1  ;;  %v5181_v19 = vpop.f32.mrb[15].mxu0 }
 0x41f   :  { %v5362_v16 = vpack.c.bf16 %v5351_v18, %v5347_v47  ;;  %v5361_v21 = vpack.c.bf16 %v5181_v19, %v5177_v14  ;;  %v5353_v22 = vpop.f32.mrb[15].mxu1 }
 0x420   :  { %v5363_v11 = vpack.c.bf16 %v5353_v22, %v5349_v61 }
 0x421   :  { %5997 = vmatprep.mubr.bf16.mxu0 %v5361_v21 }
 0x422   :  { %6038 = vmatprep.mubr.bf16.mxu1 %v5363_v11  ;;  %5998 = vmatmul.mubr.bf16.vlgmr.msra.gmra.mrb[20].mxu0 %v5360_v17 }
 0x423   :  { %6039 = vmatmul.mubr.bf16.vlgmr.msra.gmra.mrb[20].mxu1 %v5362_v16 }
 0x43b   :  { %v6841_v23 = vpop.f32.mrb[16].mxu0 }
 0x43c   :  { %v6863_v24 = vpop.f32.mrb[16].mxu1  ;;  %v6842_v56 = vpop.f32.mrb[17].mxu0 }
 0x43d   :  { %v6843_v59 = vadd.f32 %v6842_v56, %v6841_v23  ;;  %v6864_v49 = vpop.f32.mrb[17].mxu1  ;;  %v6844_v60 = vpop.f32.mrb[18].mxu0 }
 0x43e   :  { %v6865_v63 = vadd.f32 %v6864_v49, %v6863_v24  ;;  %v6866_v25 = vpop.f32.mrb[18].mxu1  ;;  %v6845_v26 = vpop.f32.mrb[19].mxu0 }
 0x43f   :  { %v5918_v27 = vadd.f32 %v6843_v59, %v6760_v46  ;;  %v6846_v28 = vadd.f32 %v6845_v26, %v6844_v60  ;;  %v6867_v29 = vpop.f32.mrb[19].mxu1 }
 0x440   :  { %v6868_v30 = vadd.f32 %v6867_v29, %v6866_v25 }
 0x441   :  { %v5959_v31 = vadd.f32 %v6865_v63, %v5918_v27  ;;  %v5921_v32 = vadd.f32 %v6846_v28, %v6760_v46 }
 0x443   :  { %v5962_v33 = vadd.f32 %v6868_v30, %v5921_v32 }
 0x4f5   :  { %v6885_v34 = vpop.f32.mrb[20].mxu0 }
 0x4f6   :  { %v6907_v35 = vpop.f32.mrb[20].mxu1  ;;  %v6886_v37 = vpop.f32.mrb[21].mxu0 }
 0x4f7   :  { %v6887_v39 = vadd.f32 %v6886_v37, %v6885_v34  ;;  %v6908_v40 = vpop.f32.mrb[21].mxu1  ;;  %v6888_v42 = vpop.f32.mrb[22].mxu0 }
 0x4f8   :  { %v6909_v43 = vadd.f32 %v6908_v40, %v6907_v35  ;;  %v6910_v44 = vpop.f32.mrb[22].mxu1  ;;  %v6889_v48 = vpop.f32.mrb[23].mxu0 }
 0x4f9   :  { %v6000_v53 = vadd.f32 %v6887_v39, %v5959_v31  ;;  %v6890_v51 = vadd.f32 %v6889_v48, %v6888_v42  ;;  %v6911_v38 = vpop.f32.mrb[23].mxu1 }
 0x4fa   :  { %v6912_v20 = vadd.f32 %v6911_v38, %v6910_v44 }
 0x4fb   :  { %v6041_v0 = vadd.f32 %v6909_v43, %v6000_v53  ;;  %v6003_v62 = vadd.f32 %v6890_v51, %v5962_v33 }
 0x4fd   :  { %6047 = vst [vmem:[%s7374_s5] sm:$0xff] %v6041_v0  ;;  %v6044_v36 = vadd.f32 %v6912_v20, %v6003_v62 }
 0x4ff   :  { %6048 = vst [vmem:[%s7374_s5 + $0x8] sm:$0xff] %v6044_v36 }
 0x500   :  { %6053 = vsyncpa [#allocation4], 1 }
 0x501   :  { %6054 = vsyncpa [#allocation6], 1 }
 0x502   :  { %6055 = vsyncpa [#allocation9], 1 }

</bundles_post_ra>
